<compile_context>
chip_gen: v6e
topology: v6e:2x2x1
jax: 0.10.0
libtpu: 0.0.40
codegen_flags: <defaults>
</compile_context>

<pallas_src>
import functools

import jax
import jax.numpy as jnp
from jax import lax
from jax.experimental import pallas as pl
from jax.experimental.pallas import tpu as pltpu

HIDDEN = 23          # LSTM hidden size
INPUT = 24           # LSTM input size
NUM_LAYERS = 3
NUM_CLASSES = 2

GPAD = 32            # lanes per gate block (>= HIDDEN, divides 128)
GW = 4 * GPAD        # packed gate width: all 4 gates of a layer in one vreg
KPAD = 128           # padded contraction width for the h-projections


# ----------------------------- Pallas kernel ------------------------------

def lstm_kernel(x_ref,                        # (T*B, INPUT)
                wx0_ref, wh0_ref, b0_ref,     # (INPUT, GW), (KPAD, GW), (1, GW)
                w1x_ref, w1h_ref, b1_ref,     # (KPAD, GW), (KPAD, GW), (1, GW)
                w2x_ref, w2h_ref, b2_ref,     # (KPAD, GW), (KPAD, GW), (1, GW)
                lw1_ref, lb1_ref,             # (KPAD, GW), (1, GW)
                lw2_ref, lb2_ref,             # (KPAD, GW), (1, GW)
                out_ref,                      # (B, GW)   (only [:, :2] meaningful)
                gx0_ref,                      # scratch (T*B, GW)
                *, seq_len, batch):
    # (1) Hoisted layer-0 input projection + bias: one big matmul, completely
    #     off the recurrent critical path.
    gx0_ref[...] = (
        jnp.dot(x_ref[...], wx0_ref[...], preferred_element_type=jnp.float32)
        + b0_ref[...])

    # (2) Loop-invariant bias broadcasts (weights are read at their use sites
    #     to keep vreg pressure low; the vld slots are not the bottleneck).
    b1 = jnp.broadcast_to(b1_ref[...], (batch, GW))
    b2 = jnp.broadcast_to(b2_ref[...], (batch, GW))

    # (3) One-time rotation-convention probe: `conv` is uniformly True iff
    #     pltpu.roll matches jnp.roll semantics (out[i] = in[(i - shift) % n]).
    #     It selects which rotated copy holds the f / o gate, so the cell math
    #     is correct under either convention.  g uses the self-symmetric
    #     64-lane roll and needs no select.
    lane = lax.broadcasted_iota(jnp.int32, (batch, GW), 1)
    expect = jnp.where(lane < GPAD, lane + (GW - GPAD), lane - GPAD)
    conv = pltpu.roll(lane, shift=GPAD, axis=1) == expect

    def cell(gates, c):
        # gates: (batch, GW) with 32-lane blocks [ i | f | g | o ]; lanes
        # >= HIDDEN inside each block are exact zeros (zero weight cols/bias).
        # c: (batch, GW); true cell state in lanes [0, GPAD), bounded
        # don't-care values elsewhere (they only ever meet zero weight rows).
        sig = jax.nn.sigmoid(gates)                                  # i / f / o
        g_al = jnp.tanh(pltpu.roll(gates, shift=2 * GPAD, axis=1))   # block2 -> 0
        r_a = pltpu.roll(sig, shift=GW - GPAD, axis=1)               # block1 -> 0 (jnp conv)
        r_b = pltpu.roll(sig, shift=GPAD, axis=1)                    # block3 -> 0 (jnp conv)
        f_al = jnp.where(conv, r_a, r_b)
        o_al = jnp.where(conv, r_b, r_a)
        i_al = sig                                                   # block 0 aligned
        c_new = f_al * c + i_al * g_al
        h_new = o_al * jnp.tanh(c_new)
        # padded lanes [HIDDEN, GPAD): gates == 0 -> i=f=o=0.5, g=0 -> c,h stay 0.
        return h_new, c_new

    zeros = jnp.zeros((batch, GW), jnp.float32)
    h0 = c0 = h1 = c1 = h2 = c2 = zeros

    # (4) Wavefront schedule: macro-step s runs layer0@t=s, layer1@t=s-1,
    #     layer2@t=s-2.  Every cell reads only state produced at macro-step
    #     s-1 (h0_prev / h1_prev snapshots), so the three cells are mutually
    #     independent and the serial chain is T+2 macro-steps, not 3*T cells.
    for s in range(seq_len + 2):
        h0_prev, h1_prev = h0, h1
        if s < seq_len:
            g0 = gx0_ref[pl.ds(s * batch, batch), :] + jnp.dot(
                h0, wh0_ref[...], preferred_element_type=jnp.float32)
            h0, c0 = cell(g0, c0)
        if 1 <= s <= seq_len:
            g1 = (jnp.dot(h0_prev, w1x_ref[...], preferred_element_type=jnp.float32)
                  + jnp.dot(h1, w1h_ref[...], preferred_element_type=jnp.float32)
                  + b1)
            h1, c1 = cell(g1, c1)
        if 2 <= s <= seq_len + 1:
            g2 = (jnp.dot(h1_prev, w2x_ref[...], preferred_element_type=jnp.float32)
                  + jnp.dot(h2, w2h_ref[...], preferred_element_type=jnp.float32)
                  + b2)
            h2, c2 = cell(g2, c2)

    # (5) head: Linear(H, H) then Linear(H, 2), padded to 128 lanes.
    z = jnp.dot(h2, lw1_ref[...], preferred_element_type=jnp.float32) + lb1_ref[...]
    out_ref[...] = (jnp.dot(z, lw2_ref[...], preferred_element_type=jnp.float32)
                    + lb2_ref[...])


# --------------------------- weight repacking ------------------------------

def _pack_gate_cols(w, rows):
    """PyTorch (4H, in_dim) -> (rows, GW); gate g in lanes [g*GPAD, g*GPAD+H)."""
    in_dim = w.shape[1]
    out = jnp.zeros((rows, GW), jnp.float32)
    for g in range(4):
        out = out.at[:in_dim, g * GPAD:g * GPAD + HIDDEN].set(
            w[g * HIDDEN:(g + 1) * HIDDEN, :].T)
    return out


def _pack_gate_bias(b):
    """PyTorch (4H,) -> (1, GW) with zeros in the padded lanes."""
    out = jnp.zeros((1, GW), jnp.float32)
    for g in range(4):
        out = out.at[0, g * GPAD:g * GPAD + HIDDEN].set(
            b[g * HIDDEN:(g + 1) * HIDDEN])
    return out


# ------------------------------ JAX wrapper -------------------------------

def init_params(key):
    """Deterministic params, PyTorch-style uniform(-1/sqrt(fan), 1/sqrt(fan))."""
    params = {}
    k_lstm = 1.0 / jnp.sqrt(jnp.float32(HIDDEN))
    keys = jax.random.split(key, 4 * NUM_LAYERS + 4)
    ki = 0
    for layer in range(NUM_LAYERS):
        in_dim = INPUT if layer == 0 else HIDDEN
        params[f"w_ih_l{layer}"] = jax.random.uniform(
            keys[ki], (4 * HIDDEN, in_dim), jnp.float32, -k_lstm, k_lstm); ki += 1
        params[f"w_hh_l{layer}"] = jax.random.uniform(
            keys[ki], (4 * HIDDEN, HIDDEN), jnp.float32, -k_lstm, k_lstm); ki += 1
        params[f"b_ih_l{layer}"] = jax.random.uniform(
            keys[ki], (4 * HIDDEN,), jnp.float32, -k_lstm, k_lstm); ki += 1
        params[f"b_hh_l{layer}"] = jax.random.uniform(
            keys[ki], (4 * HIDDEN,), jnp.float32, -k_lstm, k_lstm); ki += 1
    k1 = 1.0 / jnp.sqrt(jnp.float32(HIDDEN))
    params["lin1_w"] = jax.random.uniform(keys[ki], (HIDDEN, HIDDEN), jnp.float32, -k1, k1); ki += 1
    params["lin1_b"] = jax.random.uniform(keys[ki], (HIDDEN,), jnp.float32, -k1, k1); ki += 1
    params["lin2_w"] = jax.random.uniform(keys[ki], (NUM_CLASSES, HIDDEN), jnp.float32, -k1, k1); ki += 1
    params["lin2_b"] = jax.random.uniform(keys[ki], (NUM_CLASSES,), jnp.float32, -k1, k1); ki += 1
    return params


def lstm_forward(x, params):
    """x: (B, T, INPUT) float32  ->  (B, 2) float32."""
    B, T, _ = x.shape
    B_pad = max(8, ((B + 7) // 8) * 8)                 # fill vreg sublanes

    # time-major, batch-padded, flattened to (T*B_pad, INPUT)
    x_tm = jnp.transpose(x, (1, 0, 2))                 # (T, B, INPUT)
    x_tm = jnp.pad(x_tm, ((0, 0), (0, B_pad - B), (0, 0)))
    x2d = x_tm.reshape(T * B_pad, INPUT)

    # layer 0: hoisted x-projection weight + recurrent weight.
    wx0 = _pack_gate_cols(params["w_ih_l0"], INPUT)                        # (24, 128)
    wh0 = _pack_gate_cols(params["w_hh_l0"], KPAD)                         # (128, 128)
    b0 = _pack_gate_bias(params["b_ih_l0"] + params["b_hh_l0"])            # (1, 128)

    # layers 1 & 2: split weight halves (no in-kernel concat).
    w1x = _pack_gate_cols(params["w_ih_l1"], KPAD)
    w1h = _pack_gate_cols(params["w_hh_l1"], KPAD)
    b1 = _pack_gate_bias(params["b_ih_l1"] + params["b_hh_l1"])
    w2x = _pack_gate_cols(params["w_ih_l2"], KPAD)
    w2h = _pack_gate_cols(params["w_hh_l2"], KPAD)
    b2 = _pack_gate_bias(params["b_ih_l2"] + params["b_hh_l2"])

    # head, padded to 128 lanes (padded rows/cols are exact zeros).
    lw1 = jnp.zeros((KPAD, GW), jnp.float32).at[:HIDDEN, :HIDDEN].set(params["lin1_w"].T)
    lb1 = jnp.zeros((1, GW), jnp.float32).at[0, :HIDDEN].set(params["lin1_b"])
    lw2 = jnp.zeros((KPAD, GW), jnp.float32).at[:HIDDEN, :NUM_CLASSES].set(params["lin2_w"].T)
    lb2 = jnp.zeros((1, GW), jnp.float32).at[0, :NUM_CLASSES].set(params["lin2_b"])

    vmem = pl.BlockSpec(memory_space=pltpu.MemorySpace.VMEM)
    kernel = functools.partial(lstm_kernel, seq_len=T, batch=B_pad)
    out = pl.pallas_call(
        kernel,
        out_shape=jax.ShapeDtypeStruct((B_pad, GW), jnp.float32),
        in_specs=[vmem] * 14,
        out_specs=vmem,
        scratch_shapes=[pltpu.VMEM((T * B_pad, GW), jnp.float32)],
    )(x2d, wx0, wh0, b0, w1x, w1h, b1, w2x, w2h, b2, lw1, lb1, lw2, lb2)

    return out[:B, :NUM_CLASSES]


# --------------------------- pure-JAX reference ----------------------------

def lstm_reference(x, params):
    B, T, _ = x.shape
    layer_in = x
    for layer in range(NUM_LAYERS):
        w_ih = params[f"w_ih_l{layer}"]
        w_hh = params[f"w_hh_l{layer}"]
        b = params[f"b_ih_l{layer}"] + params[f"b_hh_l{layer}"]

        def cell(carry, x_t):
            h, c = carry
            gates = x_t @ w_ih.T + h @ w_hh.T + b
            i = jax.nn.sigmoid(gates[:, 0 * HIDDEN:1 * HIDDEN])
            f = jax.nn.sigmoid(gates[:, 1 * HIDDEN:2 * HIDDEN])
            g = jnp.tanh(gates[:, 2 * HIDDEN:3 * HIDDEN])
            o = jax.nn.sigmoid(gates[:, 3 * HIDDEN:4 * HIDDEN])
            c_new = f * c + i * g
            h_new = o * jnp.tanh(c_new)
            return (h_new, c_new), h_new

        h0 = jnp.zeros((B, HIDDEN), jnp.float32)
        c0 = jnp.zeros((B, HIDDEN), jnp.float32)
        _, hs = lax.scan(cell, (h0, c0), jnp.transpose(layer_in, (1, 0, 2)))
        layer_in = jnp.transpose(hs, (1, 0, 2))           # (B, T, H)

    feat_last = layer_in[:, -1, :]
    z = feat_last @ params["lin1_w"].T + params["lin1_b"]
    return z @ params["lin2_w"].T + params["lin2_b"]


# --------------------------------- main ------------------------------------

if __name__ == "__main__":
    key = jax.random.PRNGKey(0)
    k_x, k_p = jax.random.split(key)

    B, T = 4, 8
    x = jax.random.normal(k_x, (B, T, INPUT), jnp.float32)
    params = init_params(k_p)

    out = lstm_forward(x, params)
    out = jax.block_until_ready(out)

    ref = lstm_reference(x, params)
    assert out.shape == (B, NUM_CLASSES), out.shape
    assert jnp.allclose(out, ref, atol=1e-4, rtol=1e-4), (out, ref)

    print("KERNEL_OK")
</pallas_src>

<mosaic_0001>
module attributes {stable_mosaic.version = 11 : i64} {
  func.func @lstm_kernel(%arg0: memref<64x24xf32, #tpu.memory_space<vmem>>, %arg1: memref<24x128xf32, #tpu.memory_space<vmem>>, %arg2: memref<128x128xf32, #tpu.memory_space<vmem>>, %arg3: memref<1x128xf32, #tpu.memory_space<vmem>>, %arg4: memref<128x128xf32, #tpu.memory_space<vmem>>, %arg5: memref<128x128xf32, #tpu.memory_space<vmem>>, %arg6: memref<1x128xf32, #tpu.memory_space<vmem>>, %arg7: memref<128x128xf32, #tpu.memory_space<vmem>>, %arg8: memref<128x128xf32, #tpu.memory_space<vmem>>, %arg9: memref<1x128xf32, #tpu.memory_space<vmem>>, %arg10: memref<128x128xf32, #tpu.memory_space<vmem>>, %arg11: memref<1x128xf32, #tpu.memory_space<vmem>>, %arg12: memref<128x128xf32, #tpu.memory_space<vmem>>, %arg13: memref<1x128xf32, #tpu.memory_space<vmem>>, %arg14: memref<8x128xf32, #tpu.memory_space<vmem>>, %arg15: memref<64x128xf32, #tpu.memory_space<vmem>>) attributes {dimension_semantics = [], scalar_prefetch = 0 : i64, scratch_operands = 1 : i64, tpu.core_type = #tpu.core_type<tc>} {
    %c0 = arith.constant 0 : index
    %c0_0 = arith.constant 0 : index
    %0 = vector.load %arg0[%c0, %c0_0] : memref<64x24xf32, #tpu.memory_space<vmem>>, vector<64x24xf32>
    %c0_1 = arith.constant 0 : index
    %c0_2 = arith.constant 0 : index
    %1 = vector.load %arg1[%c0_1, %c0_2] : memref<24x128xf32, #tpu.memory_space<vmem>>, vector<24x128xf32>
    %cst = arith.constant dense<0.000000e+00> : vector<64x128xf32>
    %2 = tpu.matmul %0, %1, %cst {dimension_numbers = #tpu.dot_dimension_numbers<[1], [0], [0], [1], [0, 0, 1, 1], [], []>} : vector<64x24xf32>, vector<24x128xf32>, vector<64x128xf32> -> vector<64x128xf32>
    %c0_3 = arith.constant 0 : index
    %c0_4 = arith.constant 0 : index
    %3 = vector.load %arg3[%c0_3, %c0_4] : memref<1x128xf32, #tpu.memory_space<vmem>>, vector<1x128xf32>
    %4 = vector.broadcast %3 : vector<1x128xf32> to vector<64x128xf32>
    %5 = arith.addf %2, %4 : vector<64x128xf32>
    %c0_5 = arith.constant 0 : index
    %c0_6 = arith.constant 0 : index
    %6 = vector.load %arg15[%c0_5, %c0_6] : memref<64x128xf32, #tpu.memory_space<vmem>>, vector<64x128xf32>
    tpu.vector_store %arg15[%c0_5, %c0_6], %5 {strides = array<i32>} : memref<64x128xf32, #tpu.memory_space<vmem>>, vector<64x128xf32>,
    %c0_7 = arith.constant 0 : index
    %c0_8 = arith.constant 0 : index
    %7 = vector.load %arg6[%c0_7, %c0_8] : memref<1x128xf32, #tpu.memory_space<vmem>>, vector<1x128xf32>
    %8 = vector.shape_cast %7 : vector<1x128xf32> to vector<1x128xf32>
    %9 = vector.broadcast %8 : vector<1x128xf32> to vector<8x128xf32>
    %c0_9 = arith.constant 0 : index
    %c0_10 = arith.constant 0 : index
    %10 = vector.load %arg9[%c0_9, %c0_10] : memref<1x128xf32, #tpu.memory_space<vmem>>, vector<1x128xf32>
    %11 = vector.shape_cast %10 : vector<1x128xf32> to vector<1x128xf32>
    %12 = vector.broadcast %11 : vector<1x128xf32> to vector<8x128xf32>
    %13 = tpu.iota {dimensions = array<i32: 1>} : vector<8x128xi32>
    %c32_i32 = arith.constant 32 : i32
    %14 = vector.broadcast %c32_i32 : i32 to vector<8x128xi32>
    %15 = arith.cmpi slt, %13, %14 : vector<8x128xi32>
    %c96_i32 = arith.constant 96 : i32
    %16 = vector.broadcast %c96_i32 : i32 to vector<8x128xi32>
    %17 = arith.addi %13, %16 : vector<8x128xi32>
    %c32_i32_11 = arith.constant 32 : i32
    %18 = vector.broadcast %c32_i32_11 : i32 to vector<8x128xi32>
    %19 = arith.subi %13, %18 : vector<8x128xi32>
    %20 = arith.select %15, %17, %19 : vector<8x128xi1>, vector<8x128xi32>
    %c32_i32_12 = arith.constant 32 : i32
    %21 = tpu.dynamic_rotate %13 by %c32_i32_12 dim 1 : vector<8x128xi32>, i32 -> vector<8x128xi32>
    %22 = arith.cmpi eq, %21, %20 : vector<8x128xi32>
    %cst_13 = arith.constant 0.000000e+00 : f32
    %23 = vector.broadcast %cst_13 : f32 to vector<8x128xf32>
    %c0_14 = arith.constant 0 : index
    %c0_15 = arith.constant 0 : index
    %24 = vector.load %arg15[%c0_14, %c0_15] : memref<64x128xf32, #tpu.memory_space<vmem>>, vector<8x128xf32>
    %c0_16 = arith.constant 0 : index
    %c0_17 = arith.constant 0 : index
    %25 = vector.load %arg2[%c0_16, %c0_17] : memref<128x128xf32, #tpu.memory_space<vmem>>, vector<128x128xf32>
    %cst_18 = arith.constant dense<0.000000e+00> : vector<8x128xf32>
    %26 = tpu.matmul %23, %25, %cst_18 {dimension_numbers = #tpu.dot_dimension_numbers<[1], [0], [0], [1], [0, 0, 1, 1], [], []>} : vector<8x128xf32>, vector<128x128xf32>, vector<8x128xf32> -> vector<8x128xf32>
    %27 = arith.addf %24, %26 : vector<8x128xf32>
    %28 = arith.negf %27 : vector<8x128xf32>
    %29 = math.exp %28 : vector<8x128xf32>
    %cst_19 = arith.constant 1.000000e+00 : f32
    %30 = vector.broadcast %cst_19 : f32 to vector<8x128xf32>
    %31 = arith.addf %30, %29 : vector<8x128xf32>
    %32 = arith.divf %30, %31 : vector<8x128xf32>
    %c64_i32 = arith.constant 64 : i32
    %33 = tpu.dynamic_rotate %27 by %c64_i32 dim 1 : vector<8x128xf32>, i32 -> vector<8x128xf32>
    %34 = math.tanh %33 : vector<8x128xf32>
    %c96_i32_20 = arith.constant 96 : i32
    %35 = tpu.dynamic_rotate %32 by %c96_i32_20 dim 1 : vector<8x128xf32>, i32 -> vector<8x128xf32>
    %c32_i32_21 = arith.constant 32 : i32
    %36 = tpu.dynamic_rotate %32 by %c32_i32_21 dim 1 : vector<8x128xf32>, i32 -> vector<8x128xf32>
    %37 = arith.select %22, %35, %36 : vector<8x128xi1>, vector<8x128xf32>
    %38 = arith.select %22, %36, %35 : vector<8x128xi1>, vector<8x128xf32>
    %39 = arith.mulf %37, %23 : vector<8x128xf32>
    %40 = arith.mulf %32, %34 : vector<8x128xf32>
    %41 = arith.addf %39, %40 : vector<8x128xf32>
    %42 = math.tanh %41 : vector<8x128xf32>
    %43 = arith.mulf %38, %42 : vector<8x128xf32>
    %c8 = arith.constant 8 : index
    %c0_22 = arith.constant 0 : index
    %44 = vector.load %arg15[%c8, %c0_22] : memref<64x128xf32, #tpu.memory_space<vmem>>, vector<8x128xf32>
    %c0_23 = arith.constant 0 : index
    %c0_24 = arith.constant 0 : index
    %45 = vector.load %arg2[%c0_23, %c0_24] : memref<128x128xf32, #tpu.memory_space<vmem>>, vector<128x128xf32>
    %cst_25 = arith.constant dense<0.000000e+00> : vector<8x128xf32>
    %46 = tpu.matmul %43, %45, %cst_25 {dimension_numbers = #tpu.dot_dimension_numbers<[1], [0], [0], [1], [0, 0, 1, 1], [], []>} : vector<8x128xf32>, vector<128x128xf32>, vector<8x128xf32> -> vector<8x128xf32>
    %47 = arith.addf %44, %46 : vector<8x128xf32>
    %48 = arith.negf %47 : vector<8x128xf32>
    %49 = math.exp %48 : vector<8x128xf32>
    %cst_26 = arith.constant 1.000000e+00 : f32
    %50 = vector.broadcast %cst_26 : f32 to vector<8x128xf32>
    %51 = arith.addf %50, %49 : vector<8x128xf32>
    %52 = arith.divf %50, %51 : vector<8x128xf32>
    %c64_i32_27 = arith.constant 64 : i32
    %53 = tpu.dynamic_rotate %47 by %c64_i32_27 dim 1 : vector<8x128xf32>, i32 -> vector<8x128xf32>
    %54 = math.tanh %53 : vector<8x128xf32>
    %c96_i32_28 = arith.constant 96 : i32
    %55 = tpu.dynamic_rotate %52 by %c96_i32_28 dim 1 : vector<8x128xf32>, i32 -> vector<8x128xf32>
    %c32_i32_29 = arith.constant 32 : i32
    %56 = tpu.dynamic_rotate %52 by %c32_i32_29 dim 1 : vector<8x128xf32>, i32 -> vector<8x128xf32>
    %57 = arith.select %22, %55, %56 : vector<8x128xi1>, vector<8x128xf32>
    %58 = arith.select %22, %56, %55 : vector<8x128xi1>, vector<8x128xf32>
    %59 = arith.mulf %57, %41 : vector<8x128xf32>
    %60 = arith.mulf %52, %54 : vector<8x128xf32>
    %61 = arith.addf %59, %60 : vector<8x128xf32>
    %62 = math.tanh %61 : vector<8x128xf32>
    %63 = arith.mulf %58, %62 : vector<8x128xf32>
    %c0_30 = arith.constant 0 : index
    %c0_31 = arith.constant 0 : index
    %64 = vector.load %arg4[%c0_30, %c0_31] : memref<128x128xf32, #tpu.memory_space<vmem>>, vector<128x128xf32>
    %cst_32 = arith.constant dense<0.000000e+00> : vector<8x128xf32>
    %65 = tpu.matmul %43, %64, %cst_32 {dimension_numbers = #tpu.dot_dimension_numbers<[1], [0], [0], [1], [0, 0, 1, 1], [], []>} : vector<8x128xf32>, vector<128x128xf32>, vector<8x128xf32> -> vector<8x128xf32>
    %c0_33 = arith.constant 0 : index
    %c0_34 = arith.constant 0 : index
    %66 = vector.load %arg5[%c0_33, %c0_34] : memref<128x128xf32, #tpu.memory_space<vmem>>, vector<128x128xf32>
    %cst_35 = arith.constant dense<0.000000e+00> : vector<8x128xf32>
    %67 = tpu.matmul %23, %66, %cst_35 {dimension_numbers = #tpu.dot_dimension_numbers<[1], [0], [0], [1], [0, 0, 1, 1], [], []>} : vector<8x128xf32>, vector<128x128xf32>, vector<8x128xf32> -> vector<8x128xf32>
    %68 = arith.addf %65, %67 : vector<8x128xf32>
    %69 = arith.addf %68, %9 : vector<8x128xf32>
    %70 = arith.negf %69 : vector<8x128xf32>
    %71 = math.exp %70 : vector<8x128xf32>
    %cst_36 = arith.constant 1.000000e+00 : f32
    %72 = vector.broadcast %cst_36 : f32 to vector<8x128xf32>
    %73 = arith.addf %72, %71 : vector<8x128xf32>
    %74 = arith.divf %72, %73 : vector<8x128xf32>
    %c64_i32_37 = arith.constant 64 : i32
    %75 = tpu.dynamic_rotate %69 by %c64_i32_37 dim 1 : vector<8x128xf32>, i32 -> vector<8x128xf32>
    %76 = math.tanh %75 : vector<8x128xf32>
    %c96_i32_38 = arith.constant 96 : i32
    %77 = tpu.dynamic_rotate %74 by %c96_i32_38 dim 1 : vector<8x128xf32>, i32 -> vector<8x128xf32>
    %c32_i32_39 = arith.constant 32 : i32
    %78 = tpu.dynamic_rotate %74 by %c32_i32_39 dim 1 : vector<8x128xf32>, i32 -> vector<8x128xf32>
    %79 = arith.select %22, %77, %78 : vector<8x128xi1>, vector<8x128xf32>
    %80 = arith.select %22, %78, %77 : vector<8x128xi1>, vector<8x128xf32>
    %81 = arith.mulf %79, %23 : vector<8x128xf32>
    %82 = arith.mulf %74, %76 : vector<8x128xf32>
    %83 = arith.addf %81, %82 : vector<8x128xf32>
    %84 = math.tanh %83 : vector<8x128xf32>
    %85 = arith.mulf %80, %84 : vector<8x128xf32>
    %c16 = arith.constant 16 : index
    %c0_40 = arith.constant 0 : index
    %86 = vector.load %arg15[%c16, %c0_40] : memref<64x128xf32, #tpu.memory_space<vmem>>, vector<8x128xf32>
    %c0_41 = arith.constant 0 : index
    %c0_42 = arith.constant 0 : index
    %87 = vector.load %arg2[%c0_41, %c0_42] : memref<128x128xf32, #tpu.memory_space<vmem>>, vector<128x128xf32>
    %cst_43 = arith.constant dense<0.000000e+00> : vector<8x128xf32>
    %88 = tpu.matmul %63, %87, %cst_43 {dimension_numbers = #tpu.dot_dimension_numbers<[1], [0], [0], [1], [0, 0, 1, 1], [], []>} : vector<8x128xf32>, vector<128x128xf32>, vector<8x128xf32> -> vector<8x128xf32>
    %89 = arith.addf %86, %88 : vector<8x128xf32>
    %90 = arith.negf %89 : vector<8x128xf32>
    %91 = math.exp %90 : vector<8x128xf32>
    %cst_44 = arith.constant 1.000000e+00 : f32
    %92 = vector.broadcast %cst_44 : f32 to vector<8x128xf32>
    %93 = arith.addf %92, %91 : vector<8x128xf32>
    %94 = arith.divf %92, %93 : vector<8x128xf32>
    %c64_i32_45 = arith.constant 64 : i32
    %95 = tpu.dynamic_rotate %89 by %c64_i32_45 dim 1 : vector<8x128xf32>, i32 -> vector<8x128xf32>
    %96 = math.tanh %95 : vector<8x128xf32>
    %c96_i32_46 = arith.constant 96 : i32
    %97 = tpu.dynamic_rotate %94 by %c96_i32_46 dim 1 : vector<8x128xf32>, i32 -> vector<8x128xf32>
    %c32_i32_47 = arith.constant 32 : i32
    %98 = tpu.dynamic_rotate %94 by %c32_i32_47 dim 1 : vector<8x128xf32>, i32 -> vector<8x128xf32>
    %99 = arith.select %22, %97, %98 : vector<8x128xi1>, vector<8x128xf32>
    %100 = arith.select %22, %98, %97 : vector<8x128xi1>, vector<8x128xf32>
    %101 = arith.mulf %99, %61 : vector<8x128xf32>
    %102 = arith.mulf %94, %96 : vector<8x128xf32>
    %103 = arith.addf %101, %102 : vector<8x128xf32>
    %104 = math.tanh %103 : vector<8x128xf32>
    %105 = arith.mulf %100, %104 : vector<8x128xf32>
    %c0_48 = arith.constant 0 : index
    %c0_49 = arith.constant 0 : index
    %106 = vector.load %arg4[%c0_48, %c0_49] : memref<128x128xf32, #tpu.memory_space<vmem>>, vector<128x128xf32>
    %cst_50 = arith.constant dense<0.000000e+00> : vector<8x128xf32>
    %107 = tpu.matmul %63, %106, %cst_50 {dimension_numbers = #tpu.dot_dimension_numbers<[1], [0], [0], [1], [0, 0, 1, 1], [], []>} : vector<8x128xf32>, vector<128x128xf32>, vector<8x128xf32> -> vector<8x128xf32>
    %c0_51 = arith.constant 0 : index
    %c0_52 = arith.constant 0 : index
    %108 = vector.load %arg5[%c0_51, %c0_52] : memref<128x128xf32, #tpu.memory_space<vmem>>, vector<128x128xf32>
    %cst_53 = arith.constant dense<0.000000e+00> : vector<8x128xf32>
    %109 = tpu.matmul %85, %108, %cst_53 {dimension_numbers = #tpu.dot_dimension_numbers<[1], [0], [0], [1], [0, 0, 1, 1], [], []>} : vector<8x128xf32>, vector<128x128xf32>, vector<8x128xf32> -> vector<8x128xf32>
    %110 = arith.addf %107, %109 : vector<8x128xf32>
    %111 = arith.addf %110, %9 : vector<8x128xf32>
    %112 = arith.negf %111 : vector<8x128xf32>
    %113 = math.exp %112 : vector<8x128xf32>
    %cst_54 = arith.constant 1.000000e+00 : f32
    %114 = vector.broadcast %cst_54 : f32 to vector<8x128xf32>
    %115 = arith.addf %114, %113 : vector<8x128xf32>
    %116 = arith.divf %114, %115 : vector<8x128xf32>
    %c64_i32_55 = arith.constant 64 : i32
    %117 = tpu.dynamic_rotate %111 by %c64_i32_55 dim 1 : vector<8x128xf32>, i32 -> vector<8x128xf32>
    %118 = math.tanh %117 : vector<8x128xf32>
    %c96_i32_56 = arith.constant 96 : i32
    %119 = tpu.dynamic_rotate %116 by %c96_i32_56 dim 1 : vector<8x128xf32>, i32 -> vector<8x128xf32>
    %c32_i32_57 = arith.constant 32 : i32
    %120 = tpu.dynamic_rotate %116 by %c32_i32_57 dim 1 : vector<8x128xf32>, i32 -> vector<8x128xf32>
    %121 = arith.select %22, %119, %120 : vector<8x128xi1>, vector<8x128xf32>
    %122 = arith.select %22, %120, %119 : vector<8x128xi1>, vector<8x128xf32>
    %123 = arith.mulf %121, %83 : vector<8x128xf32>
    %124 = arith.mulf %116, %118 : vector<8x128xf32>
    %125 = arith.addf %123, %124 : vector<8x128xf32>
    %126 = math.tanh %125 : vector<8x128xf32>
    %127 = arith.mulf %122, %126 : vector<8x128xf32>
    %c0_58 = arith.constant 0 : index
    %c0_59 = arith.constant 0 : index
    %128 = vector.load %arg7[%c0_58, %c0_59] : memref<128x128xf32, #tpu.memory_space<vmem>>, vector<128x128xf32>
    %cst_60 = arith.constant dense<0.000000e+00> : vector<8x128xf32>
    %129 = tpu.matmul %85, %128, %cst_60 {dimension_numbers = #tpu.dot_dimension_numbers<[1], [0], [0], [1], [0, 0, 1, 1], [], []>} : vector<8x128xf32>, vector<128x128xf32>, vector<8x128xf32> -> vector<8x128xf32>
    %c0_61 = arith.constant 0 : index
    %c0_62 = arith.constant 0 : index
    %130 = vector.load %arg8[%c0_61, %c0_62] : memref<128x128xf32, #tpu.memory_space<vmem>>, vector<128x128xf32>
    %cst_63 = arith.constant dense<0.000000e+00> : vector<8x128xf32>
    %131 = tpu.matmul %23, %130, %cst_63 {dimension_numbers = #tpu.dot_dimension_numbers<[1], [0], [0], [1], [0, 0, 1, 1], [], []>} : vector<8x128xf32>, vector<128x128xf32>, vector<8x128xf32> -> vector<8x128xf32>
    %132 = arith.addf %129, %131 : vector<8x128xf32>
    %133 = arith.addf %132, %12 : vector<8x128xf32>
    %134 = arith.negf %133 : vector<8x128xf32>
    %135 = math.exp %134 : vector<8x128xf32>
    %cst_64 = arith.constant 1.000000e+00 : f32
    %136 = vector.broadcast %cst_64 : f32 to vector<8x128xf32>
    %137 = arith.addf %136, %135 : vector<8x128xf32>
    %138 = arith.divf %136, %137 : vector<8x128xf32>
    %c64_i32_65 = arith.constant 64 : i32
    %139 = tpu.dynamic_rotate %133 by %c64_i32_65 dim 1 : vector<8x128xf32>, i32 -> vector<8x128xf32>
    %140 = math.tanh %139 : vector<8x128xf32>
    %c96_i32_66 = arith.constant 96 : i32
    %141 = tpu.dynamic_rotate %138 by %c96_i32_66 dim 1 : vector<8x128xf32>, i32 -> vector<8x128xf32>
    %c32_i32_67 = arith.constant 32 : i32
    %142 = tpu.dynamic_rotate %138 by %c32_i32_67 dim 1 : vector<8x128xf32>, i32 -> vector<8x128xf32>
    %143 = arith.select %22, %141, %142 : vector<8x128xi1>, vector<8x128xf32>
    %144 = arith.select %22, %142, %141 : vector<8x128xi1>, vector<8x128xf32>
    %145 = arith.mulf %143, %23 : vector<8x128xf32>
    %146 = arith.mulf %138, %140 : vector<8x128xf32>
    %147 = arith.addf %145, %146 : vector<8x128xf32>
    %148 = math.tanh %147 : vector<8x128xf32>
    %149 = arith.mulf %144, %148 : vector<8x128xf32>
    %c24 = arith.constant 24 : index
    %c0_68 = arith.constant 0 : index
    %150 = vector.load %arg15[%c24, %c0_68] : memref<64x128xf32, #tpu.memory_space<vmem>>, vector<8x128xf32>
    %c0_69 = arith.constant 0 : index
    %c0_70 = arith.constant 0 : index
    %151 = vector.load %arg2[%c0_69, %c0_70] : memref<128x128xf32, #tpu.memory_space<vmem>>, vector<128x128xf32>
    %cst_71 = arith.constant dense<0.000000e+00> : vector<8x128xf32>
    %152 = tpu.matmul %105, %151, %cst_71 {dimension_numbers = #tpu.dot_dimension_numbers<[1], [0], [0], [1], [0, 0, 1, 1], [], []>} : vector<8x128xf32>, vector<128x128xf32>, vector<8x128xf32> -> vector<8x128xf32>
    %153 = arith.addf %150, %152 : vector<8x128xf32>
    %154 = arith.negf %153 : vector<8x128xf32>
    %155 = math.exp %154 : vector<8x128xf32>
    %cst_72 = arith.constant 1.000000e+00 : f32
    %156 = vector.broadcast %cst_72 : f32 to vector<8x128xf32>
    %157 = arith.addf %156, %155 : vector<8x128xf32>
    %158 = arith.divf %156, %157 : vector<8x128xf32>
    %c64_i32_73 = arith.constant 64 : i32
    %159 = tpu.dynamic_rotate %153 by %c64_i32_73 dim 1 : vector<8x128xf32>, i32 -> vector<8x128xf32>
    %160 = math.tanh %159 : vector<8x128xf32>
    %c96_i32_74 = arith.constant 96 : i32
    %161 = tpu.dynamic_rotate %158 by %c96_i32_74 dim 1 : vector<8x128xf32>, i32 -> vector<8x128xf32>
    %c32_i32_75 = arith.constant 32 : i32
    %162 = tpu.dynamic_rotate %158 by %c32_i32_75 dim 1 : vector<8x128xf32>, i32 -> vector<8x128xf32>
    %163 = arith.select %22, %161, %162 : vector<8x128xi1>, vector<8x128xf32>
    %164 = arith.select %22, %162, %161 : vector<8x128xi1>, vector<8x128xf32>
    %165 = arith.mulf %163, %103 : vector<8x128xf32>
    %166 = arith.mulf %158, %160 : vector<8x128xf32>
    %167 = arith.addf %165, %166 : vector<8x128xf32>
    %168 = math.tanh %167 : vector<8x128xf32>
    %169 = arith.mulf %164, %168 : vector<8x128xf32>
    %c0_76 = arith.constant 0 : index
    %c0_77 = arith.constant 0 : index
    %170 = vector.load %arg4[%c0_76, %c0_77] : memref<128x128xf32, #tpu.memory_space<vmem>>, vector<128x128xf32>
    %cst_78 = arith.constant dense<0.000000e+00> : vector<8x128xf32>
    %171 = tpu.matmul %105, %170, %cst_78 {dimension_numbers = #tpu.dot_dimension_numbers<[1], [0], [0], [1], [0, 0, 1, 1], [], []>} : vector<8x128xf32>, vector<128x128xf32>, vector<8x128xf32> -> vector<8x128xf32>
    %c0_79 = arith.constant 0 : index
    %c0_80 = arith.constant 0 : index
    %172 = vector.load %arg5[%c0_79, %c0_80] : memref<128x128xf32, #tpu.memory_space<vmem>>, vector<128x128xf32>
    %cst_81 = arith.constant dense<0.000000e+00> : vector<8x128xf32>
    %173 = tpu.matmul %127, %172, %cst_81 {dimension_numbers = #tpu.dot_dimension_numbers<[1], [0], [0], [1], [0, 0, 1, 1], [], []>} : vector<8x128xf32>, vector<128x128xf32>, vector<8x128xf32> -> vector<8x128xf32>
    %174 = arith.addf %171, %173 : vector<8x128xf32>
    %175 = arith.addf %174, %9 : vector<8x128xf32>
    %176 = arith.negf %175 : vector<8x128xf32>
    %177 = math.exp %176 : vector<8x128xf32>
    %cst_82 = arith.constant 1.000000e+00 : f32
    %178 = vector.broadcast %cst_82 : f32 to vector<8x128xf32>
    %179 = arith.addf %178, %177 : vector<8x128xf32>
    %180 = arith.divf %178, %179 : vector<8x128xf32>
    %c64_i32_83 = arith.constant 64 : i32
    %181 = tpu.dynamic_rotate %175 by %c64_i32_83 dim 1 : vector<8x128xf32>, i32 -> vector<8x128xf32>
    %182 = math.tanh %181 : vector<8x128xf32>
    %c96_i32_84 = arith.constant 96 : i32
    %183 = tpu.dynamic_rotate %180 by %c96_i32_84 dim 1 : vector<8x128xf32>, i32 -> vector<8x128xf32>
    %c32_i32_85 = arith.constant 32 : i32
    %184 = tpu.dynamic_rotate %180 by %c32_i32_85 dim 1 : vector<8x128xf32>, i32 -> vector<8x128xf32>
    %185 = arith.select %22, %183, %184 : vector<8x128xi1>, vector<8x128xf32>
    %186 = arith.select %22, %184, %183 : vector<8x128xi1>, vector<8x128xf32>
    %187 = arith.mulf %185, %125 : vector<8x128xf32>
    %188 = arith.mulf %180, %182 : vector<8x128xf32>
    %189 = arith.addf %187, %188 : vector<8x128xf32>
    %190 = math.tanh %189 : vector<8x128xf32>
    %191 = arith.mulf %186, %190 : vector<8x128xf32>
    %c0_86 = arith.constant 0 : index
    %c0_87 = arith.constant 0 : index
    %192 = vector.load %arg7[%c0_86, %c0_87] : memref<128x128xf32, #tpu.memory_space<vmem>>, vector<128x128xf32>
    %cst_88 = arith.constant dense<0.000000e+00> : vector<8x128xf32>
    %193 = tpu.matmul %127, %192, %cst_88 {dimension_numbers = #tpu.dot_dimension_numbers<[1], [0], [0], [1], [0, 0, 1, 1], [], []>} : vector<8x128xf32>, vector<128x128xf32>, vector<8x128xf32> -> vector<8x128xf32>
    %c0_89 = arith.constant 0 : index
    %c0_90 = arith.constant 0 : index
    %194 = vector.load %arg8[%c0_89, %c0_90] : memref<128x128xf32, #tpu.memory_space<vmem>>, vector<128x128xf32>
    %cst_91 = arith.constant dense<0.000000e+00> : vector<8x128xf32>
    %195 = tpu.matmul %149, %194, %cst_91 {dimension_numbers = #tpu.dot_dimension_numbers<[1], [0], [0], [1], [0, 0, 1, 1], [], []>} : vector<8x128xf32>, vector<128x128xf32>, vector<8x128xf32> -> vector<8x128xf32>
    %196 = arith.addf %193, %195 : vector<8x128xf32>
    %197 = arith.addf %196, %12 : vector<8x128xf32>
    %198 = arith.negf %197 : vector<8x128xf32>
    %199 = math.exp %198 : vector<8x128xf32>
    %cst_92 = arith.constant 1.000000e+00 : f32
    %200 = vector.broadcast %cst_92 : f32 to vector<8x128xf32>
    %201 = arith.addf %200, %199 : vector<8x128xf32>
    %202 = arith.divf %200, %201 : vector<8x128xf32>
    %c64_i32_93 = arith.constant 64 : i32
    %203 = tpu.dynamic_rotate %197 by %c64_i32_93 dim 1 : vector<8x128xf32>, i32 -> vector<8x128xf32>
    %204 = math.tanh %203 : vector<8x128xf32>
    %c96_i32_94 = arith.constant 96 : i32
    %205 = tpu.dynamic_rotate %202 by %c96_i32_94 dim 1 : vector<8x128xf32>, i32 -> vector<8x128xf32>
    %c32_i32_95 = arith.constant 32 : i32
    %206 = tpu.dynamic_rotate %202 by %c32_i32_95 dim 1 : vector<8x128xf32>, i32 -> vector<8x128xf32>
    %207 = arith.select %22, %205, %206 : vector<8x128xi1>, vector<8x128xf32>
    %208 = arith.select %22, %206, %205 : vector<8x128xi1>, vector<8x128xf32>
    %209 = arith.mulf %207, %147 : vector<8x128xf32>
    %210 = arith.mulf %202, %204 : vector<8x128xf32>
    %211 = arith.addf %209, %210 : vector<8x128xf32>
    %212 = math.tanh %211 : vector<8x128xf32>
    %213 = arith.mulf %208, %212 : vector<8x128xf32>
    %c32 = arith.constant 32 : index
    %c0_96 = arith.constant 0 : index
    %214 = vector.load %arg15[%c32, %c0_96] : memref<64x128xf32, #tpu.memory_space<vmem>>, vector<8x128xf32>
    %c0_97 = arith.constant 0 : index
    %c0_98 = arith.constant 0 : index
    %215 = vector.load %arg2[%c0_97, %c0_98] : memref<128x128xf32, #tpu.memory_space<vmem>>, vector<128x128xf32>
    %cst_99 = arith.constant dense<0.000000e+00> : vector<8x128xf32>
    %216 = tpu.matmul %169, %215, %cst_99 {dimension_numbers = #tpu.dot_dimension_numbers<[1], [0], [0], [1], [0, 0, 1, 1], [], []>} : vector<8x128xf32>, vector<128x128xf32>, vector<8x128xf32> -> vector<8x128xf32>
    %217 = arith.addf %214, %216 : vector<8x128xf32>
    %218 = arith.negf %217 : vector<8x128xf32>
    %219 = math.exp %218 : vector<8x128xf32>
    %cst_100 = arith.constant 1.000000e+00 : f32
    %220 = vector.broadcast %cst_100 : f32 to vector<8x128xf32>
    %221 = arith.addf %220, %219 : vector<8x128xf32>
    %222 = arith.divf %220, %221 : vector<8x128xf32>
    %c64_i32_101 = arith.constant 64 : i32
    %223 = tpu.dynamic_rotate %217 by %c64_i32_101 dim 1 : vector<8x128xf32>, i32 -> vector<8x128xf32>
    %224 = math.tanh %223 : vector<8x128xf32>
    %c96_i32_102 = arith.constant 96 : i32
    %225 = tpu.dynamic_rotate %222 by %c96_i32_102 dim 1 : vector<8x128xf32>, i32 -> vector<8x128xf32>
    %c32_i32_103 = arith.constant 32 : i32
    %226 = tpu.dynamic_rotate %222 by %c32_i32_103 dim 1 : vector<8x128xf32>, i32 -> vector<8x128xf32>
    %227 = arith.select %22, %225, %226 : vector<8x128xi1>, vector<8x128xf32>
    %228 = arith.select %22, %226, %225 : vector<8x128xi1>, vector<8x128xf32>
    %229 = arith.mulf %227, %167 : vector<8x128xf32>
    %230 = arith.mulf %222, %224 : vector<8x128xf32>
    %231 = arith.addf %229, %230 : vector<8x128xf32>
    %232 = math.tanh %231 : vector<8x128xf32>
    %233 = arith.mulf %228, %232 : vector<8x128xf32>
    %c0_104 = arith.constant 0 : index
    %c0_105 = arith.constant 0 : index
    %234 = vector.load %arg4[%c0_104, %c0_105] : memref<128x128xf32, #tpu.memory_space<vmem>>, vector<128x128xf32>
    %cst_106 = arith.constant dense<0.000000e+00> : vector<8x128xf32>
    %235 = tpu.matmul %169, %234, %cst_106 {dimension_numbers = #tpu.dot_dimension_numbers<[1], [0], [0], [1], [0, 0, 1, 1], [], []>} : vector<8x128xf32>, vector<128x128xf32>, vector<8x128xf32> -> vector<8x128xf32>
    %c0_107 = arith.constant 0 : index
    %c0_108 = arith.constant 0 : index
    %236 = vector.load %arg5[%c0_107, %c0_108] : memref<128x128xf32, #tpu.memory_space<vmem>>, vector<128x128xf32>
    %cst_109 = arith.constant dense<0.000000e+00> : vector<8x128xf32>
    %237 = tpu.matmul %191, %236, %cst_109 {dimension_numbers = #tpu.dot_dimension_numbers<[1], [0], [0], [1], [0, 0, 1, 1], [], []>} : vector<8x128xf32>, vector<128x128xf32>, vector<8x128xf32> -> vector<8x128xf32>
    %238 = arith.addf %235, %237 : vector<8x128xf32>
    %239 = arith.addf %238, %9 : vector<8x128xf32>
    %240 = arith.negf %239 : vector<8x128xf32>
    %241 = math.exp %240 : vector<8x128xf32>
    %cst_110 = arith.constant 1.000000e+00 : f32
    %242 = vector.broadcast %cst_110 : f32 to vector<8x128xf32>
    %243 = arith.addf %242, %241 : vector<8x128xf32>
    %244 = arith.divf %242, %243 : vector<8x128xf32>
    %c64_i32_111 = arith.constant 64 : i32
    %245 = tpu.dynamic_rotate %239 by %c64_i32_111 dim 1 : vector<8x128xf32>, i32 -> vector<8x128xf32>
    %246 = math.tanh %245 : vector<8x128xf32>
    %c96_i32_112 = arith.constant 96 : i32
    %247 = tpu.dynamic_rotate %244 by %c96_i32_112 dim 1 : vector<8x128xf32>, i32 -> vector<8x128xf32>
    %c32_i32_113 = arith.constant 32 : i32
    %248 = tpu.dynamic_rotate %244 by %c32_i32_113 dim 1 : vector<8x128xf32>, i32 -> vector<8x128xf32>
    %249 = arith.select %22, %247, %248 : vector<8x128xi1>, vector<8x128xf32>
    %250 = arith.select %22, %248, %247 : vector<8x128xi1>, vector<8x128xf32>
    %251 = arith.mulf %249, %189 : vector<8x128xf32>
    %252 = arith.mulf %244, %246 : vector<8x128xf32>
    %253 = arith.addf %251, %252 : vector<8x128xf32>
    %254 = math.tanh %253 : vector<8x128xf32>
    %255 = arith.mulf %250, %254 : vector<8x128xf32>
    %c0_114 = arith.constant 0 : index
    %c0_115 = arith.constant 0 : index
    %256 = vector.load %arg7[%c0_114, %c0_115] : memref<128x128xf32, #tpu.memory_space<vmem>>, vector<128x128xf32>
    %cst_116 = arith.constant dense<0.000000e+00> : vector<8x128xf32>
    %257 = tpu.matmul %191, %256, %cst_116 {dimension_numbers = #tpu.dot_dimension_numbers<[1], [0], [0], [1], [0, 0, 1, 1], [], []>} : vector<8x128xf32>, vector<128x128xf32>, vector<8x128xf32> -> vector<8x128xf32>
    %c0_117 = arith.constant 0 : index
    %c0_118 = arith.constant 0 : index
    %258 = vector.load %arg8[%c0_117, %c0_118] : memref<128x128xf32, #tpu.memory_space<vmem>>, vector<128x128xf32>
    %cst_119 = arith.constant dense<0.000000e+00> : vector<8x128xf32>
    %259 = tpu.matmul %213, %258, %cst_119 {dimension_numbers = #tpu.dot_dimension_numbers<[1], [0], [0], [1], [0, 0, 1, 1], [], []>} : vector<8x128xf32>, vector<128x128xf32>, vector<8x128xf32> -> vector<8x128xf32>
    %260 = arith.addf %257, %259 : vector<8x128xf32>
    %261 = arith.addf %260, %12 : vector<8x128xf32>
    %262 = arith.negf %261 : vector<8x128xf32>
    %263 = math.exp %262 : vector<8x128xf32>
    %cst_120 = arith.constant 1.000000e+00 : f32
    %264 = vector.broadcast %cst_120 : f32 to vector<8x128xf32>
    %265 = arith.addf %264, %263 : vector<8x128xf32>
    %266 = arith.divf %264, %265 : vector<8x128xf32>
    %c64_i32_121 = arith.constant 64 : i32
    %267 = tpu.dynamic_rotate %261 by %c64_i32_121 dim 1 : vector<8x128xf32>, i32 -> vector<8x128xf32>
    %268 = math.tanh %267 : vector<8x128xf32>
    %c96_i32_122 = arith.constant 96 : i32
    %269 = tpu.dynamic_rotate %266 by %c96_i32_122 dim 1 : vector<8x128xf32>, i32 -> vector<8x128xf32>
    %c32_i32_123 = arith.constant 32 : i32
    %270 = tpu.dynamic_rotate %266 by %c32_i32_123 dim 1 : vector<8x128xf32>, i32 -> vector<8x128xf32>
    %271 = arith.select %22, %269, %270 : vector<8x128xi1>, vector<8x128xf32>
    %272 = arith.select %22, %270, %269 : vector<8x128xi1>, vector<8x128xf32>
    %273 = arith.mulf %271, %211 : vector<8x128xf32>
    %274 = arith.mulf %266, %268 : vector<8x128xf32>
    %275 = arith.addf %273, %274 : vector<8x128xf32>
    %276 = math.tanh %275 : vector<8x128xf32>
    %277 = arith.mulf %272, %276 : vector<8x128xf32>
    %c40 = arith.constant 40 : index
    %c0_124 = arith.constant 0 : index
    %278 = vector.load %arg15[%c40, %c0_124] : memref<64x128xf32, #tpu.memory_space<vmem>>, vector<8x128xf32>
    %c0_125 = arith.constant 0 : index
    %c0_126 = arith.constant 0 : index
    %279 = vector.load %arg2[%c0_125, %c0_126] : memref<128x128xf32, #tpu.memory_space<vmem>>, vector<128x128xf32>
    %cst_127 = arith.constant dense<0.000000e+00> : vector<8x128xf32>
    %280 = tpu.matmul %233, %279, %cst_127 {dimension_numbers = #tpu.dot_dimension_numbers<[1], [0], [0], [1], [0, 0, 1, 1], [], []>} : vector<8x128xf32>, vector<128x128xf32>, vector<8x128xf32> -> vector<8x128xf32>
    %281 = arith.addf %278, %280 : vector<8x128xf32>
    %282 = arith.negf %281 : vector<8x128xf32>
    %283 = math.exp %282 : vector<8x128xf32>
    %cst_128 = arith.constant 1.000000e+00 : f32
    %284 = vector.broadcast %cst_128 : f32 to vector<8x128xf32>
    %285 = arith.addf %284, %283 : vector<8x128xf32>
    %286 = arith.divf %284, %285 : vector<8x128xf32>
    %c64_i32_129 = arith.constant 64 : i32
    %287 = tpu.dynamic_rotate %281 by %c64_i32_129 dim 1 : vector<8x128xf32>, i32 -> vector<8x128xf32>
    %288 = math.tanh %287 : vector<8x128xf32>
    %c96_i32_130 = arith.constant 96 : i32
    %289 = tpu.dynamic_rotate %286 by %c96_i32_130 dim 1 : vector<8x128xf32>, i32 -> vector<8x128xf32>
    %c32_i32_131 = arith.constant 32 : i32
    %290 = tpu.dynamic_rotate %286 by %c32_i32_131 dim 1 : vector<8x128xf32>, i32 -> vector<8x128xf32>
    %291 = arith.select %22, %289, %290 : vector<8x128xi1>, vector<8x128xf32>
    %292 = arith.select %22, %290, %289 : vector<8x128xi1>, vector<8x128xf32>
    %293 = arith.mulf %291, %231 : vector<8x128xf32>
    %294 = arith.mulf %286, %288 : vector<8x128xf32>
    %295 = arith.addf %293, %294 : vector<8x128xf32>
    %296 = math.tanh %295 : vector<8x128xf32>
    %297 = arith.mulf %292, %296 : vector<8x128xf32>
    %c0_132 = arith.constant 0 : index
    %c0_133 = arith.constant 0 : index
    %298 = vector.load %arg4[%c0_132, %c0_133] : memref<128x128xf32, #tpu.memory_space<vmem>>, vector<128x128xf32>
    %cst_134 = arith.constant dense<0.000000e+00> : vector<8x128xf32>
    %299 = tpu.matmul %233, %298, %cst_134 {dimension_numbers = #tpu.dot_dimension_numbers<[1], [0], [0], [1], [0, 0, 1, 1], [], []>} : vector<8x128xf32>, vector<128x128xf32>, vector<8x128xf32> -> vector<8x128xf32>
    %c0_135 = arith.constant 0 : index
    %c0_136 = arith.constant 0 : index
    %300 = vector.load %arg5[%c0_135, %c0_136] : memref<128x128xf32, #tpu.memory_space<vmem>>, vector<128x128xf32>
    %cst_137 = arith.constant dense<0.000000e+00> : vector<8x128xf32>
    %301 = tpu.matmul %255, %300, %cst_137 {dimension_numbers = #tpu.dot_dimension_numbers<[1], [0], [0], [1], [0, 0, 1, 1], [], []>} : vector<8x128xf32>, vector<128x128xf32>, vector<8x128xf32> -> vector<8x128xf32>
    %302 = arith.addf %299, %301 : vector<8x128xf32>
    %303 = arith.addf %302, %9 : vector<8x128xf32>
    %304 = arith.negf %303 : vector<8x128xf32>
    %305 = math.exp %304 : vector<8x128xf32>
    %cst_138 = arith.constant 1.000000e+00 : f32
    %306 = vector.broadcast %cst_138 : f32 to vector<8x128xf32>
    %307 = arith.addf %306, %305 : vector<8x128xf32>
    %308 = arith.divf %306, %307 : vector<8x128xf32>
    %c64_i32_139 = arith.constant 64 : i32
    %309 = tpu.dynamic_rotate %303 by %c64_i32_139 dim 1 : vector<8x128xf32>, i32 -> vector<8x128xf32>
    %310 = math.tanh %309 : vector<8x128xf32>
    %c96_i32_140 = arith.constant 96 : i32
    %311 = tpu.dynamic_rotate %308 by %c96_i32_140 dim 1 : vector<8x128xf32>, i32 -> vector<8x128xf32>
    %c32_i32_141 = arith.constant 32 : i32
    %312 = tpu.dynamic_rotate %308 by %c32_i32_141 dim 1 : vector<8x128xf32>, i32 -> vector<8x128xf32>
    %313 = arith.select %22, %311, %312 : vector<8x128xi1>, vector<8x128xf32>
    %314 = arith.select %22, %312, %311 : vector<8x128xi1>, vector<8x128xf32>
    %315 = arith.mulf %313, %253 : vector<8x128xf32>
    %316 = arith.mulf %308, %310 : vector<8x128xf32>
    %317 = arith.addf %315, %316 : vector<8x128xf32>
    %318 = math.tanh %317 : vector<8x128xf32>
    %319 = arith.mulf %314, %318 : vector<8x128xf32>
    %c0_142 = arith.constant 0 : index
    %c0_143 = arith.constant 0 : index
    %320 = vector.load %arg7[%c0_142, %c0_143] : memref<128x128xf32, #tpu.memory_space<vmem>>, vector<128x128xf32>
    %cst_144 = arith.constant dense<0.000000e+00> : vector<8x128xf32>
    %321 = tpu.matmul %255, %320, %cst_144 {dimension_numbers = #tpu.dot_dimension_numbers<[1], [0], [0], [1], [0, 0, 1, 1], [], []>} : vector<8x128xf32>, vector<128x128xf32>, vector<8x128xf32> -> vector<8x128xf32>
    %c0_145 = arith.constant 0 : index
    %c0_146 = arith.constant 0 : index
    %322 = vector.load %arg8[%c0_145, %c0_146] : memref<128x128xf32, #tpu.memory_space<vmem>>, vector<128x128xf32>
    %cst_147 = arith.constant dense<0.000000e+00> : vector<8x128xf32>
    %323 = tpu.matmul %277, %322, %cst_147 {dimension_numbers = #tpu.dot_dimension_numbers<[1], [0], [0], [1], [0, 0, 1, 1], [], []>} : vector<8x128xf32>, vector<128x128xf32>, vector<8x128xf32> -> vector<8x128xf32>
    %324 = arith.addf %321, %323 : vector<8x128xf32>
    %325 = arith.addf %324, %12 : vector<8x128xf32>
    %326 = arith.negf %325 : vector<8x128xf32>
    %327 = math.exp %326 : vector<8x128xf32>
    %cst_148 = arith.constant 1.000000e+00 : f32
    %328 = vector.broadcast %cst_148 : f32 to vector<8x128xf32>
    %329 = arith.addf %328, %327 : vector<8x128xf32>
    %330 = arith.divf %328, %329 : vector<8x128xf32>
    %c64_i32_149 = arith.constant 64 : i32
    %331 = tpu.dynamic_rotate %325 by %c64_i32_149 dim 1 : vector<8x128xf32>, i32 -> vector<8x128xf32>
    %332 = math.tanh %331 : vector<8x128xf32>
    %c96_i32_150 = arith.constant 96 : i32
    %333 = tpu.dynamic_rotate %330 by %c96_i32_150 dim 1 : vector<8x128xf32>, i32 -> vector<8x128xf32>
    %c32_i32_151 = arith.constant 32 : i32
    %334 = tpu.dynamic_rotate %330 by %c32_i32_151 dim 1 : vector<8x128xf32>, i32 -> vector<8x128xf32>
    %335 = arith.select %22, %333, %334 : vector<8x128xi1>, vector<8x128xf32>
    %336 = arith.select %22, %334, %333 : vector<8x128xi1>, vector<8x128xf32>
    %337 = arith.mulf %335, %275 : vector<8x128xf32>
    %338 = arith.mulf %330, %332 : vector<8x128xf32>
    %339 = arith.addf %337, %338 : vector<8x128xf32>
    %340 = math.tanh %339 : vector<8x128xf32>
    %341 = arith.mulf %336, %340 : vector<8x128xf32>
    %c48 = arith.constant 48 : index
    %c0_152 = arith.constant 0 : index
    %342 = vector.load %arg15[%c48, %c0_152] : memref<64x128xf32, #tpu.memory_space<vmem>>, vector<8x128xf32>
    %c0_153 = arith.constant 0 : index
    %c0_154 = arith.constant 0 : index
    %343 = vector.load %arg2[%c0_153, %c0_154] : memref<128x128xf32, #tpu.memory_space<vmem>>, vector<128x128xf32>
    %cst_155 = arith.constant dense<0.000000e+00> : vector<8x128xf32>
    %344 = tpu.matmul %297, %343, %cst_155 {dimension_numbers = #tpu.dot_dimension_numbers<[1], [0], [0], [1], [0, 0, 1, 1], [], []>} : vector<8x128xf32>, vector<128x128xf32>, vector<8x128xf32> -> vector<8x128xf32>
    %345 = arith.addf %342, %344 : vector<8x128xf32>
    %346 = arith.negf %345 : vector<8x128xf32>
    %347 = math.exp %346 : vector<8x128xf32>
    %cst_156 = arith.constant 1.000000e+00 : f32
    %348 = vector.broadcast %cst_156 : f32 to vector<8x128xf32>
    %349 = arith.addf %348, %347 : vector<8x128xf32>
    %350 = arith.divf %348, %349 : vector<8x128xf32>
    %c64_i32_157 = arith.constant 64 : i32
    %351 = tpu.dynamic_rotate %345 by %c64_i32_157 dim 1 : vector<8x128xf32>, i32 -> vector<8x128xf32>
    %352 = math.tanh %351 : vector<8x128xf32>
    %c96_i32_158 = arith.constant 96 : i32
    %353 = tpu.dynamic_rotate %350 by %c96_i32_158 dim 1 : vector<8x128xf32>, i32 -> vector<8x128xf32>
    %c32_i32_159 = arith.constant 32 : i32
    %354 = tpu.dynamic_rotate %350 by %c32_i32_159 dim 1 : vector<8x128xf32>, i32 -> vector<8x128xf32>
    %355 = arith.select %22, %353, %354 : vector<8x128xi1>, vector<8x128xf32>
    %356 = arith.select %22, %354, %353 : vector<8x128xi1>, vector<8x128xf32>
    %357 = arith.mulf %355, %295 : vector<8x128xf32>
    %358 = arith.mulf %350, %352 : vector<8x128xf32>
    %359 = arith.addf %357, %358 : vector<8x128xf32>
    %360 = math.tanh %359 : vector<8x128xf32>
    %361 = arith.mulf %356, %360 : vector<8x128xf32>
    %c0_160 = arith.constant 0 : index
    %c0_161 = arith.constant 0 : index
    %362 = vector.load %arg4[%c0_160, %c0_161] : memref<128x128xf32, #tpu.memory_space<vmem>>, vector<128x128xf32>
    %cst_162 = arith.constant dense<0.000000e+00> : vector<8x128xf32>
    %363 = tpu.matmul %297, %362, %cst_162 {dimension_numbers = #tpu.dot_dimension_numbers<[1], [0], [0], [1], [0, 0, 1, 1], [], []>} : vector<8x128xf32>, vector<128x128xf32>, vector<8x128xf32> -> vector<8x128xf32>
    %c0_163 = arith.constant 0 : index
    %c0_164 = arith.constant 0 : index
    %364 = vector.load %arg5[%c0_163, %c0_164] : memref<128x128xf32, #tpu.memory_space<vmem>>, vector<128x128xf32>
    %cst_165 = arith.constant dense<0.000000e+00> : vector<8x128xf32>
    %365 = tpu.matmul %319, %364, %cst_165 {dimension_numbers = #tpu.dot_dimension_numbers<[1], [0], [0], [1], [0, 0, 1, 1], [], []>} : vector<8x128xf32>, vector<128x128xf32>, vector<8x128xf32> -> vector<8x128xf32>
    %366 = arith.addf %363, %365 : vector<8x128xf32>
    %367 = arith.addf %366, %9 : vector<8x128xf32>
    %368 = arith.negf %367 : vector<8x128xf32>
    %369 = math.exp %368 : vector<8x128xf32>
    %cst_166 = arith.constant 1.000000e+00 : f32
    %370 = vector.broadcast %cst_166 : f32 to vector<8x128xf32>
    %371 = arith.addf %370, %369 : vector<8x128xf32>
    %372 = arith.divf %370, %371 : vector<8x128xf32>
    %c64_i32_167 = arith.constant 64 : i32
    %373 = tpu.dynamic_rotate %367 by %c64_i32_167 dim 1 : vector<8x128xf32>, i32 -> vector<8x128xf32>
    %374 = math.tanh %373 : vector<8x128xf32>
    %c96_i32_168 = arith.constant 96 : i32
    %375 = tpu.dynamic_rotate %372 by %c96_i32_168 dim 1 : vector<8x128xf32>, i32 -> vector<8x128xf32>
    %c32_i32_169 = arith.constant 32 : i32
    %376 = tpu.dynamic_rotate %372 by %c32_i32_169 dim 1 : vector<8x128xf32>, i32 -> vector<8x128xf32>
    %377 = arith.select %22, %375, %376 : vector<8x128xi1>, vector<8x128xf32>
    %378 = arith.select %22, %376, %375 : vector<8x128xi1>, vector<8x128xf32>
    %379 = arith.mulf %377, %317 : vector<8x128xf32>
    %380 = arith.mulf %372, %374 : vector<8x128xf32>
    %381 = arith.addf %379, %380 : vector<8x128xf32>
    %382 = math.tanh %381 : vector<8x128xf32>
    %383 = arith.mulf %378, %382 : vector<8x128xf32>
    %c0_170 = arith.constant 0 : index
    %c0_171 = arith.constant 0 : index
    %384 = vector.load %arg7[%c0_170, %c0_171] : memref<128x128xf32, #tpu.memory_space<vmem>>, vector<128x128xf32>
    %cst_172 = arith.constant dense<0.000000e+00> : vector<8x128xf32>
    %385 = tpu.matmul %319, %384, %cst_172 {dimension_numbers = #tpu.dot_dimension_numbers<[1], [0], [0], [1], [0, 0, 1, 1], [], []>} : vector<8x128xf32>, vector<128x128xf32>, vector<8x128xf32> -> vector<8x128xf32>
    %c0_173 = arith.constant 0 : index
    %c0_174 = arith.constant 0 : index
    %386 = vector.load %arg8[%c0_173, %c0_174] : memref<128x128xf32, #tpu.memory_space<vmem>>, vector<128x128xf32>
    %cst_175 = arith.constant dense<0.000000e+00> : vector<8x128xf32>
    %387 = tpu.matmul %341, %386, %cst_175 {dimension_numbers = #tpu.dot_dimension_numbers<[1], [0], [0], [1], [0, 0, 1, 1], [], []>} : vector<8x128xf32>, vector<128x128xf32>, vector<8x128xf32> -> vector<8x128xf32>
    %388 = arith.addf %385, %387 : vector<8x128xf32>
    %389 = arith.addf %388, %12 : vector<8x128xf32>
    %390 = arith.negf %389 : vector<8x128xf32>
    %391 = math.exp %390 : vector<8x128xf32>
    %cst_176 = arith.constant 1.000000e+00 : f32
    %392 = vector.broadcast %cst_176 : f32 to vector<8x128xf32>
    %393 = arith.addf %392, %391 : vector<8x128xf32>
    %394 = arith.divf %392, %393 : vector<8x128xf32>
    %c64_i32_177 = arith.constant 64 : i32
    %395 = tpu.dynamic_rotate %389 by %c64_i32_177 dim 1 : vector<8x128xf32>, i32 -> vector<8x128xf32>
    %396 = math.tanh %395 : vector<8x128xf32>
    %c96_i32_178 = arith.constant 96 : i32
    %397 = tpu.dynamic_rotate %394 by %c96_i32_178 dim 1 : vector<8x128xf32>, i32 -> vector<8x128xf32>
    %c32_i32_179 = arith.constant 32 : i32
    %398 = tpu.dynamic_rotate %394 by %c32_i32_179 dim 1 : vector<8x128xf32>, i32 -> vector<8x128xf32>
    %399 = arith.select %22, %397, %398 : vector<8x128xi1>, vector<8x128xf32>
    %400 = arith.select %22, %398, %397 : vector<8x128xi1>, vector<8x128xf32>
    %401 = arith.mulf %399, %339 : vector<8x128xf32>
    %402 = arith.mulf %394, %396 : vector<8x128xf32>
    %403 = arith.addf %401, %402 : vector<8x128xf32>
    %404 = math.tanh %403 : vector<8x128xf32>
    %405 = arith.mulf %400, %404 : vector<8x128xf32>
    %c56 = arith.constant 56 : index
    %c0_180 = arith.constant 0 : index
    %406 = vector.load %arg15[%c56, %c0_180] : memref<64x128xf32, #tpu.memory_space<vmem>>, vector<8x128xf32>
    %c0_181 = arith.constant 0 : index
    %c0_182 = arith.constant 0 : index
    %407 = vector.load %arg2[%c0_181, %c0_182] : memref<128x128xf32, #tpu.memory_space<vmem>>, vector<128x128xf32>
    %cst_183 = arith.constant dense<0.000000e+00> : vector<8x128xf32>
    %408 = tpu.matmul %361, %407, %cst_183 {dimension_numbers = #tpu.dot_dimension_numbers<[1], [0], [0], [1], [0, 0, 1, 1], [], []>} : vector<8x128xf32>, vector<128x128xf32>, vector<8x128xf32> -> vector<8x128xf32>
    %409 = arith.addf %406, %408 : vector<8x128xf32>
    %410 = arith.negf %409 : vector<8x128xf32>
    %411 = math.exp %410 : vector<8x128xf32>
    %cst_184 = arith.constant 1.000000e+00 : f32
    %412 = vector.broadcast %cst_184 : f32 to vector<8x128xf32>
    %413 = arith.addf %412, %411 : vector<8x128xf32>
    %414 = arith.divf %412, %413 : vector<8x128xf32>
    %c64_i32_185 = arith.constant 64 : i32
    %415 = tpu.dynamic_rotate %409 by %c64_i32_185 dim 1 : vector<8x128xf32>, i32 -> vector<8x128xf32>
    %416 = math.tanh %415 : vector<8x128xf32>
    %c96_i32_186 = arith.constant 96 : i32
    %417 = tpu.dynamic_rotate %414 by %c96_i32_186 dim 1 : vector<8x128xf32>, i32 -> vector<8x128xf32>
    %c32_i32_187 = arith.constant 32 : i32
    %418 = tpu.dynamic_rotate %414 by %c32_i32_187 dim 1 : vector<8x128xf32>, i32 -> vector<8x128xf32>
    %419 = arith.select %22, %417, %418 : vector<8x128xi1>, vector<8x128xf32>
    %420 = arith.select %22, %418, %417 : vector<8x128xi1>, vector<8x128xf32>
    %421 = arith.mulf %419, %359 : vector<8x128xf32>
    %422 = arith.mulf %414, %416 : vector<8x128xf32>
    %423 = arith.addf %421, %422 : vector<8x128xf32>
    %424 = math.tanh %423 : vector<8x128xf32>
    %425 = arith.mulf %420, %424 : vector<8x128xf32>
    %c0_188 = arith.constant 0 : index
    %c0_189 = arith.constant 0 : index
    %426 = vector.load %arg4[%c0_188, %c0_189] : memref<128x128xf32, #tpu.memory_space<vmem>>, vector<128x128xf32>
    %cst_190 = arith.constant dense<0.000000e+00> : vector<8x128xf32>
    %427 = tpu.matmul %361, %426, %cst_190 {dimension_numbers = #tpu.dot_dimension_numbers<[1], [0], [0], [1], [0, 0, 1, 1], [], []>} : vector<8x128xf32>, vector<128x128xf32>, vector<8x128xf32> -> vector<8x128xf32>
    %c0_191 = arith.constant 0 : index
    %c0_192 = arith.constant 0 : index
    %428 = vector.load %arg5[%c0_191, %c0_192] : memref<128x128xf32, #tpu.memory_space<vmem>>, vector<128x128xf32>
    %cst_193 = arith.constant dense<0.000000e+00> : vector<8x128xf32>
    %429 = tpu.matmul %383, %428, %cst_193 {dimension_numbers = #tpu.dot_dimension_numbers<[1], [0], [0], [1], [0, 0, 1, 1], [], []>} : vector<8x128xf32>, vector<128x128xf32>, vector<8x128xf32> -> vector<8x128xf32>
    %430 = arith.addf %427, %429 : vector<8x128xf32>
    %431 = arith.addf %430, %9 : vector<8x128xf32>
    %432 = arith.negf %431 : vector<8x128xf32>
    %433 = math.exp %432 : vector<8x128xf32>
    %cst_194 = arith.constant 1.000000e+00 : f32
    %434 = vector.broadcast %cst_194 : f32 to vector<8x128xf32>
    %435 = arith.addf %434, %433 : vector<8x128xf32>
    %436 = arith.divf %434, %435 : vector<8x128xf32>
    %c64_i32_195 = arith.constant 64 : i32
    %437 = tpu.dynamic_rotate %431 by %c64_i32_195 dim 1 : vector<8x128xf32>, i32 -> vector<8x128xf32>
    %438 = math.tanh %437 : vector<8x128xf32>
    %c96_i32_196 = arith.constant 96 : i32
    %439 = tpu.dynamic_rotate %436 by %c96_i32_196 dim 1 : vector<8x128xf32>, i32 -> vector<8x128xf32>
    %c32_i32_197 = arith.constant 32 : i32
    %440 = tpu.dynamic_rotate %436 by %c32_i32_197 dim 1 : vector<8x128xf32>, i32 -> vector<8x128xf32>
    %441 = arith.select %22, %439, %440 : vector<8x128xi1>, vector<8x128xf32>
    %442 = arith.select %22, %440, %439 : vector<8x128xi1>, vector<8x128xf32>
    %443 = arith.mulf %441, %381 : vector<8x128xf32>
    %444 = arith.mulf %436, %438 : vector<8x128xf32>
    %445 = arith.addf %443, %444 : vector<8x128xf32>
    %446 = math.tanh %445 : vector<8x128xf32>
    %447 = arith.mulf %442, %446 : vector<8x128xf32>
    %c0_198 = arith.constant 0 : index
    %c0_199 = arith.constant 0 : index
    %448 = vector.load %arg7[%c0_198, %c0_199] : memref<128x128xf32, #tpu.memory_space<vmem>>, vector<128x128xf32>
    %cst_200 = arith.constant dense<0.000000e+00> : vector<8x128xf32>
    %449 = tpu.matmul %383, %448, %cst_200 {dimension_numbers = #tpu.dot_dimension_numbers<[1], [0], [0], [1], [0, 0, 1, 1], [], []>} : vector<8x128xf32>, vector<128x128xf32>, vector<8x128xf32> -> vector<8x128xf32>
    %c0_201 = arith.constant 0 : index
    %c0_202 = arith.constant 0 : index
    %450 = vector.load %arg8[%c0_201, %c0_202] : memref<128x128xf32, #tpu.memory_space<vmem>>, vector<128x128xf32>
    %cst_203 = arith.constant dense<0.000000e+00> : vector<8x128xf32>
    %451 = tpu.matmul %405, %450, %cst_203 {dimension_numbers = #tpu.dot_dimension_numbers<[1], [0], [0], [1], [0, 0, 1, 1], [], []>} : vector<8x128xf32>, vector<128x128xf32>, vector<8x128xf32> -> vector<8x128xf32>
    %452 = arith.addf %449, %451 : vector<8x128xf32>
    %453 = arith.addf %452, %12 : vector<8x128xf32>
    %454 = arith.negf %453 : vector<8x128xf32>
    %455 = math.exp %454 : vector<8x128xf32>
    %cst_204 = arith.constant 1.000000e+00 : f32
    %456 = vector.broadcast %cst_204 : f32 to vector<8x128xf32>
    %457 = arith.addf %456, %455 : vector<8x128xf32>
    %458 = arith.divf %456, %457 : vector<8x128xf32>
    %c64_i32_205 = arith.constant 64 : i32
    %459 = tpu.dynamic_rotate %453 by %c64_i32_205 dim 1 : vector<8x128xf32>, i32 -> vector<8x128xf32>
    %460 = math.tanh %459 : vector<8x128xf32>
    %c96_i32_206 = arith.constant 96 : i32
    %461 = tpu.dynamic_rotate %458 by %c96_i32_206 dim 1 : vector<8x128xf32>, i32 -> vector<8x128xf32>
    %c32_i32_207 = arith.constant 32 : i32
    %462 = tpu.dynamic_rotate %458 by %c32_i32_207 dim 1 : vector<8x128xf32>, i32 -> vector<8x128xf32>
    %463 = arith.select %22, %461, %462 : vector<8x128xi1>, vector<8x128xf32>
    %464 = arith.select %22, %462, %461 : vector<8x128xi1>, vector<8x128xf32>
    %465 = arith.mulf %463, %403 : vector<8x128xf32>
    %466 = arith.mulf %458, %460 : vector<8x128xf32>
    %467 = arith.addf %465, %466 : vector<8x128xf32>
    %468 = math.tanh %467 : vector<8x128xf32>
    %469 = arith.mulf %464, %468 : vector<8x128xf32>
    %c0_208 = arith.constant 0 : index
    %c0_209 = arith.constant 0 : index
    %470 = vector.load %arg4[%c0_208, %c0_209] : memref<128x128xf32, #tpu.memory_space<vmem>>, vector<128x128xf32>
    %cst_210 = arith.constant dense<0.000000e+00> : vector<8x128xf32>
    %471 = tpu.matmul %425, %470, %cst_210 {dimension_numbers = #tpu.dot_dimension_numbers<[1], [0], [0], [1], [0, 0, 1, 1], [], []>} : vector<8x128xf32>, vector<128x128xf32>, vector<8x128xf32> -> vector<8x128xf32>
    %c0_211 = arith.constant 0 : index
    %c0_212 = arith.constant 0 : index
    %472 = vector.load %arg5[%c0_211, %c0_212] : memref<128x128xf32, #tpu.memory_space<vmem>>, vector<128x128xf32>
    %cst_213 = arith.constant dense<0.000000e+00> : vector<8x128xf32>
    %473 = tpu.matmul %447, %472, %cst_213 {dimension_numbers = #tpu.dot_dimension_numbers<[1], [0], [0], [1], [0, 0, 1, 1], [], []>} : vector<8x128xf32>, vector<128x128xf32>, vector<8x128xf32> -> vector<8x128xf32>
    %474 = arith.addf %471, %473 : vector<8x128xf32>
    %475 = arith.addf %474, %9 : vector<8x128xf32>
    %476 = arith.negf %475 : vector<8x128xf32>
    %477 = math.exp %476 : vector<8x128xf32>
    %cst_214 = arith.constant 1.000000e+00 : f32
    %478 = vector.broadcast %cst_214 : f32 to vector<8x128xf32>
    %479 = arith.addf %478, %477 : vector<8x128xf32>
    %480 = arith.divf %478, %479 : vector<8x128xf32>
    %c64_i32_215 = arith.constant 64 : i32
    %481 = tpu.dynamic_rotate %475 by %c64_i32_215 dim 1 : vector<8x128xf32>, i32 -> vector<8x128xf32>
    %482 = math.tanh %481 : vector<8x128xf32>
    %c96_i32_216 = arith.constant 96 : i32
    %483 = tpu.dynamic_rotate %480 by %c96_i32_216 dim 1 : vector<8x128xf32>, i32 -> vector<8x128xf32>
    %c32_i32_217 = arith.constant 32 : i32
    %484 = tpu.dynamic_rotate %480 by %c32_i32_217 dim 1 : vector<8x128xf32>, i32 -> vector<8x128xf32>
    %485 = arith.select %22, %483, %484 : vector<8x128xi1>, vector<8x128xf32>
    %486 = arith.select %22, %484, %483 : vector<8x128xi1>, vector<8x128xf32>
    %487 = arith.mulf %485, %445 : vector<8x128xf32>
    %488 = arith.mulf %480, %482 : vector<8x128xf32>
    %489 = arith.addf %487, %488 : vector<8x128xf32>
    %490 = math.tanh %489 : vector<8x128xf32>
    %491 = arith.mulf %486, %490 : vector<8x128xf32>
    %c0_218 = arith.constant 0 : index
    %c0_219 = arith.constant 0 : index
    %492 = vector.load %arg7[%c0_218, %c0_219] : memref<128x128xf32, #tpu.memory_space<vmem>>, vector<128x128xf32>
    %cst_220 = arith.constant dense<0.000000e+00> : vector<8x128xf32>
    %493 = tpu.matmul %447, %492, %cst_220 {dimension_numbers = #tpu.dot_dimension_numbers<[1], [0], [0], [1], [0, 0, 1, 1], [], []>} : vector<8x128xf32>, vector<128x128xf32>, vector<8x128xf32> -> vector<8x128xf32>
    %c0_221 = arith.constant 0 : index
    %c0_222 = arith.constant 0 : index
    %494 = vector.load %arg8[%c0_221, %c0_222] : memref<128x128xf32, #tpu.memory_space<vmem>>, vector<128x128xf32>
    %cst_223 = arith.constant dense<0.000000e+00> : vector<8x128xf32>
    %495 = tpu.matmul %469, %494, %cst_223 {dimension_numbers = #tpu.dot_dimension_numbers<[1], [0], [0], [1], [0, 0, 1, 1], [], []>} : vector<8x128xf32>, vector<128x128xf32>, vector<8x128xf32> -> vector<8x128xf32>
    %496 = arith.addf %493, %495 : vector<8x128xf32>
    %497 = arith.addf %496, %12 : vector<8x128xf32>
    %498 = arith.negf %497 : vector<8x128xf32>
    %499 = math.exp %498 : vector<8x128xf32>
    %cst_224 = arith.constant 1.000000e+00 : f32
    %500 = vector.broadcast %cst_224 : f32 to vector<8x128xf32>
    %501 = arith.addf %500, %499 : vector<8x128xf32>
    %502 = arith.divf %500, %501 : vector<8x128xf32>
    %c64_i32_225 = arith.constant 64 : i32
    %503 = tpu.dynamic_rotate %497 by %c64_i32_225 dim 1 : vector<8x128xf32>, i32 -> vector<8x128xf32>
    %504 = math.tanh %503 : vector<8x128xf32>
    %c96_i32_226 = arith.constant 96 : i32
    %505 = tpu.dynamic_rotate %502 by %c96_i32_226 dim 1 : vector<8x128xf32>, i32 -> vector<8x128xf32>
    %c32_i32_227 = arith.constant 32 : i32
    %506 = tpu.dynamic_rotate %502 by %c32_i32_227 dim 1 : vector<8x128xf32>, i32 -> vector<8x128xf32>
    %507 = arith.select %22, %505, %506 : vector<8x128xi1>, vector<8x128xf32>
    %508 = arith.select %22, %506, %505 : vector<8x128xi1>, vector<8x128xf32>
    %509 = arith.mulf %507, %467 : vector<8x128xf32>
    %510 = arith.mulf %502, %504 : vector<8x128xf32>
    %511 = arith.addf %509, %510 : vector<8x128xf32>
    %512 = math.tanh %511 : vector<8x128xf32>
    %513 = arith.mulf %508, %512 : vector<8x128xf32>
    %c0_228 = arith.constant 0 : index
    %c0_229 = arith.constant 0 : index
    %514 = vector.load %arg7[%c0_228, %c0_229] : memref<128x128xf32, #tpu.memory_space<vmem>>, vector<128x128xf32>
    %cst_230 = arith.constant dense<0.000000e+00> : vector<8x128xf32>
    %515 = tpu.matmul %491, %514, %cst_230 {dimension_numbers = #tpu.dot_dimension_numbers<[1], [0], [0], [1], [0, 0, 1, 1], [], []>} : vector<8x128xf32>, vector<128x128xf32>, vector<8x128xf32> -> vector<8x128xf32>
    %c0_231 = arith.constant 0 : index
    %c0_232 = arith.constant 0 : index
    %516 = vector.load %arg8[%c0_231, %c0_232] : memref<128x128xf32, #tpu.memory_space<vmem>>, vector<128x128xf32>
    %cst_233 = arith.constant dense<0.000000e+00> : vector<8x128xf32>
    %517 = tpu.matmul %513, %516, %cst_233 {dimension_numbers = #tpu.dot_dimension_numbers<[1], [0], [0], [1], [0, 0, 1, 1], [], []>} : vector<8x128xf32>, vector<128x128xf32>, vector<8x128xf32> -> vector<8x128xf32>
    %518 = arith.addf %515, %517 : vector<8x128xf32>
    %519 = arith.addf %518, %12 : vector<8x128xf32>
    %520 = arith.negf %519 : vector<8x128xf32>
    %521 = math.exp %520 : vector<8x128xf32>
    %cst_234 = arith.constant 1.000000e+00 : f32
    %522 = vector.broadcast %cst_234 : f32 to vector<8x128xf32>
    %523 = arith.addf %522, %521 : vector<8x128xf32>
    %524 = arith.divf %522, %523 : vector<8x128xf32>
    %c64_i32_235 = arith.constant 64 : i32
    %525 = tpu.dynamic_rotate %519 by %c64_i32_235 dim 1 : vector<8x128xf32>, i32 -> vector<8x128xf32>
    %526 = math.tanh %525 : vector<8x128xf32>
    %c96_i32_236 = arith.constant 96 : i32
    %527 = tpu.dynamic_rotate %524 by %c96_i32_236 dim 1 : vector<8x128xf32>, i32 -> vector<8x128xf32>
    %c32_i32_237 = arith.constant 32 : i32
    %528 = tpu.dynamic_rotate %524 by %c32_i32_237 dim 1 : vector<8x128xf32>, i32 -> vector<8x128xf32>
    %529 = arith.select %22, %527, %528 : vector<8x128xi1>, vector<8x128xf32>
    %530 = arith.select %22, %528, %527 : vector<8x128xi1>, vector<8x128xf32>
    %531 = arith.mulf %529, %511 : vector<8x128xf32>
    %532 = arith.mulf %524, %526 : vector<8x128xf32>
    %533 = arith.addf %531, %532 : vector<8x128xf32>
    %534 = math.tanh %533 : vector<8x128xf32>
    %535 = arith.mulf %530, %534 : vector<8x128xf32>
    %c0_238 = arith.constant 0 : index
    %c0_239 = arith.constant 0 : index
    %536 = vector.load %arg10[%c0_238, %c0_239] : memref<128x128xf32, #tpu.memory_space<vmem>>, vector<128x128xf32>
    %cst_240 = arith.constant dense<0.000000e+00> : vector<8x128xf32>
    %537 = tpu.matmul %535, %536, %cst_240 {dimension_numbers = #tpu.dot_dimension_numbers<[1], [0], [0], [1], [0, 0, 1, 1], [], []>} : vector<8x128xf32>, vector<128x128xf32>, vector<8x128xf32> -> vector<8x128xf32>
    %c0_241 = arith.constant 0 : index
    %c0_242 = arith.constant 0 : index
    %538 = vector.load %arg11[%c0_241, %c0_242] : memref<1x128xf32, #tpu.memory_space<vmem>>, vector<1x128xf32>
    %539 = vector.broadcast %538 : vector<1x128xf32> to vector<8x128xf32>
    %540 = arith.addf %537, %539 : vector<8x128xf32>
    %c0_243 = arith.constant 0 : index
    %c0_244 = arith.constant 0 : index
    %541 = vector.load %arg12[%c0_243, %c0_244] : memref<128x128xf32, #tpu.memory_space<vmem>>, vector<128x128xf32>
    %cst_245 = arith.constant dense<0.000000e+00> : vector<8x128xf32>
    %542 = tpu.matmul %540, %541, %cst_245 {dimension_numbers = #tpu.dot_dimension_numbers<[1], [0], [0], [1], [0, 0, 1, 1], [], []>} : vector<8x128xf32>, vector<128x128xf32>, vector<8x128xf32> -> vector<8x128xf32>
    %c0_246 = arith.constant 0 : index
    %c0_247 = arith.constant 0 : index
    %543 = vector.load %arg13[%c0_246, %c0_247] : memref<1x128xf32, #tpu.memory_space<vmem>>, vector<1x128xf32>
    %544 = vector.broadcast %543 : vector<1x128xf32> to vector<8x128xf32>
    %545 = arith.addf %542, %544 : vector<8x128xf32>
    %c0_248 = arith.constant 0 : index
    %c0_249 = arith.constant 0 : index
    %546 = vector.load %arg14[%c0_248, %c0_249] : memref<8x128xf32, #tpu.memory_space<vmem>>, vector<8x128xf32>
    tpu.vector_store %arg14[%c0_248, %c0_249], %545 {strides = array<i32>} : memref<8x128xf32, #tpu.memory_space<vmem>>, vector<8x128xf32>,
    return
  }
}

</mosaic_0001>

<bundles_post_ra>
// kernel: tpu_custom_call.1
= control target key start
LH: loop header
LB: loop body
LE: loop exit
PB: predicated region body
PF: predicated region fallthrough
CT: control target
= control target key end

     0   :  { %19 = vsyncpa [#allocation4], 0  ;;  %s9163_s0 = inlined_call_operand.vmem [shape: f32[64,24], index: 0, kind: input, shape index: {}]   ;;  %s9164_s1 = inlined_call_operand.vmem [shape: f32[24,128], index: 1, kind: input, shape index: {}]   ;;  %s9165_s2 = inlined_call_operand.hbm [shape: f32[128,128], index: 2, kind: input, shape index: {}]   ;;  %s9166_s3 = inlined_call_operand.vmem [shape: f32[1,128], index: 3, kind: input, shape index: {}]   ;;  %s9167_s4 = inlined_call_operand.hbm [shape: f32[128,128], index: 4, kind: input, shape index: {}]   ;;  %s9168_s5 = inlined_call_operand.hbm [shape: f32[128,128], index: 5, kind: input, shape index: {}]   ;;  %s9169_s6 = inlined_call_operand.vmem [shape: f32[1,128], index: 6, kind: input, shape index: {}]   ;;  %s9170_s7 = inlined_call_operand.hbm [shape: f32[128,128], index: 7, kind: input, shape index: {}]   ;;  %s9171_s8 = inlined_call_operand.hbm [shape: f32[128,128], index: 8, kind: input, shape index: {}]   ;;  %s9172_s9 = inlined_call_operand.vmem [shape: f32[1,128], index: 9, kind: input, shape index: {}]   ;;  %s9173_s10 = inlined_call_operand.hbm [shape: f32[128,128], index: 10, kind: input, shape index: {}]   ;;  %s9174_s11 = inlined_call_operand.vmem [shape: f32[1,128], index: 11, kind: input, shape index: {}]   ;;  %s9175_s12 = inlined_call_operand.hbm [shape: f32[128,128], index: 12, kind: input, shape index: {}]   ;;  %s9176_s13 = inlined_call_operand.vmem [shape: f32[1,128], index: 13, kind: input, shape index: {}]   ;;  %s9177_s14 = inlined_call_operand.hbm [shape: f32[8,128], index: 14, kind: output, shape index: {}]  }
   0x1   :  { %20 = vsyncpa [#allocation7], 0 }
   0x2   :  { %21 = vsyncpa [#allocation10], 0 }
   0x3   :  { %22 = vsyncpa [#allocation13], 0 }
   0x4   :  { %23 = vsyncpa [#allocation5], 0  ;;  %s6713_s29 = smov [#allocation6]   ;;  %s6714_s15 = smov [#allocation9]  }
   0x5   :  { %s47_s30 = sshll.u32 %s6713_s29, 4  ;;  %s73_s16 = sshll.u32 %s6714_s15, 4  ;;  %s48_s30 = int_to_ptr.vmem [resolvable:$true] %s47_s30  ;;  %s74_s16 = int_to_ptr.vmem [resolvable:$true] %s73_s16 }
   0x6   :  { %s6551_s17 = scalar_lea.vmem %s48_s30, 2048  ;;  %p6556_p1 = scmp.lt.s32.totalorder %s48_s30, %s48_s30 }
   0x7   :  { %p6552_p0 = scmp.ne.s32.totalorder %s48_s30, %s6551_s17  ;;  %p6557_p2 = scmp.lt.s32.totalorder %s6551_s17, %s6551_s17 }
   0x9   :  { %p6558_p3 = por %p6557_p2, %p6556_p1 }
   0xb   :  { %p6559_p4 = pnand %p6558_p3, %p6552_p0 }
   0xd   :  { %6562 = shalt.err (!%p6559_p4)
}
   0xe   :  { %s6715_s18 = smov 128   ;;  %s6716_s19 = smov 8  }
   0xf   :  { %53 = dma.hbm_to_vmem [thread:$0]  %s9167_s4, 2048, %s48_s30, [#allocation7], %s6715_s18, %s6715_s18, %s6716_s19  }
  0x10   :  { %s6571_s22 = scalar_lea.vmem %s74_s16, 2048  ;;  %p6576_p6 = scmp.lt.s32.totalorder %s74_s16, %s74_s16 }
  0x11   :  { %p6572_p5 = scmp.ne.s32.totalorder %s74_s16, %s6571_s22  ;;  %p6577_p7 = scmp.lt.s32.totalorder %s6571_s22, %s6571_s22 }
  0x13   :  { %p6578_p8 = por %p6577_p7, %p6576_p6 }
  0x15   :  { %p6579_p9 = pnand %p6578_p8, %p6572_p5 }
  0x17   :  { %6582 = shalt.err (!%p6579_p9)
}
  0x18   :  { %79 = dma.hbm_to_vmem [thread:$0]  %s9170_s7, 2048, %s74_s16, [#allocation10], %s6715_s18, %s6715_s18, %s6716_s19  }
  0x19   :  { %s6717_s25 = smov [#allocation12]   ;;  %s6718_s27 = smov [#allocation3]  }
  0x1a   :  { %s99_s26 = sshll.u32 %s6717_s25, 4  ;;  %s33_s28 = sshll.u32 %s6718_s27, 4  ;;  %s100_s26 = int_to_ptr.vmem [resolvable:$true] %s99_s26  ;;  %s34_s28 = int_to_ptr.vmem [resolvable:$true] %s33_s28 }
  0x1b   :  { %s6591_s4 = scalar_lea.vmem %s100_s26, 2048  ;;  %p6596_p11 = scmp.lt.s32.totalorder %s100_s26, %s100_s26 }
  0x1c   :  { %p6592_p10 = scmp.ne.s32.totalorder %s100_s26, %s6591_s4  ;;  %p6597_p12 = scmp.lt.s32.totalorder %s6591_s4, %s6591_s4 }
  0x1e   :  { %p6598_p13 = por %p6597_p12, %p6596_p11 }
  0x20   :  { %p6599_p0 = pnand %p6598_p13, %p6592_p10 }
  0x22   :  { %6602 = shalt.err (!%p6599_p0)
}
  0x23   :  { %105 = dma.hbm_to_vmem [thread:$0]  %s9173_s10, 2048, %s100_s26, [#allocation13], %s6715_s18, %s6715_s18, %s6716_s19  }
  0x24   :  { %s6611_s7 = scalar_lea.vmem %s34_s28, 2048  ;;  %p6616_p2 = scmp.lt.s32.totalorder %s34_s28, %s34_s28 }
  0x25   :  { %p6612_p1 = scmp.ne.s32.totalorder %s34_s28, %s6611_s7  ;;  %p6617_p3 = scmp.lt.s32.totalorder %s6611_s7, %s6611_s7 }
  0x27   :  { %p6618_p4 = por %p6617_p3, %p6616_p2 }
  0x29   :  { %p6619_p5 = pnand %p6618_p4, %p6612_p1 }
  0x2b   :  { %6622 = shalt.err (!%p6619_p5)
}
  0x2c   :  { %39 = dma.hbm_to_vmem [thread:$0]  %s9165_s2, 2048, %s34_s28, [#allocation4], %s6715_s18, %s6715_s18, %s6716_s19  }
  0x2d   :  { %s6719_s17 = smov [#allocation8]   ;;  %s6720_s21 = smov [#allocation11]  }
  0x2e   :  { %s59_s20 = sshll.u32 %s6719_s17, 4  ;;  %s85_s22 = sshll.u32 %s6720_s21, 4  ;;  %s60_s20 = int_to_ptr.vmem [resolvable:$true] %s59_s20  ;;  %s86_s22 = int_to_ptr.vmem [resolvable:$true] %s85_s22 }
  0x2f   :  { %s6631_s10 = scalar_lea.vmem %s60_s20, 2048  ;;  %p6636_p7 = scmp.lt.s32.totalorder %s60_s20, %s60_s20 }
  0x30   :  { %p6632_p6 = scmp.ne.s32.totalorder %s60_s20, %s6631_s10  ;;  %p6637_p8 = scmp.lt.s32.totalorder %s6631_s10, %s6631_s10 }
  0x32   :  { %p6638_p9 = por %p6637_p8, %p6636_p7 }
  0x34   :  { %p6639_p10 = pnand %p6638_p9, %p6632_p6 }
  0x36   :  { %6642 = shalt.err (!%p6639_p10)
}
  0x37   :  { %65 = dma.hbm_to_vmem [thread:$0]  %s9168_s5, 2048, %s60_s20, [#allocation7], %s6715_s18, %s6715_s18, %s6716_s19  }
  0x38   :  { %s6651_s2 = scalar_lea.vmem %s86_s22, 2048  ;;  %p6656_p12 = scmp.lt.s32.totalorder %s86_s22, %s86_s22 }
  0x39   :  { %p6652_p11 = scmp.ne.s32.totalorder %s86_s22, %s6651_s2  ;;  %p6657_p13 = scmp.lt.s32.totalorder %s6651_s2, %s6651_s2 }
  0x3b   :  { %p6658_p0 = por %p6657_p13, %p6656_p12 }
  0x3d   :  { %p6659_p1 = pnand %p6658_p0, %p6652_p11 }
  0x3f   :  { %6662 = shalt.err (!%p6659_p1)
}
  0x40   :  { %91 = dma.hbm_to_vmem [thread:$0]  %s9171_s8, 2048, %s86_s22, [#allocation10], %s6715_s18, %s6715_s18, %s6716_s19  }
  0x41   :  { %s6721_s27 = smov [#allocation14]  }
  0x42   :  { %s113_s28 = sshll.u32 %s6721_s27, 4  ;;  %s114_s28 = int_to_ptr.vmem [resolvable:$true] %s113_s28 }
  0x43   :  { %s6671_s4 = scalar_lea.vmem %s114_s28, 2048  ;;  %p6676_p3 = scmp.lt.s32.totalorder %s114_s28, %s114_s28 }
  0x44   :  { %p6672_p2 = scmp.ne.s32.totalorder %s114_s28, %s6671_s4  ;;  %p6677_p4 = scmp.lt.s32.totalorder %s6671_s4, %s6671_s4 }
  0x46   :  { %p6678_p5 = por %p6677_p4, %p6676_p3 }
  0x48   :  { %p6679_p6 = pnand %p6678_p5, %p6672_p2 }
  0x4a   :  { %6682 = shalt.err (!%p6679_p6)
}
  0x4b   :  { %119 = dma.hbm_to_vmem [thread:$0]  %s9175_s12, 2048, %s114_s28, [#allocation13], %s6715_s18, %s6715_s18, %s6716_s19  }
  0x4c   :  { %6703 = dma.done.wait [#allocation4], 2048  }
  0x4d   :  { %6704 = vsyncadd [#allocation4], 4294965248 }
  0x4e   :  { %6705 = dma.done.wait [#allocation7], 4096  }
  0x4f   :  { %6706 = vsyncadd [#allocation7], 4294963200 }
  0x50   :  { %6707 = dma.done.wait [#allocation10], 4096  }
  0x51   :  { %6708 = vsyncadd [#allocation10], 4294963200 }
  0x52   :  { %6709 = dma.done.wait [#allocation13], 4096  }
  0x53   :  { %6710 = vsyncadd [#allocation13], 4294963200  ;;  %v9178_v0 = vmov 0.0   ;;  %vm6723_vm0 = vmmov 0   ;;  %v6848_v1 = vld [vmem:[#allocation3 + $0x78] sm:$0xff]  ;;  %v6850_v2 = vld [vmem:[#allocation3 + $0x70] sm:$0xff]  ;;  %v313_v26 = vlaneseq }
  0x54   :  { %4700 = vmatprep.subr.mxu1 %v9178_v0  ;;  %4732 = vmatprep.mubr.msk.f32.mxu1 %vm6723_vm0, %v9178_v0  ;;  %v6854_v3 = vld [vmem:[#allocation3 + $0x68] sm:$0xff]  ;;  %v153_v4 = vld [vmem:[%s9164_s1 + $0x10] sm:$0xff]  ;;  %v6861_v5 = vld [vmem:[#allocation3 + $0x60] sm:$0xff]  ;;  %vm161_vm1 = vcmask 195584   ;;  %s6724_s22 = smov 64   ;;  %s6725_s10 = smov 32  }
  0x55   :  { %4701 = vmatpush3.msra.mxu1 %v6848_v1  ;;  %4682 = vmatprep.subr.mxu0 %v153_v4  ;;  %v152_v6 = vld [vmem:[%s9164_s1 + $0x8] sm:$0xff]  ;;  %v151_v7 = vld [vmem:[%s9164_s1] sm:$0xff]  ;;  %v6871_v8 = vld [vmem:[#allocation3 + $0x58] sm:$0xff]  ;;  %v6974_v31 = vand.u32 127, %v313_v26  ;;  %s6726_s26 = smov 96   ;;  %s6727_s27 = smov [#allocation15]  }
  0x56   :  { %4702 = vmatprep.subr.mxu1 %v9178_v0  ;;  %4683 = vmatpush3.msra.mxu0 %v153_v4  ;;  %v143_v9 = vld [vmem:[%s9163_s0] sm:$0xff]  ;;  %v6878_v10 = vld [vmem:[#allocation3 + $0x50] sm:$0xff]  ;;  %v144_v11 = vld [vmem:[%s9163_s0 + $0x8] sm:$0xff]  ;;  %s3907_s28 = sshll.u32 %s6727_s27, 4  ;;  %s3908_s28 = int_to_ptr.vmem [resolvable:$true] %s3907_s28 }
  0x57   :  { %4703 = vmatpush3.msra.mxu1 %v6850_v2  ;;  %4684 = vmatprep.subr.mxu0 %v152_v6  ;;  %v6885_v12 = vld [vmem:[#allocation3 + $0x48] sm:$0xff]  ;;  %v6891_v13 = vld [vmem:[#allocation3 + $0x40] sm:$0xff]  ;;  %v6897_v14 = vld [vmem:[#allocation3 + $0x38] sm:$0xff]  ;;  %v316_v58 = vadd.s32 96, %v6974_v31  ;;  %v3930_v59 = vadd.s32 4294967264, %v6974_v31  ;;  %vm315_vm2 = vcmp.lt.s32.totalorder %v6974_v31, 32  ;;  %p6688_p8 = scmp.lt.s32.totalorder %s3908_s28, %s3908_s28 }
  0x58   :  { %4704 = vmatprep.subr.mxu1 %v9178_v0  ;;  %4685 = vmatpush3.msra.mxu0 %v152_v6  ;;  %v6903_v15 = vld [vmem:[#allocation3 + $0x30] sm:$0xff]  ;;  %v6909_v16 = vld [vmem:[#allocation3 + $0x28] sm:$0xff]  ;;  %v6915_v17 = vld [vmem:[#allocation3 + $0x20] sm:$0xff]  ;;  %s6683_s4 = scalar_lea.vmem %s3908_s28, 128 }
  0x59   :  { %4705 = vmatpush3.msra.mxu1 %v6854_v3  ;;  %4686 = vmatprep.subr.mxu0 %v151_v7  ;;  %v6921_v18 = vld [vmem:[#allocation3 + $0x18] sm:$0xff]  ;;  %v6927_v19 = vld [vmem:[#allocation3 + $0x10] sm:$0xff]  ;;  %v6933_v20 = vld [vmem:[#allocation3 + $0x8] sm:$0xff]  ;;  %v318_v60 = vsel %vm315_vm2, %v316_v58, %v3930_v59  ;;  %p6684_p7 = scmp.ne.s32.totalorder %s3908_s28, %s6683_s4  ;;  %p6689_p9 = scmp.lt.s32.totalorder %s6683_s4, %s6683_s4 }
  0x5a   :  { %4706 = vmatprep.subr.mxu1 %v9178_v0  ;;  %4687 = vmatpush3.msra.mxu0 %v151_v7  ;;  %v6939_v21 = vld [vmem:[#allocation3] sm:$0xff]  ;;  %v145_v34 = vld [vmem:[%s9163_s0 + $0x10] sm:$0xff]  ;;  %v146_v35 = vld [vmem:[%s9163_s0 + $0x18] sm:$0xff] }
  0x5b   :  { %4707 = vmatpush3.msra.mxu1 %v6861_v5  ;;  %4688 = vmatprep.mubr.msk.f32.mxu0 %vm161_vm1, %v143_v9  ;;  %v6970_v23 = vld [vmem:[%s9166_s3] ss:$0 sm:$0xff]  ;;  %v148_v38 = vld [vmem:[%s9163_s0 + $0x28] sm:$0xff]  ;;  %v149_v39 = vld [vmem:[%s9163_s0 + $0x30] sm:$0xff]  ;;  %p6690_p10 = por %p6689_p9, %p6688_p8 }
  0x5c   :  { %4708 = vmatprep.subr.mxu1 %v9178_v0  ;;  %4689 = vmatmul.mubr.msk.f32.vlgmr.msra.gmra.mxu0 %vm161_vm1, %v144_v11  ;;  %v147_v37 = vld [vmem:[%s9163_s0 + $0x20] sm:$0xff]  ;;  %v150_v40 = vld [vmem:[%s9163_s0 + $0x38] sm:$0xff]  ;;  %v7014_v42 = vld [vmem:[#allocation8 + $0x70] sm:$0xff] }
  0x5d   :  { %4709 = vmatpush3.msra.mxu1 %v6871_v8  ;;  %4735 = vmatprep.subr.mxu0 %v9178_v0  ;;  %v7010_v41 = vld [vmem:[#allocation8 + $0x78] sm:$0xff]  ;;  %v7018_v43 = vld [vmem:[#allocation8 + $0x68] sm:$0xff]  ;;  %v7022_v44 = vld [vmem:[#allocation8 + $0x60] sm:$0xff]  ;;  %p6691_p11 = pnand %p6690_p10, %p6684_p7 }
  0x5e   :  { %4710 = vmatprep.subr.mxu1 %v9178_v0  ;;  %4736 = vmatpush3.msra.mxu0 %v6848_v1  ;;  %v7026_v45 = vld [vmem:[#allocation8 + $0x58] sm:$0xff]  ;;  %v7030_v46 = vld [vmem:[#allocation8 + $0x50] sm:$0xff]  ;;  %v7034_v47 = vld [vmem:[#allocation8 + $0x48] sm:$0xff] }
  0x5f   :  { %4711 = vmatpush3.msra.mxu1 %v6878_v10  ;;  %4737 = vmatprep.subr.mxu0 %v9178_v0  ;;  %v7038_v48 = vld [vmem:[#allocation8 + $0x40] sm:$0xff]  ;;  %v7042_v49 = vld [vmem:[#allocation8 + $0x38] sm:$0xff]  ;;  %v7046_v50 = vld [vmem:[#allocation8 + $0x30] sm:$0xff] }
  0x60   :  { %4712 = vmatprep.subr.mxu1 %v9178_v0  ;;  %4738 = vmatpush3.msra.mxu0 %v6850_v2  ;;  %v7050_v51 = vld [vmem:[#allocation8 + $0x28] sm:$0xff]  ;;  %v7054_v52 = vld [vmem:[#allocation8 + $0x20] sm:$0xff]  ;;  %v7058_v53 = vld [vmem:[#allocation8 + $0x18] sm:$0xff] }
  0x61   :  { %4713 = vmatpush3.msra.mxu1 %v6885_v12  ;;  %4739 = vmatprep.subr.mxu0 %v9178_v0  ;;  %v7062_v54 = vld [vmem:[#allocation8 + $0x10] sm:$0xff]  ;;  %v7066_v55 = vld [vmem:[#allocation8 + $0x8] sm:$0xff]  ;;  %v7070_v56 = vld [vmem:[#allocation8] sm:$0xff] }
  0x62   :  { %4714 = vmatprep.subr.mxu1 %v9178_v0  ;;  %4740 = vmatpush3.msra.mxu0 %v6854_v3  ;;  %v7124_v11 = vld [vmem:[#allocation6 + $0x78] sm:$0xff]  ;;  %v7136_v26 = vld [vmem:[#allocation6 + $0x60] sm:$0xff] }
  0x63   :  { %4715 = vmatpush3.msra.mxu1 %v6891_v13  ;;  %4741 = vmatprep.subr.mxu0 %v9178_v0  ;;  %v3956_v63 = vld [vmem:[%s9176_s13] ss:$0 sm:$0xff] }
  0x64   :  { %4716 = vmatprep.subr.mxu1 %v9178_v0  ;;  %4742 = vmatpush3.msra.mxu0 %v6861_v5 }
  0x65   :  { %4717 = vmatpush3.msra.mxu1 %v6897_v14  ;;  %4743 = vmatprep.subr.mxu0 %v9178_v0 }
  0x66   :  { %4718 = vmatprep.subr.mxu1 %v9178_v0  ;;  %4744 = vmatpush3.msra.mxu0 %v6871_v8 }
  0x67   :  { %4719 = vmatpush3.msra.mxu1 %v6903_v15  ;;  %4745 = vmatprep.subr.mxu0 %v9178_v0 }
  0x68   :  { %4720 = vmatprep.subr.mxu1 %v9178_v0  ;;  %4746 = vmatpush3.msra.mxu0 %v6878_v10 }
  0x69   :  { %4721 = vmatpush3.msra.mxu1 %v6909_v16  ;;  %4747 = vmatprep.subr.mxu0 %v9178_v0 }
  0x6a   :  { %4722 = vmatprep.subr.mxu1 %v9178_v0  ;;  %4748 = vmatpush3.msra.mxu0 %v6885_v12 }
  0x6b   :  { %4723 = vmatpush3.msra.mxu1 %v6915_v17  ;;  %4749 = vmatprep.subr.mxu0 %v9178_v0 }
  0x6c   :  { %4724 = vmatprep.subr.mxu1 %v9178_v0  ;;  %4750 = vmatpush3.msra.mxu0 %v6891_v13 }
  0x6d   :  { %4725 = vmatpush3.msra.mxu1 %v6921_v18  ;;  %4751 = vmatprep.subr.mxu0 %v9178_v0 }
  0x6e   :  { %4726 = vmatprep.subr.mxu1 %v9178_v0  ;;  %4752 = vmatpush3.msra.mxu0 %v6897_v14 }
  0x6f   :  { %4727 = vmatpush3.msra.mxu1 %v6927_v19  ;;  %4753 = vmatprep.subr.mxu0 %v9178_v0 }
  0x70   :  { %4728 = vmatprep.subr.mxu1 %v9178_v0  ;;  %4754 = vmatpush3.msra.mxu0 %v6903_v15 }
  0x71   :  { %4729 = vmatpush3.msra.mxu1 %v6933_v20  ;;  %4755 = vmatprep.subr.mxu0 %v9178_v0 }
  0x72   :  { %4730 = vmatprep.subr.mxu1 %v9178_v0  ;;  %4756 = vmatpush3.msra.mxu0 %v6909_v16 }
  0x73   :  { %4731 = vmatpush3.msra.mxu1 %v6939_v21  ;;  %4757 = vmatprep.subr.mxu0 %v9178_v0 }
  0x74   :  { %4733 = vmatmul.mubr.f32.vlgmr.msra.gmra.mxu1 %v9178_v0  ;;  %4770 = vmatprep.subr.mxu1 %v9178_v0 }
  0x75   :  { %4802 = vmatprep.mubr.msk.f32.mxu1 %vm6723_vm0, %v9178_v0  ;;  %4758 = vmatpush3.msra.mxu0 %v6915_v17 }
  0x76   :  { %4759 = vmatprep.subr.mxu0 %v9178_v0  ;;  %4691 = vmatprep.mubr.msk.f32.mxu0 %vm161_vm1, %v145_v34  ;;  %v7168_v34 = vld [vmem:[#allocation6 + $0x20] sm:$0xff] }
  0x77   :  { %4760 = vmatpush3.msra.mxu0 %v6921_v18  ;;  %4771 = vmatpush3.msra.mxu1 %v7010_v41 }
  0x78   :  { %4761 = vmatprep.subr.mxu0 %v9178_v0  ;;  %4692 = vmatmul.mubr.msk.f32.gmra.mxu0 %vm161_vm1, %v146_v35  ;;  %v7172_v35 = vld [vmem:[#allocation6 + $0x18] sm:$0xff] }
  0x79   :  { %4762 = vmatpush3.msra.mxu0 %v6927_v19  ;;  %4694 = vmatprep.mubr.msk.f32.mxu0 %vm161_vm1, %v147_v37  ;;  %v7180_v37 = vld [vmem:[#allocation6 + $0x8] sm:$0xff] }
  0x7a   :  { %4763 = vmatprep.subr.mxu0 %v9178_v0  ;;  %4772 = vmatprep.subr.mxu1 %v9178_v0 }
  0x7b   :  { %4764 = vmatpush3.msra.mxu0 %v6933_v20  ;;  %4773 = vmatpush3.msra.mxu1 %v7014_v42 }
  0x7c   :  { %4765 = vmatprep.subr.mxu0 %v9178_v0  ;;  %4695 = vmatmul.mubr.msk.f32.gmra.mxu0 %vm161_vm1, %v148_v38  ;;  %v7184_v38 = vld [vmem:[#allocation6] sm:$0xff] }
  0x7d   :  { %4766 = vmatpush3.msra.mxu0 %v6939_v21  ;;  %4697 = vmatprep.mubr.msk.f32.mxu0 %vm161_vm1, %v149_v39 }
  0x7e   :  { %4805 = vmatprep.subr.mxu0 %v9178_v0  ;;  %4774 = vmatprep.subr.mxu1 %v9178_v0 }
  0x7f   :  { %4775 = vmatpush3.msra.mxu1 %v7018_v43 }
  0x80   :  { %4698 = vmatmul.mubr.msk.f32.gmra.mxu0 %vm161_vm1, %v150_v40  ;;  %4776 = vmatprep.subr.mxu1 %v9178_v0 }
  0x81   :  { %4767 = vmatprep.mubr.msk.f32.mxu0 %vm6723_vm0, %v9178_v0  ;;  %4777 = vmatpush3.msra.mxu1 %v7022_v44 }
  0x82   :  { %4778 = vmatprep.subr.mxu1 %v9178_v0 }
  0x83   :  { %4779 = vmatpush3.msra.mxu1 %v7026_v45 }
  0x84   :  { %4780 = vmatprep.subr.mxu1 %v9178_v0 }
  0x85   :  { %4781 = vmatpush3.msra.mxu1 %v7030_v46 }
  0x86   :  { %4782 = vmatprep.subr.mxu1 %v9178_v0 }
  0x87   :  { %4783 = vmatpush3.msra.mxu1 %v7034_v47 }
  0x88   :  { %4784 = vmatprep.subr.mxu1 %v9178_v0 }
  0x89   :  { %4785 = vmatpush3.msra.mxu1 %v7038_v48 }
  0x8a   :  { %4786 = vmatprep.subr.mxu1 %v9178_v0 }
  0x8b   :  { %4787 = vmatpush3.msra.mxu1 %v7042_v49 }
  0x8c   :  { %4788 = vmatprep.subr.mxu1 %v9178_v0 }
  0x8d   :  { %4789 = vmatpush3.msra.mxu1 %v7046_v50 }
  0x8e   :  { %4790 = vmatprep.subr.mxu1 %v9178_v0 }
  0x8f   :  { %4791 = vmatpush3.msra.mxu1 %v7050_v51 }
  0x90   :  { %4792 = vmatprep.subr.mxu1 %v9178_v0 }
  0x91   :  { %4793 = vmatpush3.msra.mxu1 %v7054_v52 }
  0x92   :  { %4794 = vmatprep.subr.mxu1 %v9178_v0 }
  0x93   :  { %4795 = vmatpush3.msra.mxu1 %v7058_v53 }
  0x94   :  { %4796 = vmatprep.subr.mxu1 %v9178_v0 }
  0x95   :  { %4797 = vmatpush3.msra.mxu1 %v7062_v54 }
  0x96   :  { %4798 = vmatprep.subr.mxu1 %v9178_v0 }
  0x97   :  { %4799 = vmatpush3.msra.mxu1 %v7066_v55 }
  0x98   :  { %4800 = vmatprep.subr.mxu1 %v9178_v0 }
  0x99   :  { %4801 = vmatpush3.msra.mxu1 %v7070_v56 }
  0x9a   :  { %4803 = vmatmul.mubr.f32.vlgmr.msra.gmra.mxu1 %v9178_v0  ;;  %4840 = vmatprep.subr.mxu1 %v9178_v0 }
  0x9b   :  { %4841 = vmatpush3.msra.mxu1 %v6848_v1  ;;  %4872 = vmatprep.mubr.msk.f32.mxu1 %vm6723_vm0, %v9178_v0 }
  0x9c   :  { %4842 = vmatprep.subr.mxu1 %v9178_v0 }
  0x9d   :  { %4843 = vmatpush3.msra.mxu1 %v6850_v2 }
  0x9e   :  { %4844 = vmatprep.subr.mxu1 %v9178_v0 }
  0x9f   :  { %4845 = vmatpush3.msra.mxu1 %v6854_v3 }
  0xa0   :  { %4846 = vmatprep.subr.mxu1 %v9178_v0 }
  0xa1   :  { %4847 = vmatpush3.msra.mxu1 %v6861_v5 }
  0xa2   :  { %4848 = vmatprep.subr.mxu1 %v9178_v0 }
  0xa3   :  { %4849 = vmatpush3.msra.mxu1 %v6871_v8 }
  0xa4   :  { %4850 = vmatprep.subr.mxu1 %v9178_v0 }
  0xa5   :  { %4851 = vmatpush3.msra.mxu1 %v6878_v10 }
  0xa6   :  { %4852 = vmatprep.subr.mxu1 %v9178_v0 }
  0xa7   :  { %4853 = vmatpush3.msra.mxu1 %v6885_v12 }
  0xa8   :  { %4854 = vmatprep.subr.mxu1 %v9178_v0 }
  0xa9   :  { %4855 = vmatpush3.msra.mxu1 %v6891_v13 }
  0xaa   :  { %4856 = vmatprep.subr.mxu1 %v9178_v0 }
  0xab   :  { %4857 = vmatpush3.msra.mxu1 %v6897_v14 }
  0xac   :  { %4858 = vmatprep.subr.mxu1 %v9178_v0 }
  0xad   :  { %4859 = vmatpush3.msra.mxu1 %v6903_v15 }
  0xae   :  { %4860 = vmatprep.subr.mxu1 %v9178_v0 }
  0xaf   :  { %4861 = vmatpush3.msra.mxu1 %v6909_v16 }
  0xb0   :  { %4862 = vmatprep.subr.mxu1 %v9178_v0 }
  0xb1   :  { %4863 = vmatpush3.msra.mxu1 %v6915_v17 }
  0xb2   :  { %4864 = vmatprep.subr.mxu1 %v9178_v0 }
  0xb3   :  { %4865 = vmatpush3.msra.mxu1 %v6921_v18 }
  0xb4   :  { %4866 = vmatprep.subr.mxu1 %v9178_v0 }
  0xb5   :  { %4867 = vmatpush3.msra.mxu1 %v6927_v19 }
  0xb6   :  { %4868 = vmatprep.subr.mxu1 %v9178_v0 }
  0xb7   :  { %4869 = vmatpush3.msra.mxu1 %v6933_v20 }
  0xb8   :  { %4870 = vmatprep.subr.mxu1 %v9178_v0 }
  0xb9   :  { %4871 = vmatpush3.msra.mxu1 %v6939_v21 }
  0xba   :  { %4910 = vmatprep.subr.mxu1 %v9178_v0 }
 0x11c   :  { %v6965_v22 = vpop.f32.mrf.mxu0 }
 0x11e   :  { %v252_v24 = vpop.f32.mrf.mxu0 }
 0x11f   :  { %v253_v25 = vadd.f32 %v6970_v23, %v252_v24  ;;  %v7126_v24 = vld [vmem:[#allocation6 + $0x70] sm:$0xff] }
 0x134   :  { %v405_v27 = vpop.f32.mrf.mxu1 }
 0x135   :  { %v409_v28 = vadd.f32 %v405_v27, %v253_v25  ;;  %v7132_v25 = vld [vmem:[#allocation6 + $0x68] sm:$0xff]  ;;  %v7140_v27 = vld [vmem:[#allocation6 + $0x58] sm:$0xff] }
 0x136   :  { %v4734_v29 = vpop.f32.mrf.mxu1 }
 0x137   :  { %v3931_v30 = vmul.f32 -1.442695, %v409_v28  ;;  %416 = vrot.lane.b32.xlu0 %v409_v28, %s6724_s22  ;;  %v7144_v28 = vld [vmem:[#allocation6 + $0x50] sm:$0xff]  ;;  %v7148_v29 = vld [vmem:[#allocation6 + $0x48] sm:$0xff] }
 0x139   :  { %6185 = vpow2.f32 %v3931_v30  ;;  %v7152_v30 = vld [vmem:[#allocation6 + $0x40] sm:$0xff] }
 0x13b   :  { %319 = vrot.lane.b32.xlu0 %v6974_v31, %s6725_s10  ;;  %v7156_v31 = vld [vmem:[#allocation6 + $0x38] sm:$0xff] }
 0x146   :  { %v6186_v32 = vpop.eup %6185 }
 0x147   :  { %v413_v33 = vadd.f32 1.0, %v6186_v32  ;;  %v7160_v32 = vld [vmem:[#allocation6 + $0x30] sm:$0xff] }
 0x149   :  { %6187 = vrcp.f32 %v413_v33  ;;  %v7164_v33 = vld [vmem:[#allocation6 + $0x28] sm:$0xff] }
 0x156   :  { %v6986_v36 = vpop.eup %6187 }
 0x157   :  { %419 = vrot.lane.b32.xlu1 %v6986_v36, %s6726_s26 }
 0x15a   :  { %v620_v39 = vpop.f32.mrf.mxu1 }
 0x15b   :  { %421 = vrot.lane.b32.xlu1 %v6986_v36, %s6725_s10 }
 0x15c   :  { %v4804_v40 = vpop.f32.mrf.mxu1 }
 0x1a9   :  { %v417_v57 = vpop.permute.xlu0 %416 }
 0x1aa   :  { %6189 = vtanh.f32 %v417_v57  ;;  %v7224_v57 = vpop.f32.mrf.mxu0 }
 0x1ab   :  { %9282 = vst [vmem:[#allocation21_spill] sm:$0xff] %v7224_v57  ;;  %v7346_v57 = vld [vmem:[#allocation9 + $0x48] sm:$0xff] }
 0x1ac   :  { %v7226_v58 = vpop.f32.mrf.mxu0  ;;  %9294 = vst [vmem:[#allocation32_spill] sm:$0xff] %v7346_v57 }
 0x1ad   :  { %v320_v61 = vpop.permute.xlu0 %319 }
 0x1ae   :  { %vm7112_vm3 = vcmp.eq.s32.totalorder %v320_v61, %v318_v60  ;;  %v7228_v59 = vpop.f32.mrf.mxu0 }
 0x1af   :  { %9283 = vst [vmem:[#allocation22_spill] sm:$0xff] %v7228_v59 }
 0x1b0   :  { %v7230_v60 = vpop.f32.mrf.mxu0 }
 0x1b1   :  { %9284 = vst [vmem:[#allocation23_spill] sm:$0xff] %v7230_v60  ;;  %v7344_v60 = vld [vmem:[#allocation11 + $0x50] sm:$0xff] }
 0x1b2   :  { %v7232_v61 = vpop.f32.mrf.mxu0  ;;  %9293 = vst [vmem:[#allocation31_spill] sm:$0xff] %v7344_v60 }
 0x1b3   :  { %9285 = vst [vmem:[#allocation24_spill] sm:$0xff] %v7232_v61 }
 0x1b7   :  { %v6190_v1 = vpop.eup %6189 }
 0x1b8   :  { %v426_v5 = vmul.f32 %v6190_v1, %v6986_v36  ;;  %v7176_v36 = vld [vmem:[#allocation6 + $0x10] sm:$0xff]  ;;  %v258_v1 = vadd.f32 %v6965_v22, %v6970_v23 }
 0x1c9   :  { %v420_v62 = vpop.permute.xlu1 %419 }
 0x1cd   :  { %v422_v2 = vpop.permute.xlu1 %421 }
 0x1ce   :  { %v423_v3 = vsel %vm7112_vm3, %v420_v62, %v422_v2  ;;  %v424_v8 = vsel %vm7112_vm3, %v422_v2, %v420_v62  ;;  %v7234_v62 = vpop.f32.mrf.mxu0 }
 0x1cf   :  { %v425_v4 = vmul.f32 0.0, %v423_v3  ;;  %9286 = vst [vmem:[#allocation25_spill] sm:$0xff] %v7234_v62 }
 0x1d1   :  { %v7119_v6 = vadd.f32 %v426_v5, %v425_v4 }
 0x1d3   :  { %6191 = vtanh.f32 %v7119_v6 }
 0x1e0   :  { %v6192_v7 = vpop.eup %6191 }
 0x1e1   :  { %v429_v9 = vmul.f32 %v6192_v7, %v424_v8 }
 0x1e3   :  { %4768 = vmatmul.mubr.f32.vlgmr.msra.gmra.mxu0 %v429_v9 }
 0x1e4   :  { %4806 = vmatpush3.msra.mxu0 %v7124_v11  ;;  %4837 = vmatprep.mubr.msk.f32.mxu0 %vm6723_vm0, %v9178_v0 }
 0x1e5   :  { %4807 = vmatprep.subr.mxu0 %v9178_v0 }
 0x1e6   :  { %4808 = vmatpush3.msra.mxu0 %v7126_v24 }
 0x1e7   :  { %4809 = vmatprep.subr.mxu0 %v9178_v0 }
 0x1e8   :  { %4810 = vmatpush3.msra.mxu0 %v7132_v25 }
 0x1e9   :  { %4811 = vmatprep.subr.mxu0 %v9178_v0 }
 0x1ea   :  { %4812 = vmatpush3.msra.mxu0 %v7136_v26 }
 0x1eb   :  { %4813 = vmatprep.subr.mxu0 %v9178_v0 }
 0x1ec   :  { %4814 = vmatpush3.msra.mxu0 %v7140_v27 }
 0x1ed   :  { %4815 = vmatprep.subr.mxu0 %v9178_v0 }
 0x1ee   :  { %4816 = vmatpush3.msra.mxu0 %v7144_v28 }
 0x1ef   :  { %4817 = vmatprep.subr.mxu0 %v9178_v0 }
 0x1f0   :  { %4818 = vmatpush3.msra.mxu0 %v7148_v29 }
 0x1f1   :  { %4819 = vmatprep.subr.mxu0 %v9178_v0 }
 0x1f2   :  { %4820 = vmatpush3.msra.mxu0 %v7152_v30 }
 0x1f3   :  { %4821 = vmatprep.subr.mxu0 %v9178_v0 }
 0x1f4   :  { %4822 = vmatpush3.msra.mxu0 %v7156_v31 }
 0x1f5   :  { %4823 = vmatprep.subr.mxu0 %v9178_v0 }
 0x1f6   :  { %4824 = vmatpush3.msra.mxu0 %v7160_v32 }
 0x1f7   :  { %4825 = vmatprep.subr.mxu0 %v9178_v0 }
 0x1f8   :  { %4826 = vmatpush3.msra.mxu0 %v7164_v33 }
 0x1f9   :  { %4827 = vmatprep.subr.mxu0 %v9178_v0 }
 0x1fa   :  { %4828 = vmatpush3.msra.mxu0 %v7168_v34 }
 0x1fb   :  { %4829 = vmatprep.subr.mxu0 %v9178_v0 }
 0x1fc   :  { %4830 = vmatpush3.msra.mxu0 %v7172_v35 }
 0x1fd   :  { %4831 = vmatprep.subr.mxu0 %v9178_v0 }
 0x1fe   :  { %4832 = vmatpush3.msra.mxu0 %v7176_v36 }
 0x1ff   :  { %4833 = vmatprep.subr.mxu0 %v9178_v0 }
 0x200   :  { %4834 = vmatpush3.msra.mxu0 %v7180_v37 }
 0x201   :  { %4835 = vmatprep.subr.mxu0 %v9178_v0 }
 0x202   :  { %4836 = vmatpush3.msra.mxu0 %v7184_v38 }
 0x203   :  { %4838 = vmatmul.mubr.f32.vlgmr.msra.gmra.mxu0 %v429_v9  ;;  %4875 = vmatprep.subr.mxu0 %v9178_v0  ;;  %v7242_v9 = vld [vmem:[%s9169_s6] ss:$0 sm:$0xff] }
 0x204   :  { %4876 = vmatpush3.msra.mxu0 %v7010_v41  ;;  %4907 = vmatprep.mubr.msk.f32.mxu0 %vm6723_vm0, %v9178_v0 }
 0x205   :  { %4877 = vmatprep.subr.mxu0 %v9178_v0 }
 0x206   :  { %4878 = vmatpush3.msra.mxu0 %v7014_v42 }
 0x207   :  { %4879 = vmatprep.subr.mxu0 %v9178_v0 }
 0x208   :  { %4880 = vmatpush3.msra.mxu0 %v7018_v43 }
 0x209   :  { %4881 = vmatprep.subr.mxu0 %v9178_v0 }
 0x20a   :  { %4882 = vmatpush3.msra.mxu0 %v7022_v44 }
 0x20b   :  { %4883 = vmatprep.subr.mxu0 %v9178_v0 }
 0x20c   :  { %4884 = vmatpush3.msra.mxu0 %v7026_v45 }
 0x20d   :  { %4885 = vmatprep.subr.mxu0 %v9178_v0 }
 0x20e   :  { %4886 = vmatpush3.msra.mxu0 %v7030_v46 }
 0x20f   :  { %4887 = vmatprep.subr.mxu0 %v9178_v0 }
 0x210   :  { %4888 = vmatpush3.msra.mxu0 %v7034_v47 }
 0x211   :  { %4889 = vmatprep.subr.mxu0 %v9178_v0 }
 0x212   :  { %4890 = vmatpush3.msra.mxu0 %v7038_v48 }
 0x213   :  { %4891 = vmatprep.subr.mxu0 %v9178_v0 }
 0x214   :  { %4892 = vmatpush3.msra.mxu0 %v7042_v49 }
 0x215   :  { %4893 = vmatprep.subr.mxu0 %v9178_v0 }
 0x216   :  { %4894 = vmatpush3.msra.mxu0 %v7046_v50 }
 0x217   :  { %4895 = vmatprep.subr.mxu0 %v9178_v0 }
 0x218   :  { %4896 = vmatpush3.msra.mxu0 %v7050_v51 }
 0x219   :  { %4897 = vmatprep.subr.mxu0 %v9178_v0 }
 0x21a   :  { %4898 = vmatpush3.msra.mxu0 %v7054_v52 }
 0x21b   :  { %4899 = vmatprep.subr.mxu0 %v9178_v0 }
 0x21c   :  { %4900 = vmatpush3.msra.mxu0 %v7058_v53 }
 0x21d   :  { %4901 = vmatprep.subr.mxu0 %v9178_v0 }
 0x21e   :  { %4902 = vmatpush3.msra.mxu0 %v7062_v54 }
 0x21f   :  { %4903 = vmatprep.subr.mxu0 %v9178_v0 }
 0x220   :  { %4904 = vmatpush3.msra.mxu0 %v7066_v55 }
 0x221   :  { %4905 = vmatprep.subr.mxu0 %v9178_v0 }
 0x222   :  { %4906 = vmatpush3.msra.mxu0 %v7070_v56 }
 0x223   :  { %4945 = vmatprep.subr.mxu0 %v9178_v0 }
 0x2a3   :  { %v497_v2 = vpop.f32.mrf.mxu0 }
 0x2a4   :  { %v501_v3 = vadd.f32 %v497_v2, %v258_v1 }
 0x2a5   :  { %v4769_v4 = vpop.f32.mrf.mxu0 }
 0x2a6   :  { %v3932_v5 = vmul.f32 -1.442695, %v501_v3  ;;  %508 = vrot.lane.b32.xlu0 %v501_v3, %s6724_s22 }
 0x2a8   :  { %6193 = vpow2.f32 %v3932_v5 }
 0x2b5   :  { %v6194_v7 = vpop.eup %6193 }
 0x2b6   :  { %v505_v8 = vadd.f32 1.0, %v6194_v7 }
 0x2b8   :  { %6195 = vrcp.f32 %v505_v8 }
 0x2c3   :  { %v690_v40 = vpop.f32.mrf.mxu0 }
 0x2c4   :  { %v691_v0 = vadd.f32 %v690_v40, %v620_v39 }
 0x2c5   :  { %v6196_v61 = vpop.eup %6195  ;;  %v4839_v62 = vpop.f32.mrf.mxu0 }
 0x2c6   :  { %v694_v22 = vadd.f32 %v7242_v9, %v691_v0  ;;  %513 = vrot.lane.b32.xlu0 %v6196_v61, %s6725_s10  ;;  %511 = vrot.lane.b32.xlu1 %v6196_v61, %s6726_s26 }
 0x2c8   :  { %v3933_v1 = vmul.f32 -1.442695, %v694_v22 }
 0x2ca   :  { %6197 = vpow2.f32 %v3933_v1  ;;  %701 = vrot.lane.b32.xlu1 %v694_v22, %s6724_s22 }
 0x2d7   :  { %v6198_v2 = vpop.eup %6197 }
 0x2d8   :  { %v698_v3 = vadd.f32 1.0, %v6198_v2 }
 0x2da   :  { %6199 = vrcp.f32 %v698_v3 }
 0x2e7   :  { %v6200_v4 = vpop.eup %6199 }
 0x2e8   :  { %706 = vrot.lane.b32.xlu1 %v6200_v4, %s6725_s10  ;;  %704 = vrot.lane.b32.xlu0 %v6200_v4, %s6726_s26 }
 0x318   :  { %v509_v39 = vpop.permute.xlu0 %508 }
 0x319   :  { %6201 = vtanh.f32 %v509_v39  ;;  %v9287_v39 = vmov 0.0  }
 0x326   :  { %v6202_v62 = vpop.eup %6201 }
 0x327   :  { %v518_v40 = vmul.f32 %v6202_v62, %v6196_v61 }
 0x338   :  { %v514_v0 = vpop.permute.xlu0 %513  ;;  %v512_v5 = vpop.permute.xlu1 %511 }
 0x339   :  { %v515_v7 = vsel %vm7112_vm3, %v512_v5, %v514_v0  ;;  %v516_v3 = vsel %vm7112_vm3, %v514_v0, %v512_v5 }
 0x33a   :  { %v517_v8 = vmul.f32 %v515_v7, %v7119_v6 }
 0x33c   :  { %v7253_v22 = vadd.f32 %v518_v40, %v517_v8  ;;  %v702_v1 = vpop.permute.xlu1 %701 }
 0x33e   :  { %6203 = vtanh.f32 %v7253_v22 }
 0x33f   :  { %6205 = vtanh.f32 %v702_v1 }
 0x34b   :  { %v6204_v2 = vpop.eup %6203 }
 0x34c   :  { %v521_v59 = vmul.f32 %v6204_v2, %v516_v3  ;;  %v6206_v6 = vpop.eup %6205  ;;  %v7303_v3 = vld [vmem:[#allocation11 + $0x78] sm:$0xff] }
 0x34d   :  { %v711_v7 = vmul.f32 %v6206_v6, %v6200_v4  ;;  %v7295_v4 = vld [vmem:[#allocation9 + $0x78] sm:$0xff]  ;;  %v7305_v6 = vld [vmem:[#allocation9 + $0x70] sm:$0xff] }
 0x34e   :  { %4873 = vmatmul.mubr.f32.vlgmr.msra.gmra.mxu1 %v521_v59 }
 0x34f   :  { %4911 = vmatpush3.msra.mxu1 %v7124_v11  ;;  %4942 = vmatprep.mubr.msk.f32.mxu1 %vm6723_vm0, %v9287_v39 }
 0x350   :  { %4912 = vmatprep.subr.mxu1 %v9287_v39 }
 0x351   :  { %4913 = vmatpush3.msra.mxu1 %v7126_v24 }
 0x352   :  { %4914 = vmatprep.subr.mxu1 %v9287_v39 }
 0x353   :  { %4915 = vmatpush3.msra.mxu1 %v7132_v25 }
 0x354   :  { %4916 = vmatprep.subr.mxu1 %v9287_v39 }
 0x355   :  { %4917 = vmatpush3.msra.mxu1 %v7136_v26 }
 0x356   :  { %4918 = vmatprep.subr.mxu1 %v9287_v39 }
 0x357   :  { %4919 = vmatpush3.msra.mxu1 %v7140_v27 }
 0x358   :  { %4920 = vmatprep.subr.mxu1 %v9287_v39 }
 0x359   :  { %4921 = vmatpush3.msra.mxu1 %v7144_v28 }
 0x35a   :  { %4922 = vmatprep.subr.mxu1 %v9287_v39  ;;  %v707_v61 = vpop.permute.xlu1 %706  ;;  %v705_v62 = vpop.permute.xlu0 %704 }
 0x35b   :  { %v708_v0 = vsel %vm7112_vm3, %v705_v62, %v707_v61  ;;  %4923 = vmatpush3.msra.mxu1 %v7148_v29  ;;  %v709_v1 = vsel %vm7112_vm3, %v707_v61, %v705_v62  ;;  %v7312_v61 = vld [vmem:[#allocation11 + $0x70] sm:$0xff]  ;;  %v7314_v62 = vld [vmem:[#allocation9 + $0x68] sm:$0xff] }
 0x35c   :  { %v710_v5 = vmul.f32 0.0, %v708_v0  ;;  %4924 = vmatprep.subr.mxu1 %v9287_v39  ;;  %v7322_v0 = vld [vmem:[#allocation9 + $0x60] sm:$0xff] }
 0x35d   :  { %4925 = vmatpush3.msra.mxu1 %v7152_v30 }
 0x35e   :  { %v7277_v8 = vadd.f32 %v711_v7, %v710_v5  ;;  %4926 = vmatprep.subr.mxu1 %v9287_v39  ;;  %v7328_v5 = vld [vmem:[#allocation11 + $0x60] sm:$0xff]  ;;  %v7330_v7 = vld [vmem:[#allocation9 + $0x58] sm:$0xff] }
 0x35f   :  { %4927 = vmatpush3.msra.mxu1 %v7156_v31  ;;  %9289 = vst [vmem:[#allocation27_spill] sm:$0xff] %v7328_v5  ;;  %9290 = vst [vmem:[#allocation28_spill] sm:$0xff] %v7330_v7 }
 0x360   :  { %6207 = vtanh.f32 %v7277_v8  ;;  %4928 = vmatprep.subr.mxu1 %v9287_v39 }
 0x361   :  { %4929 = vmatpush3.msra.mxu1 %v7160_v32 }
 0x362   :  { %4930 = vmatprep.subr.mxu1 %v9287_v39 }
 0x363   :  { %4931 = vmatpush3.msra.mxu1 %v7164_v33 }
 0x364   :  { %4932 = vmatprep.subr.mxu1 %v9287_v39 }
 0x365   :  { %4933 = vmatpush3.msra.mxu1 %v7168_v34 }
 0x366   :  { %4934 = vmatprep.subr.mxu1 %v9287_v39 }
 0x367   :  { %4935 = vmatpush3.msra.mxu1 %v7172_v35 }
 0x368   :  { %4936 = vmatprep.subr.mxu1 %v9287_v39 }
 0x369   :  { %4937 = vmatpush3.msra.mxu1 %v7176_v36 }
 0x36a   :  { %4938 = vmatprep.subr.mxu1 %v9287_v39 }
 0x36b   :  { %4939 = vmatpush3.msra.mxu1 %v7180_v37 }
 0x36c   :  { %4940 = vmatprep.subr.mxu1 %v9287_v39 }
 0x36d   :  { %v6208_v40 = vpop.eup %6207  ;;  %4941 = vmatpush3.msra.mxu1 %v7184_v38 }
 0x36e   :  { %v7300_v2 = vmul.f32 %v6208_v40, %v709_v1  ;;  %4943 = vmatmul.mubr.f32.vlgmr.msra.gmra.mxu1 %v521_v59  ;;  %4980 = vmatprep.subr.mxu1 %v9287_v39  ;;  %v7320_v59 = vld [vmem:[#allocation11 + $0x68] sm:$0xff]  ;;  %v7336_v40 = vld [vmem:[#allocation11 + $0x58] sm:$0xff]  ;;  %v7338_v1 = vld [vmem:[#allocation9 + $0x50] sm:$0xff] }
 0x36f   :  { %4981 = vmatpush3.msra.mxu1 %v7295_v4  ;;  %5012 = vmatprep.mubr.msk.f32.mxu1 %vm6723_vm0, %v9287_v39  ;;  %9288 = vst [vmem:[#allocation26_spill] sm:$0xff] %v7320_v59  ;;  %9291 = vst [vmem:[#allocation29_spill] sm:$0xff] %v7336_v40 }
 0x370   :  { %4908 = vmatmul.mubr.f32.vlgmr.msra.gmra.mxu0 %v7300_v2  ;;  %4982 = vmatprep.subr.mxu1 %v9287_v39  ;;  %9292 = vst [vmem:[#allocation30_spill] sm:$0xff] %v7338_v1 }
 0x371   :  { %4946 = vmatpush3.msra.mxu0 %v7303_v3  ;;  %4983 = vmatpush3.msra.mxu1 %v7305_v6 }
 0x372   :  { %4947 = vmatprep.subr.mxu0 %v9287_v39  ;;  %4984 = vmatprep.subr.mxu1 %v9287_v39 }
 0x373   :  { %4948 = vmatpush3.msra.mxu0 %v7312_v61  ;;  %4985 = vmatpush3.msra.mxu1 %v7314_v62 }
 0x374   :  { %4949 = vmatprep.subr.mxu0 %v9287_v39  ;;  %4986 = vmatprep.subr.mxu1 %v9287_v39 }
 0x375   :  { %4950 = vmatpush3.msra.mxu0 %v7320_v59  ;;  %4987 = vmatpush3.msra.mxu1 %v7322_v0  ;;  %v7352_v59 = vld [vmem:[#allocation11 + $0x48] sm:$0xff] }
 0x376   :  { %4951 = vmatprep.subr.mxu0 %v9287_v39  ;;  %4988 = vmatprep.subr.mxu1 %v9287_v39  ;;  %9295 = vst [vmem:[#allocation33_spill] sm:$0xff] %v7352_v59 }
 0x377   :  { %4952 = vmatpush3.msra.mxu0 %v7328_v5  ;;  %4989 = vmatpush3.msra.mxu1 %v7330_v7  ;;  %v7354_v5 = vld [vmem:[#allocation9 + $0x40] sm:$0xff] }
 0x378   :  { %4953 = vmatprep.subr.mxu0 %v9287_v39  ;;  %4990 = vmatprep.subr.mxu1 %v9287_v39  ;;  %9296 = vst [vmem:[#allocation34_spill] sm:$0xff] %v7354_v5  ;;  %v7360_v7 = vld [vmem:[#allocation11 + $0x40] sm:$0xff] }
 0x379   :  { %4954 = vmatpush3.msra.mxu0 %v7336_v40  ;;  %4991 = vmatpush3.msra.mxu1 %v7338_v1  ;;  %9297 = vst [vmem:[#allocation35_spill] sm:$0xff] %v7360_v7  ;;  %v7362_v40 = vld [vmem:[#allocation9 + $0x38] sm:$0xff] }
 0x37a   :  { %4955 = vmatprep.subr.mxu0 %v9287_v39  ;;  %4992 = vmatprep.subr.mxu1 %v9287_v39  ;;  %9298 = vst [vmem:[#allocation36_spill] sm:$0xff] %v7362_v40  ;;  %v7368_v1 = vld [vmem:[#allocation11 + $0x38] sm:$0xff] }
 0x37b   :  { %4956 = vmatpush3.msra.mxu0 %v7344_v60  ;;  %4993 = vmatpush3.msra.mxu1 %v7346_v57  ;;  %9299 = vst [vmem:[#allocation37_spill] sm:$0xff] %v7368_v1  ;;  %v7370_v60 = vld [vmem:[#allocation9 + $0x30] sm:$0xff] }
 0x37c   :  { %4957 = vmatprep.subr.mxu0 %v9287_v39  ;;  %4994 = vmatprep.subr.mxu1 %v9287_v39  ;;  %9300 = vst [vmem:[#allocation38_spill] sm:$0xff] %v7370_v60  ;;  %v7376_v57 = vld [vmem:[#allocation11 + $0x30] sm:$0xff] }
 0x37d   :  { %4958 = vmatpush3.msra.mxu0 %v7352_v59  ;;  %4995 = vmatpush3.msra.mxu1 %v7354_v5  ;;  %9301 = vst [vmem:[#allocation39_spill] sm:$0xff] %v7376_v57  ;;  %v7378_v59 = vld [vmem:[#allocation9 + $0x28] sm:$0xff] }
 0x37e   :  { %4959 = vmatprep.subr.mxu0 %v9287_v39  ;;  %4996 = vmatprep.subr.mxu1 %v9287_v39  ;;  %9302 = vst [vmem:[#allocation40_spill] sm:$0xff] %v7378_v59  ;;  %v7384_v5 = vld [vmem:[#allocation11 + $0x28] sm:$0xff] }
 0x37f   :  { %4960 = vmatpush3.msra.mxu0 %v7360_v7  ;;  %4997 = vmatpush3.msra.mxu1 %v7362_v40  ;;  %9303 = vst [vmem:[#allocation41_spill] sm:$0xff] %v7384_v5  ;;  %v7386_v7 = vld [vmem:[#allocation9 + $0x20] sm:$0xff] }
 0x380   :  { %4961 = vmatprep.subr.mxu0 %v9287_v39  ;;  %4998 = vmatprep.subr.mxu1 %v9287_v39  ;;  %9304 = vst [vmem:[#allocation42_spill] sm:$0xff] %v7386_v7  ;;  %v7392_v40 = vld [vmem:[#allocation11 + $0x20] sm:$0xff] }
 0x381   :  { %4962 = vmatpush3.msra.mxu0 %v7368_v1  ;;  %4999 = vmatpush3.msra.mxu1 %v7370_v60  ;;  %9305 = vst [vmem:[#allocation43_spill] sm:$0xff] %v7392_v40  ;;  %v7394_v1 = vld [vmem:[#allocation9 + $0x18] sm:$0xff] }
 0x382   :  { %4963 = vmatprep.subr.mxu0 %v9287_v39  ;;  %5000 = vmatprep.subr.mxu1 %v9287_v39  ;;  %9306 = vst [vmem:[#allocation44_spill] sm:$0xff] %v7394_v1  ;;  %v7400_v60 = vld [vmem:[#allocation11 + $0x18] sm:$0xff] }
 0x383   :  { %4964 = vmatpush3.msra.mxu0 %v7376_v57  ;;  %5001 = vmatpush3.msra.mxu1 %v7378_v59  ;;  %v7402_v57 = vld [vmem:[#allocation9 + $0x10] sm:$0xff] }
 0x384   :  { %4965 = vmatprep.subr.mxu0 %v9287_v39  ;;  %5002 = vmatprep.subr.mxu1 %v9287_v39  ;;  %v7408_v59 = vld [vmem:[#allocation11 + $0x10] sm:$0xff] }
 0x385   :  { %4966 = vmatpush3.msra.mxu0 %v7384_v5  ;;  %5003 = vmatpush3.msra.mxu1 %v7386_v7  ;;  %9307 = vst [vmem:[#allocation45_spill] sm:$0xff] %v7408_v59  ;;  %v7410_v5 = vld [vmem:[#allocation9 + $0x8] sm:$0xff] }
 0x386   :  { %4967 = vmatprep.subr.mxu0 %v9287_v39  ;;  %5004 = vmatprep.subr.mxu1 %v9287_v39  ;;  %v7416_v7 = vld [vmem:[#allocation11 + $0x8] sm:$0xff] }
 0x387   :  { %4968 = vmatpush3.msra.mxu0 %v7392_v40  ;;  %5005 = vmatpush3.msra.mxu1 %v7394_v1  ;;  %9308 = vst [vmem:[#allocation46_spill] sm:$0xff] %v7416_v7  ;;  %v7418_v40 = vld [vmem:[#allocation9] sm:$0xff] }
 0x388   :  { %4969 = vmatprep.subr.mxu0 %v9287_v39  ;;  %5006 = vmatprep.subr.mxu1 %v9287_v39  ;;  %v7424_v1 = vld [vmem:[#allocation11] sm:$0xff] }
 0x389   :  { %4970 = vmatpush3.msra.mxu0 %v7400_v60  ;;  %5007 = vmatpush3.msra.mxu1 %v7402_v57 }
 0x38a   :  { %4971 = vmatprep.subr.mxu0 %v9287_v39  ;;  %5008 = vmatprep.subr.mxu1 %v9287_v39 }
 0x38b   :  { %4972 = vmatpush3.msra.mxu0 %v7408_v59  ;;  %5009 = vmatpush3.msra.mxu1 %v7410_v5  ;;  %v7435_v59 = vld [vmem:[#allocation3 + $0x78] sm:$0xff] }
 0x38c   :  { %4973 = vmatprep.subr.mxu0 %v9287_v39  ;;  %5010 = vmatprep.subr.mxu1 %v9287_v39  ;;  %9309 = vst [vmem:[#allocation47_spill] sm:$0xff] %v7435_v59 }
 0x38d   :  { %4974 = vmatpush3.msra.mxu0 %v7416_v7  ;;  %5011 = vmatpush3.msra.mxu1 %v7418_v40  ;;  %v7442_v7 = vld [vmem:[#allocation3 + $0x70] sm:$0xff] }
 0x38e   :  { %4975 = vmatprep.subr.mxu0 %v9287_v39  ;;  %4977 = vmatprep.mubr.msk.f32.mxu0 %vm6723_vm0, %v9287_v39 }
 0x38f   :  { %4976 = vmatpush3.msra.mxu0 %v7424_v1  ;;  %5013 = vmatmul.mubr.f32.vlgmr.msra.gmra.mxu1 %v7300_v2  ;;  %v7448_v2 = vld [vmem:[#allocation3 + $0x68] sm:$0xff] }
 0x390   :  { %4978 = vmatmul.mubr.f32.vlgmr.msra.gmra.mxu0 %v9287_v39  ;;  %5015 = vmatprep.subr.mxu0 %v9287_v39 }
 0x391   :  { %5016 = vmatpush3.msra.mxu0 %v7435_v59  ;;  %5047 = vmatprep.mubr.msk.f32.mxu0 %vm6723_vm0, %v9287_v39  ;;  %v7454_v59 = vld [vmem:[#allocation3 + $0x60] sm:$0xff] }
 0x392   :  { %5017 = vmatprep.subr.mxu0 %v9287_v39  ;;  %5050 = vmatprep.subr.mxu1 %v9287_v39 }
 0x393   :  { %5018 = vmatpush3.msra.mxu0 %v7442_v7  ;;  %5051 = vmatpush3.msra.mxu1 %v7010_v41  ;;  %v7460_v41 = vld [vmem:[#allocation3 + $0x58] sm:$0xff] }
 0x394   :  { %5019 = vmatprep.subr.mxu0 %v9287_v39  ;;  %5052 = vmatprep.subr.mxu1 %v9287_v39 }
 0x395   :  { %5020 = vmatpush3.msra.mxu0 %v7448_v2  ;;  %5053 = vmatpush3.msra.mxu1 %v7014_v42 }
 0x396   :  { %5021 = vmatprep.subr.mxu0 %v9287_v39  ;;  %5054 = vmatprep.subr.mxu1 %v9287_v39 }
 0x397   :  { %5022 = vmatpush3.msra.mxu0 %v7454_v59  ;;  %5055 = vmatpush3.msra.mxu1 %v7018_v43 }
 0x398   :  { %5023 = vmatprep.subr.mxu0 %v9287_v39  ;;  %5056 = vmatprep.subr.mxu1 %v9287_v39 }
 0x399   :  { %5024 = vmatpush3.msra.mxu0 %v7460_v41  ;;  %5057 = vmatpush3.msra.mxu1 %v7022_v44 }
 0x39a   :  { %5025 = vmatprep.subr.mxu0 %v9287_v39  ;;  %5058 = vmatprep.subr.mxu1 %v9287_v39 }
 0x39b   :  { %5026 = vmatpush3.msra.mxu0 %v6878_v10  ;;  %5059 = vmatpush3.msra.mxu1 %v7026_v45  ;;  %v263_v10 = vadd.f32 %v6970_v23, %v7226_v58 }
 0x39c   :  { %5027 = vmatprep.subr.mxu0 %v9287_v39  ;;  %5060 = vmatprep.subr.mxu1 %v9287_v39 }
 0x39d   :  { %5028 = vmatpush3.msra.mxu0 %v6885_v12  ;;  %5061 = vmatpush3.msra.mxu1 %v7030_v46 }
 0x39e   :  { %5029 = vmatprep.subr.mxu0 %v9287_v39  ;;  %5062 = vmatprep.subr.mxu1 %v9287_v39 }
 0x39f   :  { %5030 = vmatpush3.msra.mxu0 %v6891_v13  ;;  %5063 = vmatpush3.msra.mxu1 %v7034_v47 }
 0x3a0   :  { %5031 = vmatprep.subr.mxu0 %v9287_v39  ;;  %5064 = vmatprep.subr.mxu1 %v9287_v39 }
 0x3a1   :  { %5032 = vmatpush3.msra.mxu0 %v6897_v14  ;;  %5065 = vmatpush3.msra.mxu1 %v7038_v48  ;;  %v7524_v48 = vld [vmem:[%s9172_s9] ss:$0 sm:$0xff] }
 0x3a2   :  { %5033 = vmatprep.subr.mxu0 %v9287_v39  ;;  %5066 = vmatprep.subr.mxu1 %v9287_v39 }
 0x3a3   :  { %5034 = vmatpush3.msra.mxu0 %v6903_v15  ;;  %5067 = vmatpush3.msra.mxu1 %v7042_v49 }
 0x3a4   :  { %5035 = vmatprep.subr.mxu0 %v9287_v39  ;;  %5068 = vmatprep.subr.mxu1 %v9287_v39 }
 0x3a5   :  { %5036 = vmatpush3.msra.mxu0 %v6909_v16  ;;  %5069 = vmatpush3.msra.mxu1 %v7046_v50 }
 0x3a6   :  { %5037 = vmatprep.subr.mxu0 %v9287_v39  ;;  %5070 = vmatprep.subr.mxu1 %v9287_v39 }
 0x3a7   :  { %5038 = vmatpush3.msra.mxu0 %v6915_v17  ;;  %5071 = vmatpush3.msra.mxu1 %v7050_v51 }
 0x3a8   :  { %5039 = vmatprep.subr.mxu0 %v9287_v39  ;;  %5072 = vmatprep.subr.mxu1 %v9287_v39 }
 0x3a9   :  { %5040 = vmatpush3.msra.mxu0 %v6921_v18  ;;  %5073 = vmatpush3.msra.mxu1 %v7054_v52 }
 0x3aa   :  { %5041 = vmatprep.subr.mxu0 %v9287_v39  ;;  %5074 = vmatprep.subr.mxu1 %v9287_v39 }
 0x3ab   :  { %5042 = vmatpush3.msra.mxu0 %v6927_v19  ;;  %5075 = vmatpush3.msra.mxu1 %v7058_v53 }
 0x3ac   :  { %5043 = vmatprep.subr.mxu0 %v9287_v39  ;;  %5076 = vmatprep.subr.mxu1 %v9287_v39 }
 0x3ad   :  { %5044 = vmatpush3.msra.mxu0 %v6933_v20  ;;  %5077 = vmatpush3.msra.mxu1 %v7062_v54 }
 0x3ae   :  { %5045 = vmatprep.subr.mxu0 %v9287_v39  ;;  %5078 = vmatprep.subr.mxu1 %v9287_v39 }
 0x3af   :  { %5046 = vmatpush3.msra.mxu0 %v6939_v21  ;;  %5079 = vmatpush3.msra.mxu1 %v7066_v55 }
 0x3b0   :  { %5085 = vmatprep.subr.mxu0 %v9287_v39  ;;  %5080 = vmatprep.subr.mxu1 %v9287_v39 }
 0x3b1   :  { %5081 = vmatpush3.msra.mxu1 %v7070_v56  ;;  %5082 = vmatprep.mubr.msk.f32.mxu1 %vm6723_vm0, %v9287_v39 }
 0x3b2   :  { %5120 = vmatprep.subr.mxu1 %v9287_v39 }
 0x40e   :  { %v782_v12 = vpop.f32.mrf.mxu1 }
 0x40f   :  { %v786_v13 = vadd.f32 %v782_v12, %v263_v10 }
 0x410   :  { %v4874_v14 = vpop.f32.mrf.mxu1 }
 0x411   :  { %v3934_v15 = vmul.f32 -1.442695, %v786_v13  ;;  %793 = vrot.lane.b32.xlu0 %v786_v13, %s6724_s22 }
 0x413   :  { %6209 = vpow2.f32 %v3934_v15 }
 0x420   :  { %v6210_v16 = vpop.eup %6209 }
 0x421   :  { %v790_v17 = vadd.f32 1.0, %v6210_v16 }
 0x423   :  { %6211 = vrcp.f32 %v790_v17 }
 0x42e   :  { %v943_v18 = vpop.f32.mrf.mxu1 }
 0x430   :  { %v6212_v19 = vpop.eup %6211  ;;  %v873_v20 = vpop.f32.mrf.mxu0 }
 0x431   :  { %v4944_v21 = vpop.f32.mrf.mxu1  ;;  %v944_v42 = vadd.f32 %v943_v18, %v873_v20  ;;  %796 = vrot.lane.b32.xlu1 %v6212_v19, %s6726_s26  ;;  %798 = vrot.lane.b32.xlu0 %v6212_v19, %s6725_s10 }
 0x432   :  { %v4909_v23 = vpop.f32.mrf.mxu0 }
 0x433   :  { %v947_v43 = vadd.f32 %v7242_v9, %v944_v42 }
 0x435   :  { %v3935_v44 = vmul.f32 -1.442695, %v947_v43  ;;  %954 = vrot.lane.b32.xlu1 %v947_v43, %s6724_s22  ;;  %v9318_v43 = vld [vmem:[#allocation33_spill] sm:$0xff] }
 0x437   :  { %6213 = vpow2.f32 %v3935_v44  ;;  %v9319_v44 = vld [vmem:[#allocation36_spill] sm:$0xff] }
 0x444   :  { %v6214_v45 = vpop.eup %6213 }
 0x445   :  { %v951_v46 = vadd.f32 1.0, %v6214_v45 }
 0x447   :  { %6215 = vrcp.f32 %v951_v46  ;;  %v9320_v46 = vld [vmem:[#allocation35_spill] sm:$0xff] }
 0x44f   :  { %v1136_v47 = vpop.f32.mrf.mxu1 }
 0x450   :  { %v1066_v49 = vpop.f32.mrf.mxu0 }
 0x451   :  { %v1137_v50 = vadd.f32 %v1136_v47, %v1066_v49  ;;  %v5014_v51 = vpop.f32.mrf.mxu1  ;;  %v9321_v47 = vld [vmem:[#allocation38_spill] sm:$0xff]  ;;  %v9322_v49 = vld [vmem:[#allocation37_spill] sm:$0xff] }
 0x452   :  { %v4979_v52 = vpop.f32.mrf.mxu0  ;;  %v9324_v51 = vld [vmem:[#allocation39_spill] sm:$0xff] }
 0x453   :  { %v1140_v53 = vadd.f32 %v7524_v48, %v1137_v50  ;;  %v9323_v50 = vld [vmem:[#allocation40_spill] sm:$0xff]  ;;  %v9325_v52 = vld [vmem:[#allocation42_spill] sm:$0xff] }
 0x454   :  { %v6216_v54 = vpop.eup %6215 }
 0x455   :  { %v3936_v55 = vmul.f32 -1.442695, %v1140_v53  ;;  %959 = vrot.lane.b32.xlu1 %v6216_v54, %s6725_s10  ;;  %957 = vrot.lane.b32.xlu0 %v6216_v54, %s6726_s26 }
 0x457   :  { %6217 = vpow2.f32 %v3936_v55  ;;  %v9328_v55 = vld [vmem:[#allocation43_spill] sm:$0xff] }
 0x459   :  { %1147 = vrot.lane.b32.xlu0 %v1140_v53, %s6724_s22  ;;  %v9326_v53 = vld [vmem:[#allocation41_spill] sm:$0xff] }
 0x464   :  { %v6218_v56 = vpop.eup %6217 }
 0x465   :  { %v1144_v58 = vadd.f32 1.0, %v6218_v56  ;;  %v9329_v56 = vld [vmem:[#allocation45_spill] sm:$0xff] }
 0x467   :  { %6219 = vrcp.f32 %v1144_v58 }
 0x474   :  { %v7530_v9 = vpop.eup %6219 }
 0x475   :  { %1152 = vrot.lane.b32.xlu0 %v7530_v9, %s6725_s10  ;;  %1150 = vrot.lane.b32.xlu1 %v7530_v9, %s6726_s26 }
 0x483   :  { %v794_v10 = vpop.permute.xlu0 %793 }
 0x484   :  { %6221 = vtanh.f32 %v794_v10  ;;  %v9330_v10 = vld [vmem:[#allocation46_spill] sm:$0xff] }
 0x491   :  { %v6222_v12 = vpop.eup %6221 }
 0x492   :  { %v803_v16 = vmul.f32 %v6222_v12, %v6212_v19  ;;  %v7665_v12 = vld [vmem:[#allocation8 + $0x78] sm:$0xff] }
 0x4a3   :  { %v797_v13 = vpop.permute.xlu1 %796  ;;  %v799_v14 = vpop.permute.xlu0 %798 }
 0x4a4   :  { %v800_v15 = vsel %vm7112_vm3, %v797_v13, %v799_v14  ;;  %v801_v21 = vsel %vm7112_vm3, %v799_v14, %v797_v13  ;;  %v9331_v13 = vld [vmem:[#allocation47_spill] sm:$0xff]  ;;  %v7675_v14 = vld [vmem:[#allocation8 + $0x70] sm:$0xff] }
 0x4a5   :  { %v802_v17 = vmul.f32 %v800_v15, %v7253_v22  ;;  %v7687_v15 = vld [vmem:[#allocation8 + $0x60] sm:$0xff] }
 0x4a7   :  { %v7539_v18 = vadd.f32 %v803_v16, %v802_v17  ;;  %v955_v42 = vpop.permute.xlu1 %954  ;;  %v7693_v16 = vld [vmem:[#allocation8 + $0x58] sm:$0xff]  ;;  %v7698_v17 = vld [vmem:[#allocation3 + $0x50] sm:$0xff] }
 0x4a9   :  { %6223 = vtanh.f32 %v7539_v18 }
 0x4aa   :  { %6225 = vtanh.f32 %v955_v42  ;;  %v7709_v42 = vld [vmem:[#allocation8 + $0x48] sm:$0xff] }
 0x4b6   :  { %v6224_v20 = vpop.eup %6223 }
 0x4b7   :  { %v806_v23 = vmul.f32 %v6224_v20, %v801_v21  ;;  %v7701_v20 = vld [vmem:[#allocation8 + $0x50] sm:$0xff]  ;;  %v7706_v21 = vld [vmem:[#allocation3 + $0x48] sm:$0xff] }
 0x4b9   :  { %5048 = vmatmul.mubr.f32.vlgmr.msra.gmra.mxu0 %v806_v23 }
 0x4ba   :  { %5086 = vmatpush3.msra.mxu0 %v7124_v11  ;;  %5117 = vmatprep.mubr.msk.f32.mxu0 %vm6723_vm0, %v9287_v39  ;;  %v6226_v11 = vpop.eup %6225 }
 0x4bb   :  { %5087 = vmatprep.subr.mxu0 %v9287_v39  ;;  %v964_v22 = vmul.f32 %v6226_v11, %v6216_v54  ;;  %v9327_v54 = vld [vmem:[#allocation44_spill] sm:$0xff] }
 0x4bc   :  { %5088 = vmatpush3.msra.mxu0 %v7126_v24  ;;  %v7717_v11 = vld [vmem:[#allocation8 + $0x40] sm:$0xff] }
 0x4bd   :  { %5089 = vmatprep.subr.mxu0 %v9287_v39 }
 0x4be   :  { %5090 = vmatpush3.msra.mxu0 %v7132_v25 }
 0x4bf   :  { %5091 = vmatprep.subr.mxu0 %v9287_v39 }
 0x4c0   :  { %5092 = vmatpush3.msra.mxu0 %v7136_v26 }
 0x4c1   :  { %5093 = vmatprep.subr.mxu0 %v9287_v39 }
 0x4c2   :  { %5094 = vmatpush3.msra.mxu0 %v7140_v27 }
 0x4c3   :  { %5095 = vmatprep.subr.mxu0 %v9287_v39 }
 0x4c4   :  { %5096 = vmatpush3.msra.mxu0 %v7144_v28 }
 0x4c5   :  { %5097 = vmatprep.subr.mxu0 %v9287_v39 }
 0x4c6   :  { %5098 = vmatpush3.msra.mxu0 %v7148_v29 }
 0x4c7   :  { %5099 = vmatprep.subr.mxu0 %v9287_v39  ;;  %v960_v24 = vpop.permute.xlu1 %959  ;;  %v958_v25 = vpop.permute.xlu0 %957 }
 0x4c8   :  { %v961_v26 = vsel %vm7112_vm3, %v958_v25, %v960_v24  ;;  %5100 = vmatpush3.msra.mxu0 %v7152_v30 }
 0x4c9   :  { %v963_v27 = vmul.f32 %v961_v26, %v7277_v8  ;;  %5101 = vmatprep.subr.mxu0 %v9287_v39  ;;  %v9315_v8 = vld [vmem:[#allocation32_spill] sm:$0xff]  ;;  %v7730_v26 = vld [vmem:[#allocation3 + $0x30] sm:$0xff] }
 0x4ca   :  { %5102 = vmatpush3.msra.mxu0 %v7156_v31  ;;  %v962_v31 = vsel %vm7112_vm3, %v960_v24, %v958_v25  ;;  %v7722_v24 = vld [vmem:[#allocation3 + $0x38] sm:$0xff] }
 0x4cb   :  { %v7566_v28 = vadd.f32 %v964_v22, %v963_v27  ;;  %5103 = vmatprep.subr.mxu0 %v9287_v39  ;;  %v1148_v29 = vpop.permute.xlu0 %1147  ;;  %v7725_v25 = vld [vmem:[#allocation8 + $0x38] sm:$0xff]  ;;  %v7733_v27 = vld [vmem:[#allocation8 + $0x30] sm:$0xff]  ;;  %v7738_v22 = vld [vmem:[#allocation3 + $0x28] sm:$0xff] }
 0x4cc   :  { %5104 = vmatpush3.msra.mxu0 %v7160_v32 }
 0x4cd   :  { %6227 = vtanh.f32 %v7566_v28  ;;  %5105 = vmatprep.subr.mxu0 %v9287_v39 }
 0x4ce   :  { %5106 = vmatpush3.msra.mxu0 %v7164_v33  ;;  %6229 = vtanh.f32 %v1148_v29  ;;  %v9310_v33 = vld [vmem:[#allocation26_spill] sm:$0xff]  ;;  %v7741_v29 = vld [vmem:[#allocation8 + $0x28] sm:$0xff] }
 0x4cf   :  { %5107 = vmatprep.subr.mxu0 %v9287_v39 }
 0x4d0   :  { %5108 = vmatpush3.msra.mxu0 %v7168_v34  ;;  %v9311_v34 = vld [vmem:[#allocation28_spill] sm:$0xff] }
 0x4d1   :  { %5109 = vmatprep.subr.mxu0 %v9287_v39 }
 0x4d2   :  { %5110 = vmatpush3.msra.mxu0 %v7172_v35  ;;  %v9312_v35 = vld [vmem:[#allocation27_spill] sm:$0xff] }
 0x4d3   :  { %5111 = vmatprep.subr.mxu0 %v9287_v39 }
 0x4d4   :  { %5112 = vmatpush3.msra.mxu0 %v7176_v36  ;;  %v9313_v36 = vld [vmem:[#allocation30_spill] sm:$0xff] }
 0x4d5   :  { %5113 = vmatprep.subr.mxu0 %v9287_v39 }
 0x4d6   :  { %5114 = vmatpush3.msra.mxu0 %v7180_v37 }
 0x4d7   :  { %5115 = vmatprep.subr.mxu0 %v9287_v39 }
 0x4d8   :  { %5116 = vmatpush3.msra.mxu0 %v7184_v38  ;;  %v9314_v38 = vld [vmem:[#allocation29_spill] sm:$0xff] }
 0x4d9   :  { %5118 = vmatmul.mubr.f32.vlgmr.msra.gmra.mxu0 %v806_v23  ;;  %5155 = vmatprep.subr.mxu0 %v9287_v39  ;;  %v7714_v23 = vld [vmem:[#allocation3 + $0x40] sm:$0xff] }
 0x4da   :  { %v6228_v30 = vpop.eup %6227  ;;  %5156 = vmatpush3.msra.mxu0 %v7295_v4  ;;  %5187 = vmatprep.mubr.msk.f32.mxu0 %vm6723_vm0, %v9287_v39 }
 0x4db   :  { %v7589_v32 = vmul.f32 %v6228_v30, %v962_v31  ;;  %5157 = vmatprep.subr.mxu0 %v9287_v39  ;;  %v6230_v37 = vpop.eup %6229  ;;  %v7746_v30 = vld [vmem:[#allocation3 + $0x20] sm:$0xff] }
 0x4dc   :  { %5158 = vmatpush3.msra.mxu0 %v7305_v6  ;;  %v1157_v19 = vmul.f32 %v6230_v37, %v7530_v9  ;;  %v7749_v31 = vld [vmem:[#allocation8 + $0x20] sm:$0xff]  ;;  %v7773_v37 = vld [vmem:[#allocation8 + $0x8] sm:$0xff] }
 0x4dd   :  { %5083 = vmatmul.mubr.f32.vlgmr.msra.gmra.mxu1 %v7589_v32  ;;  %5159 = vmatprep.subr.mxu0 %v9287_v39  ;;  %9335 = vst [vmem:[#allocation30_spill] sm:$0xff] %v7773_v37 }
 0x4de   :  { %5121 = vmatpush3.msra.mxu1 %v7303_v3  ;;  %5160 = vmatpush3.msra.mxu0 %v7314_v62  ;;  %v9317_v62 = vld [vmem:[#allocation34_spill] sm:$0xff] }
 0x4df   :  { %5122 = vmatprep.subr.mxu1 %v9287_v39  ;;  %5161 = vmatprep.subr.mxu0 %v9287_v39 }
 0x4e0   :  { %5123 = vmatpush3.msra.mxu1 %v7312_v61  ;;  %5162 = vmatpush3.msra.mxu0 %v7322_v0  ;;  %v9316_v61 = vld [vmem:[#allocation31_spill] sm:$0xff] }
 0x4e1   :  { %5124 = vmatprep.subr.mxu1 %v9287_v39  ;;  %5163 = vmatprep.subr.mxu0 %v9287_v39 }
 0x4e2   :  { %5125 = vmatpush3.msra.mxu1 %v9310_v33  ;;  %5164 = vmatpush3.msra.mxu0 %v9311_v34  ;;  %v7757_v33 = vld [vmem:[#allocation8 + $0x18] sm:$0xff]  ;;  %v7762_v34 = vld [vmem:[#allocation3 + $0x10] sm:$0xff] }
 0x4e3   :  { %5126 = vmatprep.subr.mxu1 %v9287_v39  ;;  %5165 = vmatprep.subr.mxu0 %v9287_v39  ;;  %9333 = vst [vmem:[#allocation28_spill] sm:$0xff] %v7762_v34 }
 0x4e4   :  { %5127 = vmatpush3.msra.mxu1 %v9312_v35  ;;  %5166 = vmatpush3.msra.mxu0 %v9313_v36  ;;  %v7765_v35 = vld [vmem:[#allocation8 + $0x10] sm:$0xff]  ;;  %v7770_v36 = vld [vmem:[#allocation3 + $0x8] sm:$0xff] }
 0x4e5   :  { %5128 = vmatprep.subr.mxu1 %v9287_v39  ;;  %5167 = vmatprep.subr.mxu0 %v9287_v39  ;;  %9334 = vst [vmem:[#allocation27_spill] sm:$0xff] %v7770_v36 }
 0x4e6   :  { %5129 = vmatpush3.msra.mxu1 %v9314_v38  ;;  %5168 = vmatpush3.msra.mxu0 %v9315_v8  ;;  %v7778_v38 = vld [vmem:[#allocation3] sm:$0xff] }
 0x4e7   :  { %5130 = vmatprep.subr.mxu1 %v9287_v39  ;;  %v1153_v4 = vpop.permute.xlu0 %1152  ;;  %v1151_v3 = vpop.permute.xlu1 %1150  ;;  %5169 = vmatprep.subr.mxu0 %v9287_v39  ;;  %9336 = vst [vmem:[#allocation29_spill] sm:$0xff] %v7778_v38  ;;  %v7781_v8 = vld [vmem:[#allocation8] sm:$0xff] }
 0x4e8   :  { %v1154_v6 = vsel %vm7112_vm3, %v1151_v3, %v1153_v4  ;;  %5131 = vmatpush3.msra.mxu1 %v9316_v61  ;;  %5170 = vmatpush3.msra.mxu0 %v9317_v62  ;;  %v1155_v9 = vsel %vm7112_vm3, %v1153_v4, %v1151_v3  ;;  %9337 = vst [vmem:[#allocation32_spill] sm:$0xff] %v7781_v8  ;;  %v7791_v4 = vld [vmem:[%s9166_s3] ss:$0 sm:$0xff]  ;;  %v9339_v3 = vld [vmem:[#allocation21_spill] sm:$0xff] }
 0x4e9   :  { %v1156_v0 = vmul.f32 0.0, %v1154_v6  ;;  %5132 = vmatprep.subr.mxu1 %v9287_v39  ;;  %5171 = vmatprep.subr.mxu0 %v9287_v39  ;;  %9338 = vst [vmem:[#allocation31_spill] sm:$0xff] %v7791_v4  ;;  %v268_v6 = vadd.f32 %v7791_v4, %v9339_v3 }
 0x4ea   :  { %5133 = vmatpush3.msra.mxu1 %v9318_v43  ;;  %5172 = vmatpush3.msra.mxu0 %v9319_v44 }
 0x4eb   :  { %v7624_v45 = vadd.f32 %v1157_v19, %v1156_v0  ;;  %5134 = vmatprep.subr.mxu1 %v9287_v39  ;;  %5173 = vmatprep.subr.mxu0 %v9287_v39 }
 0x4ec   :  { %5135 = vmatpush3.msra.mxu1 %v9320_v46  ;;  %5174 = vmatpush3.msra.mxu0 %v9321_v47 }
 0x4ed   :  { %6231 = vtanh.f32 %v7624_v45  ;;  %5136 = vmatprep.subr.mxu1 %v9287_v39  ;;  %5175 = vmatprep.subr.mxu0 %v9287_v39 }
 0x4ee   :  { %5137 = vmatpush3.msra.mxu1 %v9322_v49  ;;  %5176 = vmatpush3.msra.mxu0 %v9323_v50 }
 0x4ef   :  { %5138 = vmatprep.subr.mxu1 %v9287_v39  ;;  %5177 = vmatprep.subr.mxu0 %v9287_v39 }
 0x4f0   :  { %5139 = vmatpush3.msra.mxu1 %v9324_v51  ;;  %5178 = vmatpush3.msra.mxu0 %v9325_v52 }
 0x4f1   :  { %5140 = vmatprep.subr.mxu1 %v9287_v39  ;;  %5179 = vmatprep.subr.mxu0 %v9287_v39 }
 0x4f2   :  { %5141 = vmatpush3.msra.mxu1 %v9326_v53  ;;  %5180 = vmatpush3.msra.mxu0 %v9327_v54  ;;  %v7801_v53 = vld [vmem:[%s9169_s6] ss:$0 sm:$0xff] }
 0x4f3   :  { %5142 = vmatprep.subr.mxu1 %v9287_v39  ;;  %5181 = vmatprep.subr.mxu0 %v9287_v39 }
 0x4f4   :  { %5143 = vmatpush3.msra.mxu1 %v9328_v55  ;;  %5182 = vmatpush3.msra.mxu0 %v7402_v57 }
 0x4f5   :  { %5144 = vmatprep.subr.mxu1 %v9287_v39  ;;  %5183 = vmatprep.subr.mxu0 %v9287_v39 }
 0x4f6   :  { %5145 = vmatpush3.msra.mxu1 %v7400_v60  ;;  %5184 = vmatpush3.msra.mxu0 %v7410_v5 }
 0x4f7   :  { %5146 = vmatprep.subr.mxu1 %v9287_v39  ;;  %5185 = vmatprep.subr.mxu0 %v9287_v39 }
 0x4f8   :  { %5147 = vmatpush3.msra.mxu1 %v9329_v56  ;;  %5186 = vmatpush3.msra.mxu0 %v7418_v40 }
 0x4f9   :  { %5148 = vmatprep.subr.mxu1 %v9287_v39  ;;  %5188 = vmatmul.mubr.f32.vlgmr.msra.gmra.mxu0 %v7589_v32  ;;  %v7754_v32 = vld [vmem:[#allocation3 + $0x18] sm:$0xff] }
 0x4fa   :  { %v6232_v58 = vpop.eup %6231  ;;  %5149 = vmatpush3.msra.mxu1 %v9330_v10  ;;  %5152 = vmatprep.mubr.msk.f32.mxu1 %vm6723_vm0, %v9287_v39  ;;  %9332 = vst [vmem:[#allocation26_spill] sm:$0xff] %v7754_v32 }
 0x4fb   :  { %v1160_v60 = vmul.f32 %v6232_v58, %v1155_v9  ;;  %5150 = vmatprep.subr.mxu1 %v9287_v39  ;;  %5225 = vmatprep.subr.mxu0 %v9287_v39 }
 0x4fc   :  { %5151 = vmatpush3.msra.mxu1 %v7424_v1  ;;  %5226 = vmatpush3.msra.mxu0 %v7665_v12  ;;  %v7681_v1 = vld [vmem:[#allocation8 + $0x68] sm:$0xff] }
 0x4fd   :  { %5153 = vmatmul.mubr.f32.vlgmr.msra.gmra.mxu1 %v1160_v60  ;;  %5190 = vmatprep.subr.mxu1 %v9287_v39 }
 0x4fe   :  { %5191 = vmatpush3.msra.mxu1 %v9331_v13  ;;  %5222 = vmatprep.mubr.msk.f32.mxu1 %vm6723_vm0, %v9287_v39 }
 0x4ff   :  { %5192 = vmatprep.subr.mxu1 %v9287_v39  ;;  %5227 = vmatprep.subr.mxu0 %v9287_v39 }
 0x500   :  { %5193 = vmatpush3.msra.mxu1 %v7442_v7  ;;  %5228 = vmatpush3.msra.mxu0 %v7675_v14 }
 0x501   :  { %5194 = vmatprep.subr.mxu1 %v9287_v39  ;;  %5229 = vmatprep.subr.mxu0 %v9287_v39 }
 0x502   :  { %5195 = vmatpush3.msra.mxu1 %v7448_v2  ;;  %5230 = vmatpush3.msra.mxu0 %v7681_v1 }
 0x503   :  { %5196 = vmatprep.subr.mxu1 %v9287_v39  ;;  %5231 = vmatprep.subr.mxu0 %v9287_v39 }
 0x504   :  { %5197 = vmatpush3.msra.mxu1 %v7454_v59  ;;  %5232 = vmatpush3.msra.mxu0 %v7687_v15 }
 0x505   :  { %5198 = vmatprep.subr.mxu1 %v9287_v39  ;;  %5233 = vmatprep.subr.mxu0 %v9287_v39 }
 0x506   :  { %5199 = vmatpush3.msra.mxu1 %v7460_v41  ;;  %5234 = vmatpush3.msra.mxu0 %v7693_v16 }
 0x507   :  { %5200 = vmatprep.subr.mxu1 %v9287_v39  ;;  %5235 = vmatprep.subr.mxu0 %v9287_v39 }
 0x508   :  { %5201 = vmatpush3.msra.mxu1 %v7698_v17  ;;  %5236 = vmatpush3.msra.mxu0 %v7701_v20 }
 0x509   :  { %5202 = vmatprep.subr.mxu1 %v9287_v39  ;;  %5237 = vmatprep.subr.mxu0 %v9287_v39 }
 0x50a   :  { %5203 = vmatpush3.msra.mxu1 %v7706_v21  ;;  %5238 = vmatpush3.msra.mxu0 %v7709_v42 }
 0x50b   :  { %5204 = vmatprep.subr.mxu1 %v9287_v39  ;;  %5239 = vmatprep.subr.mxu0 %v9287_v39 }
 0x50c   :  { %5205 = vmatpush3.msra.mxu1 %v7714_v23  ;;  %5240 = vmatpush3.msra.mxu0 %v7717_v11 }
 0x50d   :  { %5206 = vmatprep.subr.mxu1 %v9287_v39  ;;  %5241 = vmatprep.subr.mxu0 %v9287_v39 }
 0x50e   :  { %5207 = vmatpush3.msra.mxu1 %v7722_v24  ;;  %5242 = vmatpush3.msra.mxu0 %v7725_v25 }
 0x50f   :  { %5208 = vmatprep.subr.mxu1 %v9287_v39  ;;  %5243 = vmatprep.subr.mxu0 %v9287_v39 }
 0x510   :  { %5209 = vmatpush3.msra.mxu1 %v7730_v26  ;;  %5244 = vmatpush3.msra.mxu0 %v7733_v27 }
 0x511   :  { %5210 = vmatprep.subr.mxu1 %v9287_v39  ;;  %5245 = vmatprep.subr.mxu0 %v9287_v39 }
 0x512   :  { %5211 = vmatpush3.msra.mxu1 %v7738_v22  ;;  %5246 = vmatpush3.msra.mxu0 %v7741_v29 }
 0x513   :  { %5212 = vmatprep.subr.mxu1 %v9287_v39  ;;  %5247 = vmatprep.subr.mxu0 %v9287_v39 }
 0x514   :  { %5213 = vmatpush3.msra.mxu1 %v7746_v30  ;;  %5248 = vmatpush3.msra.mxu0 %v7749_v31 }
 0x515   :  { %5214 = vmatprep.subr.mxu1 %v9287_v39  ;;  %5249 = vmatprep.subr.mxu0 %v9287_v39 }
 0x516   :  { %5215 = vmatpush3.msra.mxu1 %v7754_v32  ;;  %5250 = vmatpush3.msra.mxu0 %v7757_v33 }
 0x517   :  { %5216 = vmatprep.subr.mxu1 %v9287_v39  ;;  %5251 = vmatprep.subr.mxu0 %v9287_v39 }
 0x518   :  { %5217 = vmatpush3.msra.mxu1 %v7762_v34  ;;  %5252 = vmatpush3.msra.mxu0 %v7765_v35 }
 0x519   :  { %5218 = vmatprep.subr.mxu1 %v9287_v39  ;;  %5253 = vmatprep.subr.mxu0 %v9287_v39 }
 0x51a   :  { %5219 = vmatpush3.msra.mxu1 %v7770_v36  ;;  %5254 = vmatpush3.msra.mxu0 %v7773_v37 }
 0x51b   :  { %5220 = vmatprep.subr.mxu1 %v9287_v39  ;;  %5255 = vmatprep.subr.mxu0 %v9287_v39 }
 0x51c   :  { %5221 = vmatpush3.msra.mxu1 %v7778_v38  ;;  %5256 = vmatpush3.msra.mxu0 %v7781_v8 }
 0x51d   :  { %5260 = vmatprep.subr.mxu1 %v9287_v39  ;;  %5257 = vmatprep.mubr.msk.f32.mxu0 %vm6723_vm0, %v9287_v39 }
 0x51e   :  { %5295 = vmatprep.subr.mxu0 %v9287_v39 }
 0x579   :  { %v1228_v61 = vpop.f32.mrf.mxu0 }
 0x57a   :  { %v1232_v62 = vadd.f32 %v1228_v61, %v268_v6 }
 0x57b   :  { %v5049_v0 = vpop.f32.mrf.mxu0 }
 0x57c   :  { %v3937_v19 = vmul.f32 -1.442695, %v1232_v62  ;;  %1239 = vrot.lane.b32.xlu1 %v1232_v62, %s6724_s22 }
 0x57e   :  { %6233 = vpow2.f32 %v3937_v19 }
 0x58b   :  { %v6234_v43 = vpop.eup %6233 }
 0x58c   :  { %v1236_v44 = vadd.f32 1.0, %v6234_v43 }
 0x58e   :  { %6235 = vrcp.f32 %v1236_v44 }
 0x599   :  { %v1389_v46 = vpop.f32.mrf.mxu0 }
 0x59b   :  { %v6236_v47 = vpop.eup %6235  ;;  %v5119_v49 = vpop.f32.mrf.mxu0 }
 0x59c   :  { %1244 = vrot.lane.b32.xlu1 %v6236_v47, %s6725_s10  ;;  %1242 = vrot.lane.b32.xlu0 %v6236_v47, %s6726_s26 }
 0x59d   :  { %v1319_v50 = vpop.f32.mrf.mxu1 }
 0x59e   :  { %v1390_v51 = vadd.f32 %v1389_v46, %v1319_v50 }
 0x59f   :  { %v5084_v52 = vpop.f32.mrf.mxu1 }
 0x5a0   :  { %v1393_v55 = vadd.f32 %v7801_v53, %v1390_v51 }
 0x5a2   :  { %v3938_v56 = vmul.f32 -1.442695, %v1393_v55  ;;  %1400 = vrot.lane.b32.xlu0 %v1393_v55, %s6724_s22 }
 0x5a4   :  { %6237 = vpow2.f32 %v3938_v56 }
 0x5b1   :  { %v6238_v58 = vpop.eup %6237 }
 0x5b2   :  { %v1397_v9 = vadd.f32 1.0, %v6238_v58 }
 0x5b4   :  { %6239 = vrcp.f32 %v1397_v9 }
 0x5b9   :  { %v1550_v10 = vpop.f32.mrf.mxu0 }
 0x5bb   :  { %v5189_v60 = vpop.f32.mrf.mxu0 }
 0x5bd   :  { %v1480_v3 = vpop.f32.mrf.mxu1 }
 0x5be   :  { %v1551_v6 = vadd.f32 %v1550_v10, %v1480_v3 }
 0x5bf   :  { %v5154_v61 = vpop.f32.mrf.mxu1 }
 0x5c0   :  { %v1554_v62 = vadd.f32 %v7524_v48, %v1551_v6  ;;  %v7823_v61 = vld [vmem:[#allocation6 + $0x78] sm:$0xff] }
 0x5c1   :  { %v6240_v0 = vpop.eup %6239 }
 0x5c2   :  { %v3939_v19 = vmul.f32 -1.442695, %v1554_v62  ;;  %1405 = vrot.lane.b32.xlu0 %v6240_v0, %s6725_s10  ;;  %1403 = vrot.lane.b32.xlu1 %v6240_v0, %s6726_s26 }
 0x5c4   :  { %6241 = vpow2.f32 %v3939_v19  ;;  %v7841_v19 = vld [vmem:[#allocation6 + $0x58] sm:$0xff] }
 0x5c6   :  { %1561 = vrot.lane.b32.xlu1 %v1554_v62, %s6724_s22  ;;  %v7837_v62 = vld [vmem:[#allocation6 + $0x60] sm:$0xff] }
 0x5d1   :  { %v6242_v43 = vpop.eup %6241 }
 0x5d2   :  { %v1558_v44 = vadd.f32 1.0, %v6242_v43  ;;  %v7845_v43 = vld [vmem:[#allocation6 + $0x50] sm:$0xff] }
 0x5d4   :  { %6243 = vrcp.f32 %v1558_v44  ;;  %v7849_v44 = vld [vmem:[#allocation6 + $0x48] sm:$0xff] }
 0x5e1   :  { %v7809_v46 = vpop.eup %6243 }
 0x5e2   :  { %1566 = vrot.lane.b32.xlu1 %v7809_v46, %s6725_s10  ;;  %1564 = vrot.lane.b32.xlu0 %v7809_v46, %s6726_s26 }
 0x5ee   :  { %v1240_v49 = vpop.permute.xlu1 %1239 }
 0x5ef   :  { %6245 = vtanh.f32 %v1240_v49 }
 0x5fc   :  { %v6246_v50 = vpop.eup %6245 }
 0x5fd   :  { %v1249_v58 = vmul.f32 %v6246_v50, %v6236_v47  ;;  %v7833_v47 = vld [vmem:[#allocation6 + $0x68] sm:$0xff]  ;;  %v7853_v50 = vld [vmem:[#allocation6 + $0x40] sm:$0xff] }
 0x5fe   :  { %9340 = vst [vmem:[#allocation34_spill] sm:$0xff] %v7853_v50 }
 0x60e   :  { %v1245_v51 = vpop.permute.xlu1 %1244  ;;  %v1243_v52 = vpop.permute.xlu0 %1242 }
 0x60f   :  { %v1246_v55 = vsel %vm7112_vm3, %v1243_v52, %v1245_v51  ;;  %v1247_v60 = vsel %vm7112_vm3, %v1245_v51, %v1243_v52 }
 0x610   :  { %v1248_v56 = vmul.f32 %v1246_v55, %v7539_v18  ;;  %v7829_v18 = vld [vmem:[#allocation6 + $0x70] sm:$0xff] }
 0x612   :  { %v7818_v9 = vadd.f32 %v1249_v58, %v1248_v56  ;;  %v7859_v56 = vld [vmem:[#allocation6 + $0x38] sm:$0xff] }
 0x614   :  { %6247 = vtanh.f32 %v7818_v9  ;;  %v1401_v6 = vpop.permute.xlu0 %1400 }
 0x615   :  { %6249 = vtanh.f32 %v1401_v6 }
 0x621   :  { %v6248_v10 = vpop.eup %6247 }
 0x622   :  { %v1252_v3 = vmul.f32 %v6248_v10, %v1247_v60  ;;  %v6250_v49 = vpop.eup %6249  ;;  %v7864_v60 = vld [vmem:[#allocation6 + $0x30] sm:$0xff] }
 0x623   :  { %v1410_v10 = vmul.f32 %v6250_v49, %v6240_v0  ;;  %v7879_v0 = vld [vmem:[#allocation6 + $0x18] sm:$0xff]  ;;  %v7883_v49 = vld [vmem:[#allocation6 + $0x10] sm:$0xff] }
 0x624   :  { %5223 = vmatmul.mubr.f32.vlgmr.msra.gmra.mxu1 %v1252_v3  ;;  %9344 = vst [vmem:[#allocation38_spill] sm:$0xff] %v7879_v0  ;;  %9345 = vst [vmem:[#allocation37_spill] sm:$0xff] %v7883_v49 }
 0x625   :  { %5261 = vmatpush3.msra.mxu1 %v7823_v61  ;;  %5292 = vmatprep.mubr.msk.f32.mxu1 %vm6723_vm0, %v9287_v39 }
 0x626   :  { %5262 = vmatprep.subr.mxu1 %v9287_v39 }
 0x627   :  { %5263 = vmatpush3.msra.mxu1 %v7829_v18 }
 0x628   :  { %5264 = vmatprep.subr.mxu1 %v9287_v39 }
 0x629   :  { %5265 = vmatpush3.msra.mxu1 %v7833_v47 }
 0x62a   :  { %5266 = vmatprep.subr.mxu1 %v9287_v39 }
 0x62b   :  { %5267 = vmatpush3.msra.mxu1 %v7837_v62 }
 0x62c   :  { %5268 = vmatprep.subr.mxu1 %v9287_v39 }
 0x62d   :  { %5269 = vmatpush3.msra.mxu1 %v7841_v19 }
 0x62e   :  { %5270 = vmatprep.subr.mxu1 %v9287_v39 }
 0x62f   :  { %5271 = vmatpush3.msra.mxu1 %v7845_v43 }
 0x630   :  { %5272 = vmatprep.subr.mxu1 %v9287_v39 }
 0x631   :  { %5273 = vmatpush3.msra.mxu1 %v7849_v44 }
 0x632   :  { %5274 = vmatprep.subr.mxu1 %v9287_v39 }
 0x633   :  { %5275 = vmatpush3.msra.mxu1 %v7853_v50  ;;  %v7870_v50 = vld [vmem:[#allocation6 + $0x28] sm:$0xff] }
 0x634   :  { %5276 = vmatprep.subr.mxu1 %v9287_v39  ;;  %v1406_v51 = vpop.permute.xlu0 %1405  ;;  %v1404_v52 = vpop.permute.xlu1 %1403  ;;  %9342 = vst [vmem:[#allocation36_spill] sm:$0xff] %v7870_v50 }
 0x635   :  { %v1407_v55 = vsel %vm7112_vm3, %v1404_v52, %v1406_v51  ;;  %5277 = vmatpush3.msra.mxu1 %v7859_v56 }
 0x636   :  { %v1409_v58 = vmul.f32 %v1407_v55, %v7566_v28  ;;  %5278 = vmatprep.subr.mxu1 %v9287_v39  ;;  %v7875_v28 = vld [vmem:[#allocation6 + $0x20] sm:$0xff]  ;;  %v7887_v55 = vld [vmem:[#allocation6 + $0x8] sm:$0xff] }
 0x637   :  { %5279 = vmatpush3.msra.mxu1 %v7864_v60  ;;  %9343 = vst [vmem:[#allocation35_spill] sm:$0xff] %v7875_v28  ;;  %9346 = vst [vmem:[#allocation40_spill] sm:$0xff] %v7887_v55 }
 0x638   :  { %v7867_v6 = vadd.f32 %v1410_v10, %v1409_v58  ;;  %5280 = vmatprep.subr.mxu1 %v9287_v39  ;;  %v1562_v58 = vpop.permute.xlu1 %1561  ;;  %v7891_v10 = vld [vmem:[#allocation6] sm:$0xff] }
 0x639   :  { %5281 = vmatpush3.msra.mxu1 %v7870_v50  ;;  %9347 = vst [vmem:[#allocation39_spill] sm:$0xff] %v7891_v10  ;;  %v7969_v50 = vld [vmem:[#allocation11 + $0x48] sm:$0xff] }
 0x63a   :  { %9341 = vst [vmem:[#allocation33_spill] sm:$0xff] %v7867_v6  ;;  %6251 = vtanh.f32 %v7867_v6  ;;  %5282 = vmatprep.subr.mxu1 %v9287_v39  ;;  %v7972_v6 = vld [vmem:[#allocation9 + $0x30] sm:$0xff] }
 0x63b   :  { %5283 = vmatpush3.msra.mxu1 %v7875_v28  ;;  %6253 = vtanh.f32 %v1562_v58  ;;  %v7903_v28 = vld [vmem:[#allocation9 + $0x70] sm:$0xff]  ;;  %v7914_v58 = vld [vmem:[#allocation11 + $0x78] sm:$0xff] }
 0x63c   :  { %5284 = vmatprep.subr.mxu1 %v9287_v39  ;;  %9349 = vst [vmem:[#allocation41_spill] sm:$0xff] %v7903_v28  ;;  %9351 = vst [vmem:[#allocation43_spill] sm:$0xff] %v7914_v58 }
 0x63d   :  { %5285 = vmatpush3.msra.mxu1 %v7879_v0  ;;  %v7895_v0 = vld [vmem:[#allocation9 + $0x78] sm:$0xff] }
 0x63e   :  { %5286 = vmatprep.subr.mxu1 %v9287_v39  ;;  %9348 = vst [vmem:[#allocation42_spill] sm:$0xff] %v7895_v0 }
 0x63f   :  { %5287 = vmatpush3.msra.mxu1 %v7883_v49  ;;  %v1408_v49 = vsel %vm7112_vm3, %v1406_v51, %v1404_v52  ;;  %v7917_v51 = vld [vmem:[#allocation9 + $0x60] sm:$0xff]  ;;  %v7922_v52 = vld [vmem:[#allocation11 + $0x70] sm:$0xff] }
 0x640   :  { %5288 = vmatprep.subr.mxu1 %v9287_v39  ;;  %9352 = vst [vmem:[#allocation45_spill] sm:$0xff] %v7917_v51  ;;  %9353 = vst [vmem:[#allocation46_spill] sm:$0xff] %v7922_v52 }
 0x641   :  { %5289 = vmatpush3.msra.mxu1 %v7887_v55 }
 0x642   :  { %5290 = vmatprep.subr.mxu1 %v9287_v39 }
 0x643   :  { %5291 = vmatpush3.msra.mxu1 %v7891_v10  ;;  %v7909_v10 = vld [vmem:[#allocation9 + $0x68] sm:$0xff] }
 0x644   :  { %5293 = vmatmul.mubr.f32.vlgmr.msra.gmra.mxu1 %v1252_v3  ;;  %5330 = vmatprep.subr.mxu1 %v9287_v39  ;;  %9350 = vst [vmem:[#allocation44_spill] sm:$0xff] %v7909_v10 }
 0x645   :  { %5331 = vmatpush3.msra.mxu1 %v7895_v0  ;;  %5362 = vmatprep.mubr.msk.f32.mxu1 %vm6723_vm0, %v9287_v39 }
 0x646   :  { %5332 = vmatprep.subr.mxu1 %v9287_v39 }
 0x647   :  { %v6252_v55 = vpop.eup %6251  ;;  %5333 = vmatpush3.msra.mxu1 %v7903_v28  ;;  %v7959_v28 = vld [vmem:[#allocation11 + $0x50] sm:$0xff] }
 0x648   :  { %v7906_v3 = vmul.f32 %v6252_v55, %v1408_v49  ;;  %5334 = vmatprep.subr.mxu1 %v9287_v39  ;;  %v7925_v49 = vld [vmem:[#allocation9 + $0x58] sm:$0xff]  ;;  %v7930_v55 = vld [vmem:[#allocation11 + $0x68] sm:$0xff]  ;;  %9361 = vst [vmem:[#allocation53_spill] sm:$0xff] %v7959_v28 }
 0x649   :  { %5335 = vmatpush3.msra.mxu1 %v7909_v10  ;;  %9354 = vst [vmem:[#allocation47_spill] sm:$0xff] %v7925_v49  ;;  %9355 = vst [vmem:[#allocation21_spill] sm:$0xff] %v7930_v55 }
 0x64a   :  { %5258 = vmatmul.mubr.f32.vlgmr.msra.gmra.mxu0 %v7906_v3  ;;  %5336 = vmatprep.subr.mxu1 %v9287_v39 }
 0x64b   :  { %5296 = vmatpush3.msra.mxu0 %v7914_v58  ;;  %5337 = vmatpush3.msra.mxu1 %v7917_v51  ;;  %v7933_v58 = vld [vmem:[#allocation9 + $0x50] sm:$0xff]  ;;  %v7946_v51 = vld [vmem:[#allocation11 + $0x58] sm:$0xff] }
 0x64c   :  { %5297 = vmatprep.subr.mxu0 %v9287_v39  ;;  %5338 = vmatprep.subr.mxu1 %v9287_v39  ;;  %9356 = vst [vmem:[#allocation48_spill] sm:$0xff] %v7933_v58  ;;  %9359 = vst [vmem:[#allocation51_spill] sm:$0xff] %v7946_v51 }
 0x64d   :  { %5298 = vmatpush3.msra.mxu0 %v7922_v52  ;;  %5339 = vmatpush3.msra.mxu1 %v7925_v49  ;;  %v7938_v52 = vld [vmem:[#allocation11 + $0x60] sm:$0xff]  ;;  %v7941_v49 = vld [vmem:[#allocation9 + $0x48] sm:$0xff] }
 0x64e   :  { %5299 = vmatprep.subr.mxu0 %v9287_v39  ;;  %5340 = vmatprep.subr.mxu1 %v9287_v39  ;;  %9357 = vst [vmem:[#allocation49_spill] sm:$0xff] %v7938_v52  ;;  %9358 = vst [vmem:[#allocation50_spill] sm:$0xff] %v7941_v49 }
 0x64f   :  { %5300 = vmatpush3.msra.mxu0 %v7930_v55  ;;  %5341 = vmatpush3.msra.mxu1 %v7933_v58  ;;  %v6254_v55 = vpop.eup %6253  ;;  %v7949_v58 = vld [vmem:[#allocation9 + $0x40] sm:$0xff] }
 0x650   :  { %5301 = vmatprep.subr.mxu0 %v9287_v39  ;;  %5342 = vmatprep.subr.mxu1 %v9287_v39  ;;  %9360 = vst [vmem:[#allocation52_spill] sm:$0xff] %v7949_v58  ;;  %v1571_v0 = vmul.f32 %v6254_v55, %v7809_v46  ;;  %v7982_v46 = vld [vmem:[#allocation9 + $0x28] sm:$0xff] }
 0x651   :  { %5302 = vmatpush3.msra.mxu0 %v7938_v52  ;;  %5343 = vmatpush3.msra.mxu1 %v7941_v49  ;;  %v8002_v55 = vld [vmem:[#allocation11 + $0x28] sm:$0xff] }
 0x652   :  { %5303 = vmatprep.subr.mxu0 %v9287_v39  ;;  %5344 = vmatprep.subr.mxu1 %v9287_v39  ;;  %9363 = vst [vmem:[#allocation55_spill] sm:$0xff] %v8002_v55 }
 0x653   :  { %5304 = vmatpush3.msra.mxu0 %v7946_v51  ;;  %5345 = vmatpush3.msra.mxu1 %v7949_v58  ;;  %v7962_v51 = vld [vmem:[#allocation9 + $0x38] sm:$0xff] }
 0x654   :  { %5305 = vmatprep.subr.mxu0 %v9287_v39  ;;  %v7953_v52 = vpop.permute.xlu1 %1566  ;;  %v1565_v10 = vpop.permute.xlu0 %1564  ;;  %5346 = vmatprep.subr.mxu1 %v9287_v39 }
 0x655   :  { %v1568_v49 = vsel %vm7112_vm3, %v1565_v10, %v7953_v52  ;;  %5306 = vmatpush3.msra.mxu0 %v7959_v28  ;;  %5347 = vmatpush3.msra.mxu1 %v7962_v51 }
 0x656   :  { %v1570_v58 = vmul.f32 %v1568_v49, %v7624_v45  ;;  %5307 = vmatprep.subr.mxu0 %v9287_v39  ;;  %5348 = vmatprep.subr.mxu1 %v9287_v39  ;;  %v7979_v45 = vld [vmem:[#allocation11 + $0x40] sm:$0xff]  ;;  %v7996_v49 = vld [vmem:[#allocation11 + $0x30] sm:$0xff] }
 0x657   :  { %5308 = vmatpush3.msra.mxu0 %v7969_v50  ;;  %5349 = vmatpush3.msra.mxu1 %v7972_v6 }
 0x658   :  { %v7975_v28 = vadd.f32 %v1571_v0, %v1570_v58  ;;  %5309 = vmatprep.subr.mxu0 %v9287_v39  ;;  %5350 = vmatprep.subr.mxu1 %v9287_v39  ;;  %v7988_v0 = vld [vmem:[#allocation11 + $0x38] sm:$0xff]  ;;  %v7991_v58 = vld [vmem:[#allocation9 + $0x20] sm:$0xff] }
 0x659   :  { %5310 = vmatpush3.msra.mxu0 %v7979_v45  ;;  %5351 = vmatpush3.msra.mxu1 %v7982_v46  ;;  %9362 = vst [vmem:[#allocation54_spill] sm:$0xff] %v7988_v0 }
 0x65a   :  { %6255 = vtanh.f32 %v7975_v28  ;;  %5311 = vmatprep.subr.mxu0 %v9287_v39  ;;  %5352 = vmatprep.subr.mxu1 %v9287_v39 }
 0x65b   :  { %5312 = vmatpush3.msra.mxu0 %v7988_v0  ;;  %5353 = vmatpush3.msra.mxu1 %v7991_v58  ;;  %v8008_v0 = vld [vmem:[#allocation11 + $0x20] sm:$0xff] }
 0x65c   :  { %5313 = vmatprep.subr.mxu0 %v9287_v39  ;;  %5354 = vmatprep.subr.mxu1 %v9287_v39  ;;  %9364 = vst [vmem:[#allocation56_spill] sm:$0xff] %v8008_v0 }
 0x65d   :  { %5314 = vmatpush3.msra.mxu0 %v7996_v49  ;;  %5355 = vmatpush3.msra.mxu1 %v9327_v54  ;;  %v8014_v54 = vld [vmem:[#allocation11 + $0x18] sm:$0xff] }
 0x65e   :  { %5315 = vmatprep.subr.mxu0 %v9287_v39  ;;  %5356 = vmatprep.subr.mxu1 %v9287_v39  ;;  %9365 = vst [vmem:[#allocation57_spill] sm:$0xff] %v8014_v54 }
 0x65f   :  { %5316 = vmatpush3.msra.mxu0 %v8002_v55  ;;  %5357 = vmatpush3.msra.mxu1 %v7402_v57  ;;  %v8020_v57 = vld [vmem:[#allocation11 + $0x10] sm:$0xff] }
 0x660   :  { %5317 = vmatprep.subr.mxu0 %v9287_v39  ;;  %5358 = vmatprep.subr.mxu1 %v9287_v39  ;;  %9366 = vst [vmem:[#allocation58_spill] sm:$0xff] %v8020_v57 }
 0x661   :  { %5318 = vmatpush3.msra.mxu0 %v8008_v0  ;;  %5359 = vmatpush3.msra.mxu1 %v7410_v5 }
 0x662   :  { %5319 = vmatprep.subr.mxu0 %v9287_v39  ;;  %5360 = vmatprep.subr.mxu1 %v9287_v39 }
 0x663   :  { %5320 = vmatpush3.msra.mxu0 %v8014_v54  ;;  %5361 = vmatpush3.msra.mxu1 %v7418_v40  ;;  %v1569_v40 = vsel %vm7112_vm3, %v7953_v52, %v1565_v10  ;;  %v8030_v54 = vld [vmem:[#allocation11 + $0x8] sm:$0xff] }
 0x664   :  { %5321 = vmatprep.subr.mxu0 %v9287_v39  ;;  %5363 = vmatmul.mubr.f32.vlgmr.msra.gmra.mxu1 %v7906_v3 }
 0x665   :  { %5322 = vmatpush3.msra.mxu0 %v8020_v57  ;;  %5327 = vmatprep.mubr.msk.f32.mxu0 %vm6723_vm0, %v9287_v39  ;;  %v8036_v57 = vld [vmem:[#allocation11] sm:$0xff] }
 0x666   :  { %5323 = vmatprep.subr.mxu0 %v9287_v39  ;;  %5400 = vmatprep.subr.mxu1 %v9287_v39 }
 0x667   :  { %v6256_v5 = vpop.eup %6255  ;;  %5324 = vmatpush3.msra.mxu0 %v8030_v54  ;;  %5401 = vmatpush3.msra.mxu1 %v7665_v12 }
 0x668   :  { %v1574_v3 = vmul.f32 %v6256_v5, %v1569_v40  ;;  %5325 = vmatprep.subr.mxu0 %v9287_v39  ;;  %5402 = vmatprep.subr.mxu1 %v9287_v39 }
 0x669   :  { %5326 = vmatpush3.msra.mxu0 %v8036_v57  ;;  %5403 = vmatpush3.msra.mxu1 %v7675_v14 }
 0x66a   :  { %5328 = vmatmul.mubr.f32.vlgmr.msra.gmra.mxu0 %v1574_v3  ;;  %5365 = vmatprep.subr.mxu0 %v9287_v39 }
 0x66b   :  { %5366 = vmatpush3.msra.mxu0 %v9331_v13  ;;  %5397 = vmatprep.mubr.msk.f32.mxu0 %vm6723_vm0, %v9287_v39 }
 0x66c   :  { %5367 = vmatprep.subr.mxu0 %v9287_v39  ;;  %5404 = vmatprep.subr.mxu1 %v9287_v39 }
 0x66d   :  { %5368 = vmatpush3.msra.mxu0 %v7442_v7  ;;  %5405 = vmatpush3.msra.mxu1 %v7681_v1 }
 0x66e   :  { %5369 = vmatprep.subr.mxu0 %v9287_v39  ;;  %5406 = vmatprep.subr.mxu1 %v9287_v39 }
 0x66f   :  { %5370 = vmatpush3.msra.mxu0 %v7448_v2  ;;  %5407 = vmatpush3.msra.mxu1 %v7687_v15 }
 0x670   :  { %5371 = vmatprep.subr.mxu0 %v9287_v39  ;;  %5408 = vmatprep.subr.mxu1 %v9287_v39 }
 0x671   :  { %5372 = vmatpush3.msra.mxu0 %v7454_v59  ;;  %5409 = vmatpush3.msra.mxu1 %v7693_v16  ;;  %v9367_v59 = vld [vmem:[#allocation23_spill] sm:$0xff] }
 0x672   :  { %5373 = vmatprep.subr.mxu0 %v9287_v39  ;;  %5410 = vmatprep.subr.mxu1 %v9287_v39  ;;  %v273_v7 = vadd.f32 %v7791_v4, %v9367_v59 }
 0x673   :  { %5374 = vmatpush3.msra.mxu0 %v7460_v41  ;;  %5411 = vmatpush3.msra.mxu1 %v7701_v20 }
 0x674   :  { %5375 = vmatprep.subr.mxu0 %v9287_v39  ;;  %5412 = vmatprep.subr.mxu1 %v9287_v39 }
 0x675   :  { %5376 = vmatpush3.msra.mxu0 %v7698_v17  ;;  %5413 = vmatpush3.msra.mxu1 %v7709_v42 }
 0x676   :  { %5377 = vmatprep.subr.mxu0 %v9287_v39  ;;  %5414 = vmatprep.subr.mxu1 %v9287_v39 }
 0x677   :  { %5378 = vmatpush3.msra.mxu0 %v7706_v21  ;;  %5415 = vmatpush3.msra.mxu1 %v7717_v11 }
 0x678   :  { %5379 = vmatprep.subr.mxu0 %v9287_v39  ;;  %5416 = vmatprep.subr.mxu1 %v9287_v39 }
 0x679   :  { %5380 = vmatpush3.msra.mxu0 %v7714_v23  ;;  %5417 = vmatpush3.msra.mxu1 %v7725_v25 }
 0x67a   :  { %5381 = vmatprep.subr.mxu0 %v9287_v39  ;;  %5418 = vmatprep.subr.mxu1 %v9287_v39 }
 0x67b   :  { %5382 = vmatpush3.msra.mxu0 %v7722_v24  ;;  %5419 = vmatpush3.msra.mxu1 %v7733_v27 }
 0x67c   :  { %5383 = vmatprep.subr.mxu0 %v9287_v39  ;;  %5420 = vmatprep.subr.mxu1 %v9287_v39 }
 0x67d   :  { %5384 = vmatpush3.msra.mxu0 %v7730_v26  ;;  %5421 = vmatpush3.msra.mxu1 %v7741_v29 }
 0x67e   :  { %5385 = vmatprep.subr.mxu0 %v9287_v39  ;;  %5422 = vmatprep.subr.mxu1 %v9287_v39 }
 0x67f   :  { %5386 = vmatpush3.msra.mxu0 %v7738_v22  ;;  %5423 = vmatpush3.msra.mxu1 %v7749_v31 }
 0x680   :  { %5387 = vmatprep.subr.mxu0 %v9287_v39  ;;  %5424 = vmatprep.subr.mxu1 %v9287_v39 }
 0x681   :  { %5388 = vmatpush3.msra.mxu0 %v7746_v30  ;;  %5425 = vmatpush3.msra.mxu1 %v7757_v33 }
 0x682   :  { %5389 = vmatprep.subr.mxu0 %v9287_v39  ;;  %5426 = vmatprep.subr.mxu1 %v9287_v39 }
 0x683   :  { %5390 = vmatpush3.msra.mxu0 %v7754_v32  ;;  %5427 = vmatpush3.msra.mxu1 %v7765_v35 }
 0x684   :  { %5391 = vmatprep.subr.mxu0 %v9287_v39  ;;  %5428 = vmatprep.subr.mxu1 %v9287_v39 }
 0x685   :  { %5392 = vmatpush3.msra.mxu0 %v7762_v34  ;;  %5429 = vmatpush3.msra.mxu1 %v7773_v37 }
 0x686   :  { %5393 = vmatprep.subr.mxu0 %v9287_v39  ;;  %5430 = vmatprep.subr.mxu1 %v9287_v39 }
 0x687   :  { %5394 = vmatpush3.msra.mxu0 %v7770_v36  ;;  %5431 = vmatpush3.msra.mxu1 %v7781_v8 }
 0x688   :  { %5395 = vmatprep.subr.mxu0 %v9287_v39  ;;  %5432 = vmatprep.mubr.msk.f32.mxu1 %vm6723_vm0, %v9287_v39 }
 0x689   :  { %5396 = vmatpush3.msra.mxu0 %v7778_v38  ;;  %5470 = vmatprep.subr.mxu1 %v9287_v39 }
 0x68a   :  { %5435 = vmatprep.subr.mxu0 %v9287_v39 }
 0x6e4   :  { %v1642_v2 = vpop.f32.mrf.mxu1 }
 0x6e5   :  { %v1646_v41 = vadd.f32 %v1642_v2, %v273_v7 }
 0x6e6   :  { %v5224_v13 = vpop.f32.mrf.mxu1 }
 0x6e7   :  { %v3940_v10 = vmul.f32 -1.442695, %v1646_v41  ;;  %1653 = vrot.lane.b32.xlu0 %v1646_v41, %s6724_s22 }
 0x6e9   :  { %6257 = vpow2.f32 %v3940_v10 }
 0x6f6   :  { %v6258_v52 = vpop.eup %6257 }
 0x6f7   :  { %v1650_v5 = vadd.f32 1.0, %v6258_v52 }
 0x6f9   :  { %6259 = vrcp.f32 %v1650_v5 }
 0x704   :  { %v1803_v40 = vpop.f32.mrf.mxu1 }
 0x706   :  { %v6260_v3 = vpop.eup %6259  ;;  %v5294_v38 = vpop.f32.mrf.mxu1 }
 0x707   :  { %1656 = vrot.lane.b32.xlu1 %v6260_v3, %s6726_s26  ;;  %1658 = vrot.lane.b32.xlu0 %v6260_v3, %s6725_s10 }
 0x70a   :  { %v1733_v36 = vpop.f32.mrf.mxu0 }
 0x70b   :  { %v1804_v8 = vadd.f32 %v1803_v40, %v1733_v36 }
 0x70c   :  { %v5259_v59 = vpop.f32.mrf.mxu0 }
 0x70d   :  { %v1807_v7 = vadd.f32 %v7801_v53, %v1804_v8 }
 0x70f   :  { %v3941_v2 = vmul.f32 -1.442695, %v1807_v7  ;;  %1814 = vrot.lane.b32.xlu1 %v1807_v7, %s6724_s22 }
 0x711   :  { %6261 = vpow2.f32 %v3941_v2 }
 0x71e   :  { %v6262_v41 = vpop.eup %6261 }
 0x71f   :  { %v1811_v13 = vadd.f32 1.0, %v6262_v41 }
 0x721   :  { %6263 = vrcp.f32 %v1811_v13 }
 0x724   :  { %v1964_v10 = vpop.f32.mrf.mxu1 }
 0x726   :  { %v5364_v52 = vpop.f32.mrf.mxu1 }
 0x72a   :  { %v1894_v5 = vpop.f32.mrf.mxu0 }
 0x72b   :  { %v1965_v38 = vadd.f32 %v1964_v10, %v1894_v5 }
 0x72c   :  { %v5329_v4 = vpop.f32.mrf.mxu0 }
 0x72d   :  { %v1968_v34 = vadd.f32 %v7524_v48, %v1965_v38 }
 0x72e   :  { %v6264_v37 = vpop.eup %6263 }
 0x72f   :  { %v3942_v32 = vmul.f32 -1.442695, %v1968_v34  ;;  %1819 = vrot.lane.b32.xlu1 %v6264_v37, %s6725_s10  ;;  %1817 = vrot.lane.b32.xlu0 %v6264_v37, %s6726_s26 }
 0x731   :  { %6265 = vpow2.f32 %v3942_v32 }
 0x733   :  { %1975 = vrot.lane.b32.xlu0 %v1968_v34, %s6724_s22 }
 0x73e   :  { %v6266_v36 = vpop.eup %6265 }
 0x73f   :  { %v1972_v8 = vadd.f32 1.0, %v6266_v36 }
 0x741   :  { %6267 = vrcp.f32 %v1972_v8 }
 0x74e   :  { %v8117_v40 = vpop.eup %6267 }
 0x74f   :  { %1980 = vrot.lane.b32.xlu0 %v8117_v40, %s6725_s10  ;;  %1978 = vrot.lane.b32.xlu1 %v8117_v40, %s6726_s26 }
 0x759   :  { %v1654_v48 = vpop.permute.xlu0 %1653 }
 0x75a   :  { %6269 = vtanh.f32 %v1654_v48  ;;  %v9369_v48 = vld [vmem:[#allocation33_spill] sm:$0xff] }
 0x767   :  { %v6270_v4 = vpop.eup %6269 }
 0x768   :  { %v1663_v34 = vmul.f32 %v6270_v4, %v6260_v3 }
 0x779   :  { %v1657_v59 = vpop.permute.xlu1 %1656  ;;  %v1659_v7 = vpop.permute.xlu0 %1658 }
 0x77a   :  { %v1660_v32 = vsel %vm7112_vm3, %v1657_v59, %v1659_v7  ;;  %v1661_v10 = vsel %vm7112_vm3, %v1659_v7, %v1657_v59  ;;  %v9370_v7 = vld [vmem:[#allocation36_spill] sm:$0xff] }
 0x77b   :  { %v1662_v2 = vmul.f32 %v1660_v32, %v7818_v9  ;;  %v9368_v9 = vld [vmem:[#allocation34_spill] sm:$0xff] }
 0x77d   :  { %v8126_v41 = vadd.f32 %v1663_v34, %v1662_v2  ;;  %v9371_v34 = vld [vmem:[#allocation35_spill] sm:$0xff]  ;;  %v9372_v2 = vld [vmem:[#allocation38_spill] sm:$0xff] }
 0x77f   :  { %6271 = vtanh.f32 %v8126_v41 }
 0x781   :  { %v1815_v5 = vpop.permute.xlu1 %1814 }
 0x782   :  { %6273 = vtanh.f32 %v1815_v5 }
 0x78c   :  { %v6272_v13 = vpop.eup %6271 }
 0x78d   :  { %v1666_v52 = vmul.f32 %v6272_v13, %v1661_v10  ;;  %v9373_v13 = vld [vmem:[#allocation37_spill] sm:$0xff]  ;;  %v9375_v10 = vld [vmem:[#allocation39_spill] sm:$0xff] }
 0x78f   :  { %5398 = vmatmul.mubr.f32.vlgmr.msra.gmra.mxu0 %v1666_v52  ;;  %v6274_v3 = vpop.eup %6273 }
 0x790   :  { %5436 = vmatpush3.msra.mxu0 %v7823_v61  ;;  %5467 = vmatprep.mubr.msk.f32.mxu0 %vm6723_vm0, %v9287_v39  ;;  %v1824_v59 = vmul.f32 %v6274_v3, %v6264_v37  ;;  %v9374_v37 = vld [vmem:[#allocation40_spill] sm:$0xff]  ;;  %v9376_v3 = vld [vmem:[#allocation42_spill] sm:$0xff] }
 0x791   :  { %5437 = vmatprep.subr.mxu0 %v9287_v39 }
 0x792   :  { %5438 = vmatpush3.msra.mxu0 %v7829_v18 }
 0x793   :  { %5439 = vmatprep.subr.mxu0 %v9287_v39 }
 0x794   :  { %5440 = vmatpush3.msra.mxu0 %v7833_v47 }
 0x795   :  { %5441 = vmatprep.subr.mxu0 %v9287_v39 }
 0x796   :  { %5442 = vmatpush3.msra.mxu0 %v7837_v62 }
 0x797   :  { %5443 = vmatprep.subr.mxu0 %v9287_v39 }
 0x798   :  { %5444 = vmatpush3.msra.mxu0 %v7841_v19 }
 0x799   :  { %5445 = vmatprep.subr.mxu0 %v9287_v39 }
 0x79a   :  { %5446 = vmatpush3.msra.mxu0 %v7845_v43 }
 0x79b   :  { %5447 = vmatprep.subr.mxu0 %v9287_v39 }
 0x79c   :  { %5448 = vmatpush3.msra.mxu0 %v7849_v44 }
 0x79d   :  { %5449 = vmatprep.subr.mxu0 %v9287_v39 }
 0x79e   :  { %5450 = vmatpush3.msra.mxu0 %v9368_v9 }
 0x79f   :  { %5451 = vmatprep.subr.mxu0 %v9287_v39 }
 0x7a0   :  { %5452 = vmatpush3.msra.mxu0 %v7859_v56 }
 0x7a1   :  { %5453 = vmatprep.subr.mxu0 %v9287_v39  ;;  %v1820_v38 = vpop.permute.xlu1 %1819  ;;  %v1818_v36 = vpop.permute.xlu0 %1817 }
 0x7a2   :  { %v1821_v8 = vsel %vm7112_vm3, %v1818_v36, %v1820_v38  ;;  %5454 = vmatpush3.msra.mxu0 %v7864_v60 }
 0x7a3   :  { %v1823_v4 = vmul.f32 %v1821_v8, %v9369_v48  ;;  %5455 = vmatprep.subr.mxu0 %v9287_v39  ;;  %v9377_v8 = vld [vmem:[#allocation41_spill] sm:$0xff] }
 0x7a4   :  { %5456 = vmatpush3.msra.mxu0 %v9370_v7 }
 0x7a5   :  { %v8157_v32 = vadd.f32 %v1824_v59, %v1823_v4  ;;  %5457 = vmatprep.subr.mxu0 %v9287_v39  ;;  %v1976_v5 = vpop.permute.xlu0 %1975  ;;  %v1822_v4 = vsel %vm7112_vm3, %v1820_v38, %v1818_v36  ;;  %v9382_v38 = vld [vmem:[#allocation46_spill] sm:$0xff]  ;;  %v9383_v36 = vld [vmem:[#allocation48_spill] sm:$0xff] }
 0x7a6   :  { %5458 = vmatpush3.msra.mxu0 %v9371_v34 }
 0x7a7   :  { %6275 = vtanh.f32 %v8157_v32  ;;  %5459 = vmatprep.subr.mxu0 %v9287_v39 }
 0x7a8   :  { %5460 = vmatpush3.msra.mxu0 %v9372_v2  ;;  %6277 = vtanh.f32 %v1976_v5  ;;  %v9381_v5 = vld [vmem:[#allocation47_spill] sm:$0xff] }
 0x7a9   :  { %5461 = vmatprep.subr.mxu0 %v9287_v39 }
 0x7aa   :  { %5462 = vmatpush3.msra.mxu0 %v9373_v13 }
 0x7ab   :  { %5463 = vmatprep.subr.mxu0 %v9287_v39 }
 0x7ac   :  { %5464 = vmatpush3.msra.mxu0 %v9374_v37 }
 0x7ad   :  { %5465 = vmatprep.subr.mxu0 %v9287_v39 }
 0x7ae   :  { %5466 = vmatpush3.msra.mxu0 %v9375_v10 }
 0x7af   :  { %5468 = vmatmul.mubr.f32.vlgmr.msra.gmra.mxu0 %v1666_v52  ;;  %5505 = vmatprep.subr.mxu0 %v9287_v39  ;;  %v9378_v52 = vld [vmem:[#allocation44_spill] sm:$0xff] }
 0x7b0   :  { %5506 = vmatpush3.msra.mxu0 %v9376_v3  ;;  %5537 = vmatprep.mubr.msk.f32.mxu0 %vm6723_vm0, %v9287_v39  ;;  %v9379_v3 = vld [vmem:[#allocation45_spill] sm:$0xff] }
 0x7b1   :  { %5507 = vmatprep.subr.mxu0 %v9287_v39 }
 0x7b2   :  { %5508 = vmatpush3.msra.mxu0 %v9377_v8  ;;  %v9380_v8 = vld [vmem:[#allocation43_spill] sm:$0xff] }
 0x7b3   :  { %5509 = vmatprep.subr.mxu0 %v9287_v39 }
 0x7b4   :  { %v6276_v48 = vpop.eup %6275  ;;  %5510 = vmatpush3.msra.mxu0 %v9378_v52 }
 0x7b5   :  { %v8180_v59 = vmul.f32 %v6276_v48, %v1822_v4  ;;  %5511 = vmatprep.subr.mxu0 %v9287_v39  ;;  %v9384_v48 = vld [vmem:[#allocation21_spill] sm:$0xff]  ;;  %v9385_v4 = vld [vmem:[#allocation50_spill] sm:$0xff] }
 0x7b6   :  { %5512 = vmatpush3.msra.mxu0 %v9379_v3  ;;  %v9389_v3 = vld [vmem:[#allocation53_spill] sm:$0xff] }
 0x7b7   :  { %5433 = vmatmul.mubr.f32.vlgmr.msra.gmra.mxu1 %v8180_v59  ;;  %5513 = vmatprep.subr.mxu0 %v9287_v39 }
 0x7b8   :  { %5471 = vmatpush3.msra.mxu1 %v9380_v8  ;;  %5514 = vmatpush3.msra.mxu0 %v9381_v5  ;;  %v9386_v8 = vld [vmem:[#allocation49_spill] sm:$0xff]  ;;  %v9387_v5 = vld [vmem:[#allocation52_spill] sm:$0xff] }
 0x7b9   :  { %5472 = vmatprep.subr.mxu1 %v9287_v39  ;;  %5515 = vmatprep.subr.mxu0 %v9287_v39 }
 0x7ba   :  { %5473 = vmatpush3.msra.mxu1 %v9382_v38  ;;  %5516 = vmatpush3.msra.mxu0 %v9383_v36  ;;  %v6278_v38 = vpop.eup %6277  ;;  %v9388_v36 = vld [vmem:[#allocation51_spill] sm:$0xff] }
 0x7bb   :  { %5474 = vmatprep.subr.mxu1 %v9287_v39  ;;  %5517 = vmatprep.subr.mxu0 %v9287_v39  ;;  %v1985_v52 = vmul.f32 %v6278_v38, %v8117_v40  ;;  %v8226_v40 = vld [vmem:[#allocation9 + $0x18] sm:$0xff]  ;;  %v9391_v38 = vld [vmem:[#allocation57_spill] sm:$0xff] }
 0x7bc   :  { %5475 = vmatpush3.msra.mxu1 %v9384_v48  ;;  %5518 = vmatpush3.msra.mxu0 %v9385_v4 }
 0x7bd   :  { %5476 = vmatprep.subr.mxu1 %v9287_v39  ;;  %5519 = vmatprep.subr.mxu0 %v9287_v39 }
 0x7be   :  { %5477 = vmatpush3.msra.mxu1 %v9386_v8  ;;  %5520 = vmatpush3.msra.mxu0 %v9387_v5 }
 0x7bf   :  { %5478 = vmatprep.subr.mxu1 %v9287_v39  ;;  %5521 = vmatprep.subr.mxu0 %v9287_v39 }
 0x7c0   :  { %5479 = vmatpush3.msra.mxu1 %v9388_v36  ;;  %5522 = vmatpush3.msra.mxu0 %v7962_v51 }
 0x7c1   :  { %5480 = vmatprep.subr.mxu1 %v9287_v39  ;;  %v1981_v48 = vpop.permute.xlu0 %1980  ;;  %v1979_v4 = vpop.permute.xlu1 %1978  ;;  %5523 = vmatprep.subr.mxu0 %v9287_v39 }
 0x7c2   :  { %v1982_v8 = vsel %vm7112_vm3, %v1979_v4, %v1981_v48  ;;  %5481 = vmatpush3.msra.mxu1 %v9389_v3  ;;  %5524 = vmatpush3.msra.mxu0 %v7972_v6 }
 0x7c3   :  { %v1984_v5 = vmul.f32 %v1982_v8, %v7975_v28  ;;  %5482 = vmatprep.subr.mxu1 %v9287_v39  ;;  %5525 = vmatprep.subr.mxu0 %v9287_v39  ;;  %v9390_v28 = vld [vmem:[#allocation54_spill] sm:$0xff] }
 0x7c4   :  { %5483 = vmatpush3.msra.mxu1 %v7969_v50  ;;  %5526 = vmatpush3.msra.mxu0 %v7982_v46  ;;  %v8232_v8 = vld [vmem:[#allocation9 + $0x10] sm:$0xff] }
 0x7c5   :  { %v8216_v36 = vadd.f32 %v1985_v52, %v1984_v5  ;;  %5484 = vmatprep.subr.mxu1 %v9287_v39  ;;  %5527 = vmatprep.subr.mxu0 %v9287_v39  ;;  %v8238_v52 = vld [vmem:[#allocation9 + $0x8] sm:$0xff]  ;;  %v8244_v5 = vld [vmem:[#allocation9] sm:$0xff] }
 0x7c6   :  { %5485 = vmatpush3.msra.mxu1 %v7979_v45  ;;  %5528 = vmatpush3.msra.mxu0 %v7991_v58 }
 0x7c7   :  { %6279 = vtanh.f32 %v8216_v36  ;;  %5486 = vmatprep.subr.mxu1 %v9287_v39  ;;  %5529 = vmatprep.subr.mxu0 %v9287_v39 }
 0x7c8   :  { %5487 = vmatpush3.msra.mxu1 %v9390_v28  ;;  %5530 = vmatpush3.msra.mxu0 %v8226_v40 }
 0x7c9   :  { %5488 = vmatprep.subr.mxu1 %v9287_v39  ;;  %5531 = vmatprep.subr.mxu0 %v9287_v39 }
 0x7ca   :  { %5489 = vmatpush3.msra.mxu1 %v7996_v49  ;;  %5532 = vmatpush3.msra.mxu0 %v8232_v8 }
 0x7cb   :  { %5490 = vmatprep.subr.mxu1 %v9287_v39  ;;  %5533 = vmatprep.subr.mxu0 %v9287_v39 }
 0x7cc   :  { %5491 = vmatpush3.msra.mxu1 %v8002_v55  ;;  %5534 = vmatpush3.msra.mxu0 %v8238_v52  ;;  %v9392_v55 = vld [vmem:[#allocation58_spill] sm:$0xff] }
 0x7cd   :  { %5492 = vmatprep.subr.mxu1 %v9287_v39  ;;  %5535 = vmatprep.subr.mxu0 %v9287_v39 }
 0x7ce   :  { %5493 = vmatpush3.msra.mxu1 %v8008_v0  ;;  %5536 = vmatpush3.msra.mxu0 %v8244_v5 }
 0x7cf   :  { %5494 = vmatprep.subr.mxu1 %v9287_v39  ;;  %5538 = vmatmul.mubr.f32.vlgmr.msra.gmra.mxu0 %v8180_v59  ;;  %v1983_v59 = vsel %vm7112_vm3, %v1981_v48, %v1979_v4 }
 0x7d0   :  { %5495 = vmatpush3.msra.mxu1 %v9391_v38  ;;  %5502 = vmatprep.mubr.msk.f32.mxu1 %vm6723_vm0, %v9287_v39 }
 0x7d1   :  { %5496 = vmatprep.subr.mxu1 %v9287_v39  ;;  %5575 = vmatprep.subr.mxu0 %v9287_v39 }
 0x7d2   :  { %5497 = vmatpush3.msra.mxu1 %v9392_v55  ;;  %5576 = vmatpush3.msra.mxu0 %v7665_v12  ;;  %v8267_v12 = vld [vmem:[#allocation3 + $0x78] sm:$0xff] }
 0x7d3   :  { %5498 = vmatprep.subr.mxu1 %v9287_v39  ;;  %5577 = vmatprep.subr.mxu0 %v9287_v39 }
 0x7d4   :  { %v6280_v0 = vpop.eup %6279  ;;  %5499 = vmatpush3.msra.mxu1 %v8030_v54  ;;  %5578 = vmatpush3.msra.mxu0 %v7675_v14  ;;  %v8274_v14 = vld [vmem:[#allocation3 + $0x70] sm:$0xff] }
 0x7d5   :  { %v1988_v38 = vmul.f32 %v6280_v0, %v1983_v59  ;;  %5500 = vmatprep.subr.mxu1 %v9287_v39  ;;  %5579 = vmatprep.subr.mxu0 %v9287_v39  ;;  %v8286_v0 = vld [vmem:[#allocation3 + $0x60] sm:$0xff] }
 0x7d6   :  { %5501 = vmatpush3.msra.mxu1 %v8036_v57  ;;  %5580 = vmatpush3.msra.mxu0 %v7681_v1  ;;  %v8280_v1 = vld [vmem:[#allocation3 + $0x68] sm:$0xff] }
 0x7d7   :  { %5503 = vmatmul.mubr.f32.vlgmr.msra.gmra.mxu1 %v1988_v38  ;;  %5540 = vmatprep.subr.mxu1 %v9287_v39 }
 0x7d8   :  { %5541 = vmatpush3.msra.mxu1 %v8267_v12  ;;  %5572 = vmatprep.mubr.msk.f32.mxu1 %vm6723_vm0, %v9287_v39 }
 0x7d9   :  { %5542 = vmatprep.subr.mxu1 %v9287_v39  ;;  %5581 = vmatprep.subr.mxu0 %v9287_v39 }
 0x7da   :  { %5543 = vmatpush3.msra.mxu1 %v8274_v14  ;;  %5582 = vmatpush3.msra.mxu0 %v7687_v15  ;;  %v8292_v15 = vld [vmem:[#allocation3 + $0x58] sm:$0xff] }
 0x7db   :  { %5544 = vmatprep.subr.mxu1 %v9287_v39  ;;  %5583 = vmatprep.subr.mxu0 %v9287_v39 }
 0x7dc   :  { %5545 = vmatpush3.msra.mxu1 %v8280_v1  ;;  %5584 = vmatpush3.msra.mxu0 %v7693_v16  ;;  %v9393_v16 = vld [vmem:[#allocation26_spill] sm:$0xff] }
 0x7dd   :  { %5546 = vmatprep.subr.mxu1 %v9287_v39  ;;  %5585 = vmatprep.subr.mxu0 %v9287_v39 }
 0x7de   :  { %5547 = vmatpush3.msra.mxu1 %v8286_v0  ;;  %5586 = vmatpush3.msra.mxu0 %v7701_v20  ;;  %v9395_v20 = vld [vmem:[#allocation28_spill] sm:$0xff] }
 0x7df   :  { %5548 = vmatprep.subr.mxu1 %v9287_v39  ;;  %5587 = vmatprep.subr.mxu0 %v9287_v39 }
 0x7e0   :  { %5549 = vmatpush3.msra.mxu1 %v8292_v15  ;;  %5588 = vmatpush3.msra.mxu0 %v7709_v42  ;;  %v9397_v42 = vld [vmem:[#allocation27_spill] sm:$0xff] }
 0x7e1   :  { %5550 = vmatprep.subr.mxu1 %v9287_v39  ;;  %5589 = vmatprep.subr.mxu0 %v9287_v39 }
 0x7e2   :  { %5551 = vmatpush3.msra.mxu1 %v7698_v17  ;;  %5590 = vmatpush3.msra.mxu0 %v7717_v11  ;;  %v9394_v17 = vld [vmem:[#allocation30_spill] sm:$0xff] }
 0x7e3   :  { %5552 = vmatprep.subr.mxu1 %v9287_v39  ;;  %5591 = vmatprep.subr.mxu0 %v9287_v39  ;;  %v9399_v11 = vld [vmem:[#allocation22_spill] sm:$0xff] }
 0x7e4   :  { %5553 = vmatpush3.msra.mxu1 %v7706_v21  ;;  %5592 = vmatpush3.msra.mxu0 %v7725_v25  ;;  %v9396_v21 = vld [vmem:[#allocation32_spill] sm:$0xff] }
 0x7e5   :  { %5554 = vmatprep.subr.mxu1 %v9287_v39  ;;  %5593 = vmatprep.subr.mxu0 %v9287_v39 }
 0x7e6   :  { %5555 = vmatpush3.msra.mxu1 %v7714_v23  ;;  %5594 = vmatpush3.msra.mxu0 %v7733_v27  ;;  %v9398_v23 = vld [vmem:[#allocation29_spill] sm:$0xff] }
 0x7e7   :  { %5556 = vmatprep.subr.mxu1 %v9287_v39  ;;  %5595 = vmatprep.subr.mxu0 %v9287_v39 }
 0x7e8   :  { %5557 = vmatpush3.msra.mxu1 %v7722_v24  ;;  %5596 = vmatpush3.msra.mxu0 %v7741_v29  ;;  %v9400_v24 = vld [vmem:[#allocation31_spill] sm:$0xff] }
 0x7e9   :  { %5558 = vmatprep.subr.mxu1 %v9287_v39  ;;  %5597 = vmatprep.subr.mxu0 %v9287_v39  ;;  %v278_v25 = vadd.f32 %v9400_v24, %v9399_v11 }
 0x7ea   :  { %5559 = vmatpush3.msra.mxu1 %v7730_v26  ;;  %5598 = vmatpush3.msra.mxu0 %v7749_v31 }
 0x7eb   :  { %5560 = vmatprep.subr.mxu1 %v9287_v39  ;;  %5599 = vmatprep.subr.mxu0 %v9287_v39 }
 0x7ec   :  { %5561 = vmatpush3.msra.mxu1 %v7738_v22  ;;  %5600 = vmatpush3.msra.mxu0 %v7757_v33 }
 0x7ed   :  { %5562 = vmatprep.subr.mxu1 %v9287_v39  ;;  %5601 = vmatprep.subr.mxu0 %v9287_v39 }
 0x7ee   :  { %5563 = vmatpush3.msra.mxu1 %v7746_v30  ;;  %5602 = vmatpush3.msra.mxu0 %v7765_v35 }
 0x7ef   :  { %5564 = vmatprep.subr.mxu1 %v9287_v39  ;;  %5603 = vmatprep.subr.mxu0 %v9287_v39 }
 0x7f0   :  { %5565 = vmatpush3.msra.mxu1 %v9393_v16  ;;  %5604 = vmatpush3.msra.mxu0 %v9394_v17 }
 0x7f1   :  { %5566 = vmatprep.subr.mxu1 %v9287_v39  ;;  %5605 = vmatprep.subr.mxu0 %v9287_v39 }
 0x7f2   :  { %5567 = vmatpush3.msra.mxu1 %v9395_v20  ;;  %5606 = vmatpush3.msra.mxu0 %v9396_v21 }
 0x7f3   :  { %5568 = vmatprep.subr.mxu1 %v9287_v39  ;;  %5607 = vmatprep.mubr.msk.f32.mxu0 %vm6723_vm0, %v9287_v39 }
 0x7f4   :  { %5569 = vmatpush3.msra.mxu1 %v9397_v42  ;;  %5645 = vmatprep.subr.mxu0 %v9287_v39 }
 0x7f5   :  { %5570 = vmatprep.subr.mxu1 %v9287_v39 }
 0x7f6   :  { %5571 = vmatpush3.msra.mxu1 %v9398_v23 }
 0x7f7   :  { %5610 = vmatprep.subr.mxu1 %v9287_v39 }
 0x84f   :  { %v2056_v26 = vpop.f32.mrf.mxu0 }
 0x850   :  { %v2060_v27 = vadd.f32 %v2056_v26, %v278_v25  ;;  %v8350_v26 = vld [vmem:[%s9172_s9] ss:$0 sm:$0xff] }
 0x851   :  { %v5399_v22 = vpop.f32.mrf.mxu0 }
 0x852   :  { %v3943_v29 = vmul.f32 -1.442695, %v2060_v27  ;;  %2067 = vrot.lane.b32.xlu1 %v2060_v27, %s6724_s22 }
 0x854   :  { %6281 = vpow2.f32 %v3943_v29 }
 0x861   :  { %v6282_v30 = vpop.eup %6281 }
 0x862   :  { %v2064_v31 = vadd.f32 1.0, %v6282_v30 }
 0x864   :  { %6283 = vrcp.f32 %v2064_v31 }
 0x86f   :  { %v2217_v33 = vpop.f32.mrf.mxu0 }
 0x871   :  { %v6284_v35 = vpop.eup %6283  ;;  %v5469_v48 = vpop.f32.mrf.mxu0 }
 0x872   :  { %2072 = vrot.lane.b32.xlu1 %v6284_v35, %s6725_s10  ;;  %2070 = vrot.lane.b32.xlu0 %v6284_v35, %s6726_s26 }
 0x877   :  { %v2147_v4 = vpop.f32.mrf.mxu1 }
 0x878   :  { %v2218_v38 = vadd.f32 %v2217_v33, %v2147_v4 }
 0x879   :  { %v5434_v59 = vpop.f32.mrf.mxu1 }
 0x87a   :  { %v2221_v16 = vadd.f32 %v7801_v53, %v2218_v38 }
 0x87c   :  { %v3944_v17 = vmul.f32 -1.442695, %v2221_v16  ;;  %2228 = vrot.lane.b32.xlu0 %v2221_v16, %s6724_s22 }
 0x87e   :  { %6285 = vpow2.f32 %v3944_v17 }
 0x88b   :  { %v6286_v20 = vpop.eup %6285 }
 0x88c   :  { %v2225_v21 = vadd.f32 1.0, %v6286_v20 }
 0x88e   :  { %6287 = vrcp.f32 %v2225_v21 }
 0x88f   :  { %v2378_v42 = vpop.f32.mrf.mxu0 }
 0x891   :  { %v5539_v23 = vpop.f32.mrf.mxu0 }
 0x897   :  { %v2308_v11 = vpop.f32.mrf.mxu1 }
 0x898   :  { %v2379_v24 = vadd.f32 %v2378_v42, %v2308_v11 }
 0x899   :  { %v5504_v25 = vpop.f32.mrf.mxu1 }
 0x89a   :  { %v2382_v27 = vadd.f32 %v8350_v26, %v2379_v24  ;;  %v9409_v24 = vld [vmem:[#allocation50_spill] sm:$0xff]  ;;  %v9410_v25 = vld [vmem:[#allocation21_spill] sm:$0xff] }
 0x89b   :  { %v6288_v53 = vpop.eup %6287 }
 0x89c   :  { %v3945_v22 = vmul.f32 -1.442695, %v2382_v27  ;;  %2233 = vrot.lane.b32.xlu0 %v6288_v53, %s6725_s10  ;;  %2231 = vrot.lane.b32.xlu1 %v6288_v53, %s6726_s26 }
 0x89e   :  { %6289 = vpow2.f32 %v3945_v22 }
 0x8a0   :  { %2389 = vrot.lane.b32.xlu1 %v2382_v27, %s6724_s22  ;;  %v9411_v27 = vld [vmem:[#allocation52_spill] sm:$0xff] }
 0x8ab   :  { %v6290_v29 = vpop.eup %6289 }
 0x8ac   :  { %v2386_v30 = vadd.f32 1.0, %v6290_v29  ;;  %v9413_v29 = vld [vmem:[#allocation51_spill] sm:$0xff] }
 0x8ae   :  { %6291 = vrcp.f32 %v2386_v30 }
 0x8bb   :  { %v8356_v31 = vpop.eup %6291 }
 0x8bc   :  { %2394 = vrot.lane.b32.xlu1 %v8356_v31, %s6725_s10  ;;  %2392 = vrot.lane.b32.xlu0 %v8356_v31, %s6726_s26 }
 0x8c4   :  { %v2068_v33 = vpop.permute.xlu1 %2067 }
 0x8c5   :  { %6293 = vtanh.f32 %v2068_v33 }
 0x8d2   :  { %v6294_v48 = vpop.eup %6293 }
 0x8d3   :  { %v2077_v17 = vmul.f32 %v6294_v48, %v6284_v35  ;;  %v9408_v35 = vld [vmem:[#allocation46_spill] sm:$0xff] }
 0x8e4   :  { %v2073_v4 = vpop.permute.xlu1 %2072  ;;  %v2071_v38 = vpop.permute.xlu0 %2070 }
 0x8e5   :  { %v2074_v59 = vsel %vm7112_vm3, %v2071_v38, %v2073_v4  ;;  %v2075_v42 = vsel %vm7112_vm3, %v2073_v4, %v2071_v38  ;;  %v6475_v38 = vld [vmem:[#allocation3 + $0x48] sm:$0xff] }
 0x8e6   :  { %v2076_v16 = vmul.f32 %v2074_v59, %v8126_v41  ;;  %v9402_v41 = vld [vmem:[#allocation41_spill] sm:$0xff]  ;;  %v6477_v59 = vld [vmem:[#allocation3 + $0x40] sm:$0xff] }
 0x8e8   :  { %v8365_v20 = vadd.f32 %v2077_v17, %v2076_v16  ;;  %v8543_v16 = vld [vmem:[#allocation8 + $0x28] sm:$0xff]  ;;  %v6479_v17 = vld [vmem:[#allocation3 + $0x38] sm:$0xff] }
 0x8ea   :  { %6295 = vtanh.f32 %v8365_v20 }
 0x8ee   :  { %v2229_v11 = vpop.permute.xlu0 %2228 }
 0x8ef   :  { %6297 = vtanh.f32 %v2229_v11  ;;  %v6483_v11 = vld [vmem:[#allocation3 + $0x28] sm:$0xff] }
 0x8f7   :  { %v6296_v21 = vpop.eup %6295 }
 0x8f8   :  { %v2080_v23 = vmul.f32 %v6296_v21, %v2075_v42  ;;  %v8548_v21 = vld [vmem:[#allocation8 + $0x20] sm:$0xff]  ;;  %v6481_v42 = vld [vmem:[#allocation3 + $0x30] sm:$0xff] }
 0x8fa   :  { %5573 = vmatmul.mubr.f32.vlgmr.msra.gmra.mxu1 %v2080_v23 }
 0x8fb   :  { %5611 = vmatpush3.msra.mxu1 %v7823_v61  ;;  %5642 = vmatprep.mubr.msk.f32.mxu1 %vm6723_vm0, %v9287_v39 }
 0x8fc   :  { %5612 = vmatprep.subr.mxu1 %v9287_v39  ;;  %v6298_v61 = vpop.eup %6297 }
 0x8fd   :  { %5613 = vmatpush3.msra.mxu1 %v7829_v18 }
 0x8fe   :  { %5614 = vmatprep.subr.mxu1 %v9287_v39 }
 0x8ff   :  { %5615 = vmatpush3.msra.mxu1 %v7833_v47 }
 0x900   :  { %5616 = vmatprep.subr.mxu1 %v9287_v39 }
 0x901   :  { %5617 = vmatpush3.msra.mxu1 %v7837_v62 }
 0x902   :  { %5618 = vmatprep.subr.mxu1 %v9287_v39 }
 0x903   :  { %5619 = vmatpush3.msra.mxu1 %v7841_v19 }
 0x904   :  { %5620 = vmatprep.subr.mxu1 %v9287_v39 }
 0x905   :  { %5621 = vmatpush3.msra.mxu1 %v7845_v43  ;;  %v2238_v43 = vmul.f32 %v6298_v61, %v6288_v53  ;;  %v9412_v53 = vld [vmem:[#allocation49_spill] sm:$0xff]  ;;  %v8558_v61 = vld [vmem:[#allocation8 + $0x10] sm:$0xff] }
 0x906   :  { %5622 = vmatprep.subr.mxu1 %v9287_v39 }
 0x907   :  { %5623 = vmatpush3.msra.mxu1 %v7849_v44 }
 0x908   :  { %5624 = vmatprep.subr.mxu1 %v9287_v39 }
 0x909   :  { %5625 = vmatpush3.msra.mxu1 %v9368_v9  ;;  %v9403_v9 = vld [vmem:[#allocation44_spill] sm:$0xff] }
 0x90a   :  { %5626 = vmatprep.subr.mxu1 %v9287_v39 }
 0x90b   :  { %5627 = vmatpush3.msra.mxu1 %v7859_v56  ;;  %v9401_v56 = vld [vmem:[#allocation42_spill] sm:$0xff] }
 0x90c   :  { %5628 = vmatprep.subr.mxu1 %v9287_v39 }
 0x90d   :  { %5629 = vmatpush3.msra.mxu1 %v7864_v60 }
 0x90e   :  { %5630 = vmatprep.subr.mxu1 %v9287_v39  ;;  %v2234_v18 = vpop.permute.xlu0 %2233  ;;  %v2232_v47 = vpop.permute.xlu1 %2231 }
 0x90f   :  { %v2235_v62 = vsel %vm7112_vm3, %v2232_v47, %v2234_v18  ;;  %5631 = vmatpush3.msra.mxu1 %v9370_v7 }
 0x910   :  { %v2237_v19 = vmul.f32 %v2235_v62, %v8157_v32  ;;  %5632 = vmatprep.subr.mxu1 %v9287_v39  ;;  %v2236_v32 = vsel %vm7112_vm3, %v2234_v18, %v2232_v47  ;;  %v6485_v18 = vld [vmem:[#allocation3 + $0x20] sm:$0xff]  ;;  %v8563_v47 = vld [vmem:[#allocation8 + $0x8] sm:$0xff]  ;;  %v6487_v62 = vld [vmem:[#allocation3 + $0x18] sm:$0xff] }
 0x911   :  { %5633 = vmatpush3.msra.mxu1 %v9371_v34  ;;  %v9404_v34 = vld [vmem:[#allocation45_spill] sm:$0xff] }
 0x912   :  { %v8398_v44 = vadd.f32 %v2238_v43, %v2237_v19  ;;  %5634 = vmatprep.subr.mxu1 %v9287_v39  ;;  %v2390_v60 = vpop.permute.xlu1 %2389  ;;  %v8568_v19 = vld [vmem:[#allocation8] sm:$0xff]  ;;  %v6489_v43 = vld [vmem:[#allocation3 + $0x10] sm:$0xff] }
 0x913   :  { %5635 = vmatpush3.msra.mxu1 %v9372_v2 }
 0x914   :  { %6299 = vtanh.f32 %v8398_v44  ;;  %5636 = vmatprep.subr.mxu1 %v9287_v39 }
 0x915   :  { %5637 = vmatpush3.msra.mxu1 %v9373_v13  ;;  %6301 = vtanh.f32 %v2390_v60  ;;  %v9405_v13 = vld [vmem:[#allocation47_spill] sm:$0xff]  ;;  %v6491_v60 = vld [vmem:[#allocation3] sm:$0xff] }
 0x916   :  { %5638 = vmatprep.subr.mxu1 %v9287_v39 }
 0x917   :  { %5639 = vmatpush3.msra.mxu1 %v9374_v37  ;;  %v9406_v37 = vld [vmem:[#allocation43_spill] sm:$0xff] }
 0x918   :  { %5640 = vmatprep.subr.mxu1 %v9287_v39 }
 0x919   :  { %5641 = vmatpush3.msra.mxu1 %v9375_v10  ;;  %v9407_v10 = vld [vmem:[#allocation48_spill] sm:$0xff] }
 0x91a   :  { %5643 = vmatmul.mubr.f32.vlgmr.msra.gmra.mxu1 %v2080_v23  ;;  %5680 = vmatprep.subr.mxu1 %v9287_v39  ;;  %v8553_v23 = vld [vmem:[#allocation8 + $0x18] sm:$0xff] }
 0x91b   :  { %5681 = vmatpush3.msra.mxu1 %v9401_v56  ;;  %5712 = vmatprep.mubr.msk.f32.mxu1 %vm6723_vm0, %v9287_v39  ;;  %v6490_v56 = vld [vmem:[#allocation3 + $0x8] sm:$0xff] }
 0x91c   :  { %5682 = vmatprep.subr.mxu1 %v9287_v39 }
 0x91d   :  { %5683 = vmatpush3.msra.mxu1 %v9402_v41  ;;  %v8581_v41 = vld [vmem:[%s9166_s3] ss:$0 sm:$0xff] }
 0x91e   :  { %5684 = vmatprep.subr.mxu1 %v9287_v39 }
 0x91f   :  { %5685 = vmatpush3.msra.mxu1 %v9403_v9  ;;  %v9417_v9 = vld [vmem:[#allocation25_spill] sm:$0xff] }
 0x920   :  { %5686 = vmatprep.subr.mxu1 %v9287_v39 }
 0x921   :  { %v6300_v7 = vpop.eup %6299  ;;  %5687 = vmatpush3.msra.mxu1 %v9404_v34 }
 0x922   :  { %v2241_v2 = vmul.f32 %v6300_v7, %v2236_v32  ;;  %5688 = vmatprep.subr.mxu1 %v9287_v39  ;;  %v6302_v22 = vpop.eup %6301  ;;  %v283_v7 = vadd.f32 %v8581_v41, %v9417_v9 }
 0x923   :  { %5689 = vmatpush3.msra.mxu1 %v9405_v13  ;;  %v2399_v4 = vmul.f32 %v6302_v22, %v8356_v31 }
 0x924   :  { %5608 = vmatmul.mubr.f32.vlgmr.msra.gmra.mxu0 %v2241_v2  ;;  %5690 = vmatprep.subr.mxu1 %v9287_v39 }
 0x925   :  { %5646 = vmatpush3.msra.mxu0 %v9406_v37  ;;  %5691 = vmatpush3.msra.mxu1 %v9407_v10 }
 0x926   :  { %5647 = vmatprep.subr.mxu0 %v9287_v39  ;;  %5692 = vmatprep.subr.mxu1 %v9287_v39 }
 0x927   :  { %5648 = vmatpush3.msra.mxu0 %v9408_v35  ;;  %5693 = vmatpush3.msra.mxu1 %v9409_v24 }
 0x928   :  { %5649 = vmatprep.subr.mxu0 %v9287_v39  ;;  %5694 = vmatprep.subr.mxu1 %v9287_v39 }
 0x929   :  { %5650 = vmatpush3.msra.mxu0 %v9410_v25  ;;  %5695 = vmatpush3.msra.mxu1 %v9411_v27 }
 0x92a   :  { %5651 = vmatprep.subr.mxu0 %v9287_v39  ;;  %5696 = vmatprep.subr.mxu1 %v9287_v39 }
 0x92b   :  { %5652 = vmatpush3.msra.mxu0 %v9412_v53  ;;  %5697 = vmatpush3.msra.mxu1 %v7962_v51 }
 0x92c   :  { %5653 = vmatprep.subr.mxu0 %v9287_v39  ;;  %5698 = vmatprep.subr.mxu1 %v9287_v39 }
 0x92d   :  { %5654 = vmatpush3.msra.mxu0 %v9413_v29  ;;  %5699 = vmatpush3.msra.mxu1 %v7972_v6  ;;  %v8591_v29 = vld [vmem:[%s9169_s6] ss:$0 sm:$0xff] }
 0x92e   :  { %5655 = vmatprep.subr.mxu0 %v9287_v39  ;;  %v2395_v30 = vpop.permute.xlu1 %2394  ;;  %v2393_v33 = vpop.permute.xlu0 %2392  ;;  %5700 = vmatprep.subr.mxu1 %v9287_v39 }
 0x92f   :  { %v2396_v48 = vsel %vm7112_vm3, %v2393_v33, %v2395_v30  ;;  %5656 = vmatpush3.msra.mxu0 %v9389_v3  ;;  %5701 = vmatpush3.msra.mxu1 %v7982_v46  ;;  %v9416_v46 = vld [vmem:[#allocation57_spill] sm:$0xff] }
 0x930   :  { %v2398_v51 = vmul.f32 %v2396_v48, %v8216_v36  ;;  %5657 = vmatprep.subr.mxu0 %v9287_v39  ;;  %5702 = vmatprep.subr.mxu1 %v9287_v39  ;;  %v2397_v36 = vsel %vm7112_vm3, %v2395_v30, %v2393_v33 }
 0x931   :  { %5658 = vmatpush3.msra.mxu0 %v7969_v50  ;;  %5703 = vmatpush3.msra.mxu1 %v7991_v58  ;;  %v9414_v50 = vld [vmem:[#allocation55_spill] sm:$0xff] }
 0x932   :  { %v8454_v6 = vadd.f32 %v2399_v4, %v2398_v51  ;;  %5659 = vmatprep.subr.mxu0 %v9287_v39  ;;  %5704 = vmatprep.subr.mxu1 %v9287_v39  ;;  %v8480_v58 = vld [vmem:[#allocation8 + $0x78] sm:$0xff] }
 0x933   :  { %5660 = vmatpush3.msra.mxu0 %v7979_v45  ;;  %5705 = vmatpush3.msra.mxu1 %v8226_v40  ;;  %v9415_v45 = vld [vmem:[#allocation56_spill] sm:$0xff] }
 0x934   :  { %6303 = vtanh.f32 %v8454_v6  ;;  %5661 = vmatprep.subr.mxu0 %v9287_v39  ;;  %5706 = vmatprep.subr.mxu1 %v9287_v39 }
 0x935   :  { %5662 = vmatpush3.msra.mxu0 %v9390_v28  ;;  %5707 = vmatpush3.msra.mxu1 %v8232_v8  ;;  %v8494_v28 = vld [vmem:[#allocation8 + $0x68] sm:$0xff] }
 0x936   :  { %5663 = vmatprep.subr.mxu0 %v9287_v39  ;;  %5708 = vmatprep.subr.mxu1 %v9287_v39 }
 0x937   :  { %5664 = vmatpush3.msra.mxu0 %v7996_v49  ;;  %5709 = vmatpush3.msra.mxu1 %v8238_v52  ;;  %v8486_v49 = vld [vmem:[#allocation8 + $0x70] sm:$0xff] }
 0x938   :  { %5665 = vmatprep.subr.mxu0 %v9287_v39  ;;  %5710 = vmatprep.subr.mxu1 %v9287_v39 }
 0x939   :  { %5666 = vmatpush3.msra.mxu0 %v9414_v50  ;;  %5711 = vmatpush3.msra.mxu1 %v8244_v5 }
 0x93a   :  { %5667 = vmatprep.subr.mxu0 %v9287_v39  ;;  %5713 = vmatmul.mubr.f32.vlgmr.msra.gmra.mxu1 %v2241_v2 }
 0x93b   :  { %5668 = vmatpush3.msra.mxu0 %v9415_v45  ;;  %5677 = vmatprep.mubr.msk.f32.mxu0 %vm6723_vm0, %v9287_v39 }
 0x93c   :  { %5669 = vmatprep.subr.mxu0 %v9287_v39  ;;  %5750 = vmatprep.subr.mxu1 %v9287_v39 }
 0x93d   :  { %5670 = vmatpush3.msra.mxu0 %v9416_v46  ;;  %5751 = vmatpush3.msra.mxu1 %v8480_v58 }
 0x93e   :  { %5671 = vmatprep.subr.mxu0 %v9287_v39  ;;  %5752 = vmatprep.subr.mxu1 %v9287_v39 }
 0x93f   :  { %5672 = vmatpush3.msra.mxu0 %v9392_v55  ;;  %5753 = vmatpush3.msra.mxu1 %v8486_v49  ;;  %v8500_v55 = vld [vmem:[#allocation8 + $0x60] sm:$0xff] }
 0x940   :  { %5673 = vmatprep.subr.mxu0 %v9287_v39  ;;  %5754 = vmatprep.subr.mxu1 %v9287_v39 }
 0x941   :  { %v6304_v3 = vpop.eup %6303  ;;  %5674 = vmatpush3.msra.mxu0 %v8030_v54  ;;  %5755 = vmatpush3.msra.mxu1 %v8494_v28  ;;  %v8510_v54 = vld [vmem:[#allocation8 + $0x58] sm:$0xff] }
 0x942   :  { %v2402_v31 = vmul.f32 %v6304_v3, %v2397_v36  ;;  %5675 = vmatprep.subr.mxu0 %v9287_v39  ;;  %5756 = vmatprep.subr.mxu1 %v9287_v39 }
 0x943   :  { %5676 = vmatpush3.msra.mxu0 %v8036_v57  ;;  %5757 = vmatpush3.msra.mxu1 %v8500_v55  ;;  %v8516_v57 = vld [vmem:[#allocation8 + $0x50] sm:$0xff] }
 0x944   :  { %5678 = vmatmul.mubr.f32.vlgmr.msra.gmra.mxu0 %v2402_v31  ;;  %5715 = vmatprep.subr.mxu0 %v9287_v39 }
 0x945   :  { %5716 = vmatpush3.msra.mxu0 %v8267_v12  ;;  %5747 = vmatprep.mubr.msk.f32.mxu0 %vm6723_vm0, %v9287_v39  ;;  %v8522_v12 = vld [vmem:[#allocation8 + $0x48] sm:$0xff] }
 0x946   :  { %5717 = vmatprep.subr.mxu0 %v9287_v39  ;;  %5758 = vmatprep.subr.mxu1 %v9287_v39 }
 0x947   :  { %5718 = vmatpush3.msra.mxu0 %v8274_v14  ;;  %5759 = vmatpush3.msra.mxu1 %v8510_v54  ;;  %v8528_v14 = vld [vmem:[#allocation8 + $0x40] sm:$0xff] }
 0x948   :  { %5719 = vmatprep.subr.mxu0 %v9287_v39  ;;  %5760 = vmatprep.subr.mxu1 %v9287_v39 }
 0x949   :  { %5720 = vmatpush3.msra.mxu0 %v8280_v1  ;;  %5761 = vmatpush3.msra.mxu1 %v8516_v57  ;;  %v6473_v1 = vld [vmem:[#allocation3 + $0x50] sm:$0xff] }
 0x94a   :  { %5721 = vmatprep.subr.mxu0 %v9287_v39  ;;  %5762 = vmatprep.subr.mxu1 %v9287_v39 }
 0x94b   :  { %5722 = vmatpush3.msra.mxu0 %v8286_v0  ;;  %5763 = vmatpush3.msra.mxu1 %v8522_v12  ;;  %v8533_v0 = vld [vmem:[#allocation8 + $0x38] sm:$0xff] }
 0x94c   :  { %5723 = vmatprep.subr.mxu0 %v9287_v39  ;;  %5764 = vmatprep.subr.mxu1 %v9287_v39 }
 0x94d   :  { %5724 = vmatpush3.msra.mxu0 %v8292_v15  ;;  %5765 = vmatpush3.msra.mxu1 %v8528_v14  ;;  %v8538_v15 = vld [vmem:[#allocation8 + $0x30] sm:$0xff] }
 0x94e   :  { %5725 = vmatprep.subr.mxu0 %v9287_v39  ;;  %5766 = vmatprep.subr.mxu1 %v9287_v39 }
 0x94f   :  { %5726 = vmatpush3.msra.mxu0 %v6473_v1  ;;  %5767 = vmatpush3.msra.mxu1 %v8533_v0 }
 0x950   :  { %5727 = vmatprep.subr.mxu0 %v9287_v39  ;;  %5768 = vmatprep.subr.mxu1 %v9287_v39 }
 0x951   :  { %5728 = vmatpush3.msra.mxu0 %v6475_v38  ;;  %5769 = vmatpush3.msra.mxu1 %v8538_v15 }
 0x952   :  { %5729 = vmatprep.subr.mxu0 %v9287_v39  ;;  %5770 = vmatprep.subr.mxu1 %v9287_v39 }
 0x953   :  { %5730 = vmatpush3.msra.mxu0 %v6477_v59  ;;  %5771 = vmatpush3.msra.mxu1 %v8543_v16 }
 0x954   :  { %5731 = vmatprep.subr.mxu0 %v9287_v39  ;;  %5772 = vmatprep.subr.mxu1 %v9287_v39 }
 0x955   :  { %5732 = vmatpush3.msra.mxu0 %v6479_v17  ;;  %5773 = vmatpush3.msra.mxu1 %v8548_v21 }
 0x956   :  { %5733 = vmatprep.subr.mxu0 %v9287_v39  ;;  %5774 = vmatprep.subr.mxu1 %v9287_v39 }
 0x957   :  { %5734 = vmatpush3.msra.mxu0 %v6481_v42  ;;  %5775 = vmatpush3.msra.mxu1 %v8553_v23 }
 0x958   :  { %5735 = vmatprep.subr.mxu0 %v9287_v39  ;;  %5776 = vmatprep.subr.mxu1 %v9287_v39 }
 0x959   :  { %5736 = vmatpush3.msra.mxu0 %v6483_v11  ;;  %5777 = vmatpush3.msra.mxu1 %v8558_v61 }
 0x95a   :  { %5737 = vmatprep.subr.mxu0 %v9287_v39  ;;  %5778 = vmatprep.subr.mxu1 %v9287_v39 }
 0x95b   :  { %5738 = vmatpush3.msra.mxu0 %v6485_v18  ;;  %5779 = vmatpush3.msra.mxu1 %v8563_v47 }
 0x95c   :  { %5739 = vmatprep.subr.mxu0 %v9287_v39  ;;  %5780 = vmatprep.subr.mxu1 %v9287_v39 }
 0x95d   :  { %5740 = vmatpush3.msra.mxu0 %v6487_v62  ;;  %5781 = vmatpush3.msra.mxu1 %v8568_v19 }
 0x95e   :  { %5741 = vmatprep.subr.mxu0 %v9287_v39  ;;  %5782 = vmatprep.mubr.msk.f32.mxu1 %vm6723_vm0, %v9287_v39 }
 0x95f   :  { %5742 = vmatpush3.msra.mxu0 %v6489_v43  ;;  %5820 = vmatprep.subr.mxu1 %v9287_v39 }
 0x960   :  { %5743 = vmatprep.subr.mxu0 %v9287_v39 }
 0x961   :  { %5744 = vmatpush3.msra.mxu0 %v6490_v56 }
 0x962   :  { %5745 = vmatprep.subr.mxu0 %v9287_v39 }
 0x963   :  { %5746 = vmatpush3.msra.mxu0 %v6491_v60 }
 0x964   :  { %5785 = vmatprep.subr.mxu0 %v9287_v39 }
 0x9ba   :  { %v2470_v32 = vpop.f32.mrf.mxu1 }
 0x9bb   :  { %v2474_v34 = vadd.f32 %v2470_v32, %v283_v7 }
 0x9bc   :  { %v5574_v2 = vpop.f32.mrf.mxu1 }
 0x9bd   :  { %v3946_v13 = vmul.f32 -1.442695, %v2474_v34  ;;  %2481 = vrot.lane.b32.xlu0 %v2474_v34, %s6724_s22  ;;  %v8617_v2 = vld [vmem:[#allocation6 + $0x78] sm:$0xff] }
 0x9bf   :  { %6305 = vpow2.f32 %v3946_v13 }
 0x9cc   :  { %v6306_v37 = vpop.eup %6305 }
 0x9cd   :  { %v2478_v10 = vadd.f32 1.0, %v6306_v37  ;;  %v8627_v37 = vld [vmem:[#allocation6 + $0x68] sm:$0xff] }
 0x9cf   :  { %6307 = vrcp.f32 %v2478_v10  ;;  %v8631_v10 = vld [vmem:[#allocation6 + $0x60] sm:$0xff] }
 0x9da   :  { %v2631_v35 = vpop.f32.mrf.mxu1 }
 0x9dc   :  { %v6308_v24 = vpop.eup %6307  ;;  %v5644_v25 = vpop.f32.mrf.mxu1 }
 0x9dd   :  { %2484 = vrot.lane.b32.xlu1 %v6308_v24, %s6726_s26  ;;  %2486 = vrot.lane.b32.xlu0 %v6308_v24, %s6725_s10  ;;  %v8643_v25 = vld [vmem:[#allocation6 + $0x48] sm:$0xff] }
 0x9e4   :  { %v2561_v27 = vpop.f32.mrf.mxu0 }
 0x9e5   :  { %v2632_v53 = vadd.f32 %v2631_v35, %v2561_v27  ;;  %v8635_v35 = vld [vmem:[#allocation6 + $0x58] sm:$0xff]  ;;  %v8647_v27 = vld [vmem:[#allocation6 + $0x40] sm:$0xff] }
 0x9e6   :  { %v5609_v22 = vpop.f32.mrf.mxu0 }
 0x9e7   :  { %v2635_v30 = vadd.f32 %v8591_v29, %v2632_v53  ;;  %v8651_v53 = vld [vmem:[#allocation6 + $0x38] sm:$0xff]  ;;  %v8655_v22 = vld [vmem:[#allocation6 + $0x30] sm:$0xff] }
 0x9e9   :  { %v3947_v33 = vmul.f32 -1.442695, %v2635_v30  ;;  %2642 = vrot.lane.b32.xlu1 %v2635_v30, %s6724_s22 }
 0x9eb   :  { %6309 = vpow2.f32 %v3947_v33  ;;  %v8659_v33 = vld [vmem:[#allocation6 + $0x28] sm:$0xff] }
 0x9f8   :  { %v6310_v48 = vpop.eup %6309 }
 0x9f9   :  { %v2639_v51 = vadd.f32 1.0, %v6310_v48 }
 0x9fa   :  { %v2792_v4 = vpop.f32.mrf.mxu1 }
 0x9fb   :  { %6311 = vrcp.f32 %v2639_v51 }
 0x9fc   :  { %v5714_v50 = vpop.f32.mrf.mxu1 }
 0x9fd   :  { %v8665_v50 = vld [vmem:[#allocation6 + $0x20] sm:$0xff] }
 0xa04   :  { %v2722_v45 = vpop.f32.mrf.mxu0 }
 0xa05   :  { %v2793_v46 = vadd.f32 %v2792_v4, %v2722_v45 }
 0xa06   :  { %v5679_v3 = vpop.f32.mrf.mxu0 }
 0xa07   :  { %v2796_v36 = vadd.f32 %v8350_v26, %v2793_v46  ;;  %v8671_v3 = vld [vmem:[#allocation6 + $0x18] sm:$0xff] }
 0xa08   :  { %v8596_v31 = vpop.eup %6311 }
 0xa09   :  { %v3948_v1 = vmul.f32 -1.442695, %v2796_v36  ;;  %2647 = vrot.lane.b32.xlu1 %v8596_v31, %s6725_s10  ;;  %2645 = vrot.lane.b32.xlu0 %v8596_v31, %s6726_s26 }
 0xa0b   :  { %6313 = vpow2.f32 %v3948_v1  ;;  %v8677_v1 = vld [vmem:[#allocation6 + $0x10] sm:$0xff] }
 0xa0d   :  { %2803 = vrot.lane.b32.xlu0 %v2796_v36, %s6724_s22 }
 0xa18   :  { %v6314_v38 = vpop.eup %6313 }
 0xa19   :  { %v2800_v59 = vadd.f32 1.0, %v6314_v38  ;;  %v8690_v38 = vld [vmem:[#allocation9 + $0x78] sm:$0xff] }
 0xa1b   :  { %6315 = vrcp.f32 %v2800_v59  ;;  %v8696_v59 = vld [vmem:[#allocation9 + $0x70] sm:$0xff] }
 0xa28   :  { %v8603_v17 = vpop.eup %6315 }
 0xa29   :  { %2808 = vrot.lane.b32.xlu0 %v8603_v17, %s6725_s10  ;;  %2806 = vrot.lane.b32.xlu1 %v8603_v17, %s6726_s26 }
 0xa2f   :  { %v2482_v42 = vpop.permute.xlu0 %2481 }
 0xa30   :  { %6317 = vtanh.f32 %v2482_v42 }
 0xa3d   :  { %v6318_v11 = vpop.eup %6317 }
 0xa3e   :  { %v2491_v56 = vmul.f32 %v6318_v11, %v6308_v24  ;;  %v8639_v24 = vld [vmem:[#allocation6 + $0x50] sm:$0xff]  ;;  %v8700_v11 = vld [vmem:[#allocation9 + $0x68] sm:$0xff] }
 0xa4f   :  { %v2485_v18 = vpop.permute.xlu1 %2484  ;;  %v2487_v62 = vpop.permute.xlu0 %2486 }
 0xa50   :  { %v2488_v43 = vsel %vm7112_vm3, %v2485_v18, %v2487_v62  ;;  %v2489_v32 = vsel %vm7112_vm3, %v2487_v62, %v2485_v18  ;;  %v8704_v18 = vld [vmem:[#allocation9 + $0x60] sm:$0xff] }
 0xa51   :  { %v2490_v60 = vmul.f32 %v2488_v43, %v8365_v20  ;;  %v8623_v20 = vld [vmem:[#allocation6 + $0x70] sm:$0xff] }
 0xa53   :  { %v8612_v9 = vadd.f32 %v2491_v56, %v2490_v60  ;;  %v8710_v56 = vld [vmem:[#allocation9 + $0x58] sm:$0xff] }
 0xa55   :  { %6319 = vtanh.f32 %v8612_v9 }
 0xa5b   :  { %v2643_v13 = vpop.permute.xlu1 %2642 }
 0xa5c   :  { %6321 = vtanh.f32 %v2643_v13  ;;  %v8729_v13 = vld [vmem:[#allocation11 + $0x70] sm:$0xff] }
 0xa5d   :  { %9419 = vst [vmem:[#allocation34_spill] sm:$0xff] %v8729_v13 }
 0xa62   :  { %v6320_v7 = vpop.eup %6319 }
 0xa63   :  { %v2494_v34 = vmul.f32 %v6320_v7, %v2489_v32  ;;  %v8716_v7 = vld [vmem:[#allocation9 + $0x50] sm:$0xff]  ;;  %v8721_v32 = vld [vmem:[#allocation11 + $0x78] sm:$0xff] }
 0xa64   :  { %9418 = vst [vmem:[#allocation23_spill] sm:$0xff] %v8721_v32 }
 0xa65   :  { %5748 = vmatmul.mubr.f32.vlgmr.msra.gmra.mxu0 %v2494_v34 }
 0xa66   :  { %5786 = vmatpush3.msra.mxu0 %v8617_v2  ;;  %5817 = vmatprep.mubr.msk.f32.mxu0 %vm6723_vm0, %v9287_v39 }
 0xa67   :  { %5787 = vmatprep.subr.mxu0 %v9287_v39 }
 0xa68   :  { %5788 = vmatpush3.msra.mxu0 %v8623_v20 }
 0xa69   :  { %5789 = vmatprep.subr.mxu0 %v9287_v39  ;;  %v6322_v30 = vpop.eup %6321 }
 0xa6a   :  { %5790 = vmatpush3.msra.mxu0 %v8627_v37  ;;  %v2652_v46 = vmul.f32 %v6322_v30, %v8596_v31  ;;  %v8686_v31 = vld [vmem:[#allocation6] sm:$0xff] }
 0xa6b   :  { %5791 = vmatprep.subr.mxu0 %v9287_v39  ;;  %v8732_v30 = vld [vmem:[#allocation9 + $0x40] sm:$0xff] }
 0xa6c   :  { %5792 = vmatpush3.msra.mxu0 %v8631_v10 }
 0xa6d   :  { %5793 = vmatprep.subr.mxu0 %v9287_v39 }
 0xa6e   :  { %5794 = vmatpush3.msra.mxu0 %v8635_v35 }
 0xa6f   :  { %5795 = vmatprep.subr.mxu0 %v9287_v39 }
 0xa70   :  { %5796 = vmatpush3.msra.mxu0 %v8639_v24 }
 0xa71   :  { %5797 = vmatprep.subr.mxu0 %v9287_v39 }
 0xa72   :  { %5798 = vmatpush3.msra.mxu0 %v8643_v25 }
 0xa73   :  { %5799 = vmatprep.subr.mxu0 %v9287_v39 }
 0xa74   :  { %5800 = vmatpush3.msra.mxu0 %v8647_v27 }
 0xa75   :  { %5801 = vmatprep.subr.mxu0 %v9287_v39 }
 0xa76   :  { %5802 = vmatpush3.msra.mxu0 %v8651_v53 }
 0xa77   :  { %5803 = vmatprep.subr.mxu0 %v9287_v39 }
 0xa78   :  { %5804 = vmatpush3.msra.mxu0 %v8655_v22 }
 0xa79   :  { %5805 = vmatprep.subr.mxu0 %v9287_v39 }
 0xa7a   :  { %5806 = vmatpush3.msra.mxu0 %v8659_v33 }
 0xa7b   :  { %5807 = vmatprep.subr.mxu0 %v9287_v39  ;;  %v2648_v48 = vpop.permute.xlu1 %2647  ;;  %v2646_v51 = vpop.permute.xlu0 %2645 }
 0xa7c   :  { %v2649_v4 = vsel %vm7112_vm3, %v2646_v51, %v2648_v48  ;;  %5808 = vmatpush3.msra.mxu0 %v8665_v50  ;;  %v2650_v43 = vsel %vm7112_vm3, %v2648_v48, %v2646_v51  ;;  %v8737_v48 = vld [vmem:[#allocation11 + $0x68] sm:$0xff]  ;;  %v8740_v51 = vld [vmem:[#allocation9 + $0x38] sm:$0xff] }
 0xa7d   :  { %v2651_v45 = vmul.f32 %v2649_v4, %v8398_v44  ;;  %5809 = vmatprep.subr.mxu0 %v9287_v39  ;;  %v8682_v44 = vld [vmem:[#allocation6 + $0x8] sm:$0xff]  ;;  %9420 = vst [vmem:[#allocation33_spill] sm:$0xff] %v8737_v48  ;;  %9421 = vst [vmem:[#allocation36_spill] sm:$0xff] %v8740_v51  ;;  %v8745_v4 = vld [vmem:[#allocation11 + $0x60] sm:$0xff] }
 0xa7e   :  { %5810 = vmatpush3.msra.mxu0 %v8671_v3  ;;  %9422 = vst [vmem:[#allocation35_spill] sm:$0xff] %v8745_v4 }
 0xa7f   :  { %v8674_v36 = vadd.f32 %v2652_v46, %v2651_v45  ;;  %5811 = vmatprep.subr.mxu0 %v9287_v39  ;;  %v2804_v42 = vpop.permute.xlu0 %2803  ;;  %v8748_v45 = vld [vmem:[#allocation9 + $0x30] sm:$0xff] }
 0xa80   :  { %5812 = vmatpush3.msra.mxu0 %v8677_v1  ;;  %9423 = vst [vmem:[#allocation38_spill] sm:$0xff] %v8748_v45 }
 0xa81   :  { %6323 = vtanh.f32 %v8674_v36  ;;  %5813 = vmatprep.subr.mxu0 %v9287_v39 }
 0xa82   :  { %5814 = vmatpush3.msra.mxu0 %v8682_v44  ;;  %6325 = vtanh.f32 %v2804_v42  ;;  %v8753_v42 = vld [vmem:[#allocation11 + $0x58] sm:$0xff] }
 0xa83   :  { %5815 = vmatprep.subr.mxu0 %v9287_v39  ;;  %9424 = vst [vmem:[#allocation37_spill] sm:$0xff] %v8753_v42 }
 0xa84   :  { %5816 = vmatpush3.msra.mxu0 %v8686_v31 }
 0xa85   :  { %5818 = vmatmul.mubr.f32.vlgmr.msra.gmra.mxu0 %v2494_v34  ;;  %5855 = vmatprep.subr.mxu0 %v9287_v39  ;;  %v8724_v34 = vld [vmem:[#allocation9 + $0x48] sm:$0xff] }
 0xa86   :  { %5856 = vmatpush3.msra.mxu0 %v8690_v38  ;;  %5887 = vmatprep.mubr.msk.f32.mxu0 %vm6723_vm0, %v9287_v39 }
 0xa87   :  { %5857 = vmatprep.subr.mxu0 %v9287_v39 }
 0xa88   :  { %5858 = vmatpush3.msra.mxu0 %v8696_v59 }
 0xa89   :  { %5859 = vmatprep.subr.mxu0 %v9287_v39 }
 0xa8a   :  { %5860 = vmatpush3.msra.mxu0 %v8700_v11 }
 0xa8b   :  { %5861 = vmatprep.subr.mxu0 %v9287_v39 }
 0xa8c   :  { %5862 = vmatpush3.msra.mxu0 %v8704_v18 }
 0xa8d   :  { %5863 = vmatprep.subr.mxu0 %v9287_v39 }
 0xa8e   :  { %v6324_v62 = vpop.eup %6323  ;;  %5864 = vmatpush3.msra.mxu0 %v8710_v56 }
 0xa8f   :  { %v8713_v60 = vmul.f32 %v6324_v62, %v2650_v43  ;;  %5865 = vmatprep.subr.mxu0 %v9287_v39  ;;  %v6326_v46 = vpop.eup %6325  ;;  %v8756_v62 = vld [vmem:[#allocation9 + $0x28] sm:$0xff] }
 0xa90   :  { %5866 = vmatpush3.msra.mxu0 %v8716_v7  ;;  %9425 = vst [vmem:[#allocation40_spill] sm:$0xff] %v8756_v62 }
 0xa91   :  { %5783 = vmatmul.mubr.f32.vlgmr.msra.gmra.mxu1 %v8713_v60  ;;  %5867 = vmatprep.subr.mxu0 %v9287_v39 }
 0xa92   :  { %5821 = vmatpush3.msra.mxu1 %v8721_v32  ;;  %5868 = vmatpush3.msra.mxu0 %v8724_v34  ;;  %v8766_v32 = vld [vmem:[#allocation9 + $0x20] sm:$0xff] }
 0xa93   :  { %5822 = vmatprep.subr.mxu1 %v9287_v39  ;;  %5869 = vmatprep.subr.mxu0 %v9287_v39 }
 0xa94   :  { %5823 = vmatpush3.msra.mxu1 %v8729_v13  ;;  %5870 = vmatpush3.msra.mxu0 %v8732_v30  ;;  %v8763_v13 = vld [vmem:[#allocation11 + $0x50] sm:$0xff] }
 0xa95   :  { %5824 = vmatprep.subr.mxu1 %v9287_v39  ;;  %5871 = vmatprep.subr.mxu0 %v9287_v39  ;;  %9426 = vst [vmem:[#allocation39_spill] sm:$0xff] %v8763_v13 }
 0xa96   :  { %5825 = vmatpush3.msra.mxu1 %v8737_v48  ;;  %5872 = vmatpush3.msra.mxu0 %v8740_v51 }
 0xa97   :  { %5826 = vmatprep.subr.mxu1 %v9287_v39  ;;  %5873 = vmatprep.subr.mxu0 %v9287_v39 }
 0xa98   :  { %5827 = vmatpush3.msra.mxu1 %v8745_v4  ;;  %5874 = vmatpush3.msra.mxu0 %v8748_v45  ;;  %v8773_v45 = vld [vmem:[#allocation11 + $0x48] sm:$0xff] }
 0xa99   :  { %5828 = vmatprep.subr.mxu1 %v9287_v39  ;;  %5875 = vmatprep.subr.mxu0 %v9287_v39 }
 0xa9a   :  { %5829 = vmatpush3.msra.mxu1 %v8753_v42  ;;  %5876 = vmatpush3.msra.mxu0 %v8756_v62  ;;  %v2813_v62 = vmul.f32 %v6326_v46, %v8603_v17  ;;  %v8819_v17 = vld [vmem:[#allocation11 + $0x10] sm:$0xff] }
 0xa9b   :  { %5830 = vmatprep.subr.mxu1 %v9287_v39  ;;  %v2809_v43 = vpop.permute.xlu0 %2808  ;;  %v2807_v4 = vpop.permute.xlu1 %2806  ;;  %5877 = vmatprep.subr.mxu0 %v9287_v39 }
 0xa9c   :  { %v2810_v48 = vsel %vm7112_vm3, %v2807_v4, %v2809_v43  ;;  %5831 = vmatpush3.msra.mxu1 %v8763_v13  ;;  %5878 = vmatpush3.msra.mxu0 %v8766_v32  ;;  %v8781_v13 = vld [vmem:[#allocation11 + $0x40] sm:$0xff] }
 0xa9d   :  { %v2812_v42 = vmul.f32 %v2810_v48, %v8454_v6  ;;  %5832 = vmatprep.subr.mxu1 %v9287_v39  ;;  %5879 = vmatprep.subr.mxu0 %v9287_v39  ;;  %v8788_v6 = vld [vmem:[#allocation11 + $0x38] sm:$0xff]  ;;  %v8827_v48 = vld [vmem:[#allocation11 + $0x8] sm:$0xff] }
 0xa9e   :  { %5833 = vmatpush3.msra.mxu1 %v8773_v45  ;;  %5880 = vmatpush3.msra.mxu0 %v8226_v40  ;;  %v8794_v40 = vld [vmem:[#allocation11 + $0x30] sm:$0xff] }
 0xa9f   :  { %v8777_v51 = vadd.f32 %v2813_v62, %v2812_v42  ;;  %5834 = vmatprep.subr.mxu1 %v9287_v39  ;;  %5881 = vmatprep.subr.mxu0 %v9287_v39 }
 0xaa0   :  { %5835 = vmatpush3.msra.mxu1 %v8781_v13  ;;  %5882 = vmatpush3.msra.mxu0 %v8232_v8  ;;  %v8800_v8 = vld [vmem:[#allocation11 + $0x28] sm:$0xff] }
 0xaa1   :  { %6327 = vtanh.f32 %v8777_v51  ;;  %5836 = vmatprep.subr.mxu1 %v9287_v39  ;;  %5883 = vmatprep.subr.mxu0 %v9287_v39 }
 0xaa2   :  { %5837 = vmatpush3.msra.mxu1 %v8788_v6  ;;  %5884 = vmatpush3.msra.mxu0 %v8238_v52  ;;  %v8807_v52 = vld [vmem:[#allocation11 + $0x20] sm:$0xff] }
 0xaa3   :  { %5838 = vmatprep.subr.mxu1 %v9287_v39  ;;  %5885 = vmatprep.subr.mxu0 %v9287_v39 }
 0xaa4   :  { %5839 = vmatpush3.msra.mxu1 %v8794_v40  ;;  %5886 = vmatpush3.msra.mxu0 %v8244_v5  ;;  %v8813_v5 = vld [vmem:[#allocation11 + $0x18] sm:$0xff] }
 0xaa5   :  { %5840 = vmatprep.subr.mxu1 %v9287_v39  ;;  %5888 = vmatmul.mubr.f32.vlgmr.msra.gmra.mxu0 %v8713_v60  ;;  %v2811_v60 = vsel %vm7112_vm3, %v2809_v43, %v2807_v4 }
 0xaa6   :  { %5841 = vmatpush3.msra.mxu1 %v8800_v8  ;;  %5852 = vmatprep.mubr.msk.f32.mxu1 %vm6723_vm0, %v9287_v39 }
 0xaa7   :  { %5842 = vmatprep.subr.mxu1 %v9287_v39  ;;  %5925 = vmatprep.subr.mxu0 %v9287_v39 }
 0xaa8   :  { %5843 = vmatpush3.msra.mxu1 %v8807_v52  ;;  %5926 = vmatpush3.msra.mxu0 %v8617_v2 }
 0xaa9   :  { %5844 = vmatprep.subr.mxu1 %v9287_v39  ;;  %5927 = vmatprep.subr.mxu0 %v9287_v39 }
 0xaaa   :  { %5845 = vmatpush3.msra.mxu1 %v8813_v5  ;;  %5928 = vmatpush3.msra.mxu0 %v8623_v20 }
 0xaab   :  { %5846 = vmatprep.subr.mxu1 %v9287_v39  ;;  %5929 = vmatprep.subr.mxu0 %v9287_v39 }
 0xaac   :  { %5847 = vmatpush3.msra.mxu1 %v8819_v17  ;;  %5930 = vmatpush3.msra.mxu0 %v8627_v37  ;;  %v8833_v37 = vld [vmem:[#allocation11] sm:$0xff] }
 0xaad   :  { %5848 = vmatprep.subr.mxu1 %v9287_v39  ;;  %5931 = vmatprep.subr.mxu0 %v9287_v39 }
 0xaae   :  { %v6328_v2 = vpop.eup %6327  ;;  %5849 = vmatpush3.msra.mxu1 %v8827_v48  ;;  %5932 = vmatpush3.msra.mxu0 %v8631_v10 }
 0xaaf   :  { %v2816_v20 = vmul.f32 %v6328_v2, %v2811_v60  ;;  %5850 = vmatprep.subr.mxu1 %v9287_v39  ;;  %5933 = vmatprep.subr.mxu0 %v9287_v39 }
 0xab0   :  { %5851 = vmatpush3.msra.mxu1 %v8833_v37  ;;  %5934 = vmatpush3.msra.mxu0 %v8635_v35 }
 0xab1   :  { %5853 = vmatmul.mubr.f32.vlgmr.msra.gmra.mxu1 %v2816_v20  ;;  %5935 = vmatprep.subr.mxu0 %v9287_v39 }
 0xab2   :  { %5936 = vmatpush3.msra.mxu0 %v8639_v24  ;;  %5890 = vmatprep.subr.mxu1 %v9287_v39 }
 0xab3   :  { %5937 = vmatprep.subr.mxu0 %v9287_v39  ;;  %5891 = vmatpush3.msra.mxu1 %v8480_v58  ;;  %v9427_v58 = vld [vmem:[#allocation24_spill] sm:$0xff] }
 0xab4   :  { %5938 = vmatpush3.msra.mxu0 %v8643_v25  ;;  %5892 = vmatprep.subr.mxu1 %v9287_v39 }
 0xab5   :  { %5939 = vmatprep.subr.mxu0 %v9287_v39  ;;  %5893 = vmatpush3.msra.mxu1 %v8486_v49  ;;  %v288_v49 = vadd.f32 %v8581_v41, %v9427_v58 }
 0xab6   :  { %5940 = vmatpush3.msra.mxu0 %v8647_v27  ;;  %5894 = vmatprep.subr.mxu1 %v9287_v39 }
 0xab7   :  { %5941 = vmatprep.subr.mxu0 %v9287_v39  ;;  %5957 = vmatprep.mubr.msk.f32.mxu0 %vm6723_vm0, %v9287_v39 }
 0xab8   :  { %5942 = vmatpush3.msra.mxu0 %v8651_v53  ;;  %5895 = vmatpush3.msra.mxu1 %v8494_v28 }
 0xab9   :  { %5943 = vmatprep.subr.mxu0 %v9287_v39  ;;  %5896 = vmatprep.subr.mxu1 %v9287_v39 }
 0xaba   :  { %5944 = vmatpush3.msra.mxu0 %v8655_v22  ;;  %5897 = vmatpush3.msra.mxu1 %v8500_v55 }
 0xabb   :  { %5945 = vmatprep.subr.mxu0 %v9287_v39  ;;  %5898 = vmatprep.subr.mxu1 %v9287_v39 }
 0xabc   :  { %5946 = vmatpush3.msra.mxu0 %v8659_v33  ;;  %5899 = vmatpush3.msra.mxu1 %v8510_v54 }
 0xabd   :  { %5947 = vmatprep.subr.mxu0 %v9287_v39  ;;  %5900 = vmatprep.subr.mxu1 %v9287_v39 }
 0xabe   :  { %5948 = vmatpush3.msra.mxu0 %v8665_v50  ;;  %5901 = vmatpush3.msra.mxu1 %v8516_v57 }
 0xabf   :  { %5949 = vmatprep.subr.mxu0 %v9287_v39  ;;  %5902 = vmatprep.subr.mxu1 %v9287_v39 }
 0xac0   :  { %5950 = vmatpush3.msra.mxu0 %v8671_v3  ;;  %5903 = vmatpush3.msra.mxu1 %v8522_v12 }
 0xac1   :  { %5951 = vmatprep.subr.mxu0 %v9287_v39  ;;  %5904 = vmatprep.subr.mxu1 %v9287_v39 }
 0xac2   :  { %5952 = vmatpush3.msra.mxu0 %v8677_v1  ;;  %5905 = vmatpush3.msra.mxu1 %v8528_v14 }
 0xac3   :  { %5953 = vmatprep.subr.mxu0 %v9287_v39  ;;  %5906 = vmatprep.subr.mxu1 %v9287_v39 }
 0xac4   :  { %5954 = vmatpush3.msra.mxu0 %v8682_v44  ;;  %5907 = vmatpush3.msra.mxu1 %v8533_v0 }
 0xac5   :  { %5955 = vmatprep.subr.mxu0 %v9287_v39  ;;  %5908 = vmatprep.subr.mxu1 %v9287_v39 }
 0xac6   :  { %5956 = vmatpush3.msra.mxu0 %v8686_v31  ;;  %5909 = vmatpush3.msra.mxu1 %v8538_v15 }
 0xac7   :  { %5995 = vmatprep.subr.mxu0 %v9287_v39  ;;  %5910 = vmatprep.subr.mxu1 %v9287_v39 }
 0xac8   :  { %5911 = vmatpush3.msra.mxu1 %v8543_v16  ;;  %5922 = vmatprep.mubr.msk.f32.mxu1 %vm6723_vm0, %v9287_v39 }
 0xac9   :  { %5912 = vmatprep.subr.mxu1 %v9287_v39 }
 0xaca   :  { %5913 = vmatpush3.msra.mxu1 %v8548_v21 }
 0xacb   :  { %5914 = vmatprep.subr.mxu1 %v9287_v39 }
 0xacc   :  { %5915 = vmatpush3.msra.mxu1 %v8553_v23 }
 0xacd   :  { %5916 = vmatprep.subr.mxu1 %v9287_v39 }
 0xace   :  { %5917 = vmatpush3.msra.mxu1 %v8558_v61 }
 0xacf   :  { %5918 = vmatprep.subr.mxu1 %v9287_v39 }
 0xad0   :  { %5919 = vmatpush3.msra.mxu1 %v8563_v47 }
 0xad1   :  { %5920 = vmatprep.subr.mxu1 %v9287_v39 }
 0xad2   :  { %5921 = vmatpush3.msra.mxu1 %v8568_v19 }
 0xad3   :  { %5960 = vmatprep.subr.mxu1 %v9287_v39 }
 0xb25   :  { %v2884_v28 = vpop.f32.mrf.mxu0 }
 0xb26   :  { %v2888_v55 = vadd.f32 %v2884_v28, %v288_v49 }
 0xb27   :  { %v5749_v54 = vpop.f32.mrf.mxu0 }
 0xb28   :  { %v3949_v57 = vmul.f32 -1.442695, %v2888_v55  ;;  %2895 = vrot.lane.b32.xlu1 %v2888_v55, %s6724_s22 }
 0xb2a   :  { %6329 = vpow2.f32 %v3949_v57 }
 0xb37   :  { %v6330_v12 = vpop.eup %6329 }
 0xb38   :  { %v2892_v14 = vadd.f32 1.0, %v6330_v12 }
 0xb3a   :  { %6331 = vrcp.f32 %v2892_v14 }
 0xb45   :  { %v3045_v0 = vpop.f32.mrf.mxu0 }
 0xb47   :  { %v6332_v15 = vpop.eup %6331  ;;  %v5819_v16 = vpop.f32.mrf.mxu0 }
 0xb48   :  { %2898 = vrot.lane.b32.xlu1 %v6332_v15, %s6726_s26  ;;  %v9430_v16 = vld [vmem:[#allocation40_spill] sm:$0xff] }
 0xb51   :  { %v2975_v21 = vpop.f32.mrf.mxu1 }
 0xb52   :  { %v3046_v23 = vadd.f32 %v3045_v0, %v2975_v21  ;;  %v9429_v0 = vld [vmem:[#allocation38_spill] sm:$0xff] }
 0xb53   :  { %v5784_v61 = vpop.f32.mrf.mxu1 }
 0xb54   :  { %v3049_v47 = vadd.f32 %v8591_v29, %v3046_v23  ;;  %v8953_v61 = vld [vmem:[#allocation9 + $0x18] sm:$0xff] }
 0xb56   :  { %v3950_v19 = vmul.f32 -1.442695, %v3049_v47  ;;  %3056 = vrot.lane.b32.xlu0 %v3049_v47, %s6724_s22 }
 0xb58   :  { %6333 = vpow2.f32 %v3950_v19  ;;  %v8957_v19 = vld [vmem:[#allocation9 + $0x10] sm:$0xff] }
 0xb5a   :  { %2900 = vrot.lane.b32.xlu0 %v6332_v15, %s6725_s10 }
 0xb65   :  { %v6334_v41 = vpop.eup %6333  ;;  %v3206_v10 = vpop.f32.mrf.mxu0 }
 0xb66   :  { %v3053_v35 = vadd.f32 1.0, %v6334_v41  ;;  %v9431_v41 = vld [vmem:[#allocation23_spill] sm:$0xff] }
 0xb67   :  { %v5889_v24 = vpop.f32.mrf.mxu0 }
 0xb68   :  { %6335 = vrcp.f32 %v3053_v35  ;;  %v9432_v35 = vld [vmem:[#allocation34_spill] sm:$0xff]  ;;  %v8968_v24 = vld [vmem:[#allocation9] sm:$0xff] }
 0xb71   :  { %v3136_v25 = vpop.f32.mrf.mxu1 }
 0xb72   :  { %v3207_v27 = vadd.f32 %v3206_v10, %v3136_v25  ;;  %v8962_v10 = vld [vmem:[#allocation9 + $0x8] sm:$0xff] }
 0xb73   :  { %v5854_v53 = vpop.f32.mrf.mxu1  ;;  %v9433_v25 = vld [vmem:[#allocation33_spill] sm:$0xff] }
 0xb74   :  { %v3210_v22 = vadd.f32 %v8350_v26, %v3207_v27  ;;  %v9434_v27 = vld [vmem:[#allocation35_spill] sm:$0xff] }
 0xb75   :  { %v6336_v33 = vpop.eup %6335 }
 0xb76   :  { %v3951_v50 = vmul.f32 -1.442695, %v3210_v22  ;;  %3061 = vrot.lane.b32.xlu0 %v6336_v33, %s6725_s10  ;;  %3059 = vrot.lane.b32.xlu1 %v6336_v33, %s6726_s26 }
 0xb78   :  { %6337 = vpow2.f32 %v3951_v50 }
 0xb7a   :  { %3217 = vrot.lane.b32.xlu1 %v3210_v22, %s6724_s22  ;;  %v9435_v22 = vld [vmem:[#allocation37_spill] sm:$0xff] }
 0xb85   :  { %v6338_v3 = vpop.eup %6337 }
 0xb86   :  { %v3214_v1 = vadd.f32 1.0, %v6338_v3 }
 0xb88   :  { %6339 = vrcp.f32 %v3214_v1  ;;  %v9436_v1 = vld [vmem:[#allocation39_spill] sm:$0xff] }
 0xb95   :  { %v8908_v44 = vpop.eup %6339 }
 0xb96   :  { %3222 = vrot.lane.b32.xlu1 %v8908_v44, %s6725_s10  ;;  %3220 = vrot.lane.b32.xlu0 %v8908_v44, %s6726_s26 }
 0xb9a   :  { %v2896_v26 = vpop.permute.xlu1 %2895 }
 0xb9b   :  { %6341 = vtanh.f32 %v2896_v26 }
 0xba8   :  { %v6342_v4 = vpop.eup %6341 }
 0xba9   :  { %v2905_v43 = vmul.f32 %v6342_v4, %v6332_v15 }
 0xbba   :  { %v2899_v46 = vpop.permute.xlu1 %2898 }
 0xbc8   :  { %v3057_v31 = vpop.permute.xlu0 %3056 }
 0xbcc   :  { %v2901_v42 = vpop.permute.xlu0 %2900 }
 0xbcd   :  { %v2902_v62 = vsel %vm7112_vm3, %v2899_v46, %v2901_v42  ;;  %v2903_v58 = vsel %vm7112_vm3, %v2901_v42, %v2899_v46 }
 0xbce   :  { %v2904_v2 = vmul.f32 %v2902_v62, %v8612_v9 }
 0xbd0   :  { %v2906_v60 = vadd.f32 %v2905_v43, %v2904_v2 }
 0xbd2   :  { %6343 = vtanh.f32 %v2906_v60 }
 0xbd3   :  { %6345 = vtanh.f32 %v3057_v31 }
 0xbdf   :  { %v6344_v20 = vpop.eup %6343 }
 0xbe0   :  { %v2908_v49 = vmul.f32 %v6344_v20, %v2903_v58  ;;  %v6346_v9 = vpop.eup %6345 }
 0xbe1   :  { %v3066_v12 = vmul.f32 %v6346_v9, %v6336_v33 }
 0xbe2   :  { %5958 = vmatmul.mubr.f32.vlgmr.msra.gmra.mxu0 %v2908_v49 }
 0xbe3   :  { %5996 = vmatpush3.msra.mxu0 %v8690_v38  ;;  %6027 = vmatprep.mubr.msk.f32.mxu0 %vm6723_vm0, %v9287_v39 }
 0xbe4   :  { %5997 = vmatprep.subr.mxu0 %v9287_v39 }
 0xbe5   :  { %5998 = vmatpush3.msra.mxu0 %v8696_v59 }
 0xbe6   :  { %5999 = vmatprep.subr.mxu0 %v9287_v39 }
 0xbe7   :  { %6000 = vmatpush3.msra.mxu0 %v8700_v11 }
 0xbe8   :  { %6001 = vmatprep.subr.mxu0 %v9287_v39  ;;  %v3062_v28 = vpop.permute.xlu0 %3061  ;;  %v3060_v55 = vpop.permute.xlu1 %3059 }
 0xbe9   :  { %6002 = vmatpush3.msra.mxu0 %v8704_v18  ;;  %v3063_v54 = vsel %vm7112_vm3, %v3060_v55, %v3062_v28  ;;  %v3064_v23 = vsel %vm7112_vm3, %v3062_v28, %v3060_v55 }
 0xbea   :  { %v3065_v57 = vmul.f32 %v3063_v54, %v8674_v36  ;;  %6003 = vmatprep.subr.mxu0 %v9287_v39  ;;  %v9428_v36 = vld [vmem:[#allocation36_spill] sm:$0xff] }
 0xbeb   :  { %6004 = vmatpush3.msra.mxu0 %v8710_v56 }
 0xbec   :  { %v8933_v14 = vadd.f32 %v3066_v12, %v3065_v57  ;;  %6005 = vmatprep.subr.mxu0 %v9287_v39  ;;  %v3218_v15 = vpop.permute.xlu1 %3217 }
 0xbed   :  { %6006 = vmatpush3.msra.mxu0 %v8716_v7 }
 0xbee   :  { %6347 = vtanh.f32 %v8933_v14  ;;  %6007 = vmatprep.subr.mxu0 %v9287_v39 }
 0xbef   :  { %6008 = vmatpush3.msra.mxu0 %v8724_v34  ;;  %6349 = vtanh.f32 %v3218_v15 }
 0xbf0   :  { %6009 = vmatprep.subr.mxu0 %v9287_v39 }
 0xbf1   :  { %6010 = vmatpush3.msra.mxu0 %v8732_v30 }
 0xbf2   :  { %6011 = vmatprep.subr.mxu0 %v9287_v39 }
 0xbf3   :  { %6012 = vmatpush3.msra.mxu0 %v9428_v36 }
 0xbf4   :  { %6013 = vmatprep.subr.mxu0 %v9287_v39 }
 0xbf5   :  { %6014 = vmatpush3.msra.mxu0 %v9429_v0 }
 0xbf6   :  { %6015 = vmatprep.subr.mxu0 %v9287_v39 }
 0xbf7   :  { %6016 = vmatpush3.msra.mxu0 %v9430_v16 }
 0xbf8   :  { %6017 = vmatprep.subr.mxu0 %v9287_v39 }
 0xbf9   :  { %6018 = vmatpush3.msra.mxu0 %v8766_v32 }
 0xbfa   :  { %6019 = vmatprep.subr.mxu0 %v9287_v39 }
 0xbfb   :  { %v6348_v21 = vpop.eup %6347  ;;  %6020 = vmatpush3.msra.mxu0 %v8953_v61 }
 0xbfc   :  { %v3069_v47 = vmul.f32 %v6348_v21, %v3064_v23  ;;  %6021 = vmatprep.subr.mxu0 %v9287_v39  ;;  %v6350_v53 = vpop.eup %6349 }
 0xbfd   :  { %6022 = vmatpush3.msra.mxu0 %v8957_v19  ;;  %v3227_v26 = vmul.f32 %v6350_v53, %v8908_v44 }
 0xbfe   :  { %6023 = vmatprep.subr.mxu0 %v9287_v39  ;;  %5923 = vmatmul.mubr.f32.vlgmr.msra.gmra.mxu1 %v3069_v47 }
 0xbff   :  { %5961 = vmatpush3.msra.mxu1 %v9431_v41  ;;  %6024 = vmatpush3.msra.mxu0 %v8962_v10 }
 0xc00   :  { %5962 = vmatprep.subr.mxu1 %v9287_v39  ;;  %6025 = vmatprep.subr.mxu0 %v9287_v39 }
 0xc01   :  { %5963 = vmatpush3.msra.mxu1 %v9432_v35  ;;  %6026 = vmatpush3.msra.mxu0 %v8968_v24 }
 0xc02   :  { %5964 = vmatprep.subr.mxu1 %v9287_v39  ;;  %6028 = vmatmul.mubr.f32.vlgmr.msra.gmra.mxu0 %v3069_v47 }
 0xc03   :  { %5965 = vmatpush3.msra.mxu1 %v9433_v25  ;;  %5992 = vmatprep.mubr.msk.f32.mxu1 %vm6723_vm0, %v9287_v39 }
 0xc04   :  { %5966 = vmatprep.subr.mxu1 %v9287_v39  ;;  %6065 = vmatprep.subr.mxu0 %v9287_v39 }
 0xc05   :  { %5967 = vmatpush3.msra.mxu1 %v9434_v27  ;;  %6066 = vmatpush3.msra.mxu0 %v8690_v38 }
 0xc06   :  { %5968 = vmatprep.subr.mxu1 %v9287_v39  ;;  %6067 = vmatprep.subr.mxu0 %v9287_v39 }
 0xc07   :  { %5969 = vmatpush3.msra.mxu1 %v9435_v22  ;;  %6068 = vmatpush3.msra.mxu0 %v8696_v59 }
 0xc08   :  { %5970 = vmatprep.subr.mxu1 %v9287_v39  ;;  %v3223_v33 = vpop.permute.xlu1 %3222  ;;  %v3221_v50 = vpop.permute.xlu0 %3220  ;;  %6069 = vmatprep.subr.mxu0 %v9287_v39 }
 0xc09   :  { %v3224_v3 = vsel %vm7112_vm3, %v3221_v50, %v3223_v33  ;;  %5971 = vmatpush3.msra.mxu1 %v9436_v1  ;;  %6070 = vmatpush3.msra.mxu0 %v8700_v11 }
 0xc0a   :  { %v3226_v38 = vmul.f32 %v3224_v3, %v8777_v51  ;;  %5972 = vmatprep.subr.mxu1 %v9287_v39  ;;  %6071 = vmatprep.subr.mxu0 %v9287_v39 }
 0xc0b   :  { %5973 = vmatpush3.msra.mxu1 %v8773_v45  ;;  %6072 = vmatpush3.msra.mxu0 %v8704_v18  ;;  %v3225_v18 = vsel %vm7112_vm3, %v3223_v33, %v3221_v50 }
 0xc0c   :  { %v8995_v59 = vadd.f32 %v3227_v26, %v3226_v38  ;;  %5974 = vmatprep.subr.mxu1 %v9287_v39  ;;  %6073 = vmatprep.subr.mxu0 %v9287_v39  ;;  %v3724_v26 = vld [vmem:[#allocation12 + $0x50] sm:$0xff] }
 0xc0d   :  { %5975 = vmatpush3.msra.mxu1 %v8781_v13  ;;  %6074 = vmatpush3.msra.mxu0 %v8710_v56 }
 0xc0e   :  { %6351 = vtanh.f32 %v8995_v59  ;;  %5976 = vmatprep.subr.mxu1 %v9287_v39  ;;  %6075 = vmatprep.subr.mxu0 %v9287_v39 }
 0xc0f   :  { %5977 = vmatpush3.msra.mxu1 %v8788_v6  ;;  %6076 = vmatpush3.msra.mxu0 %v8716_v7 }
 0xc10   :  { %5978 = vmatprep.subr.mxu1 %v9287_v39  ;;  %6077 = vmatprep.subr.mxu0 %v9287_v39 }
 0xc11   :  { %5979 = vmatpush3.msra.mxu1 %v8794_v40  ;;  %6078 = vmatpush3.msra.mxu0 %v8724_v34 }
 0xc12   :  { %5980 = vmatprep.subr.mxu1 %v9287_v39  ;;  %6079 = vmatprep.subr.mxu0 %v9287_v39 }
 0xc13   :  { %5981 = vmatpush3.msra.mxu1 %v8800_v8  ;;  %6080 = vmatpush3.msra.mxu0 %v8732_v30 }
 0xc14   :  { %5982 = vmatprep.subr.mxu1 %v9287_v39  ;;  %6081 = vmatprep.subr.mxu0 %v9287_v39 }
 0xc15   :  { %5983 = vmatpush3.msra.mxu1 %v8807_v52  ;;  %6082 = vmatpush3.msra.mxu0 %v9428_v36 }
 0xc16   :  { %5984 = vmatprep.subr.mxu1 %v9287_v39  ;;  %6083 = vmatprep.subr.mxu0 %v9287_v39 }
 0xc17   :  { %5985 = vmatpush3.msra.mxu1 %v8813_v5  ;;  %6084 = vmatpush3.msra.mxu0 %v9429_v0 }
 0xc18   :  { %5986 = vmatprep.subr.mxu1 %v9287_v39  ;;  %6085 = vmatprep.subr.mxu0 %v9287_v39 }
 0xc19   :  { %5987 = vmatpush3.msra.mxu1 %v8819_v17  ;;  %6086 = vmatpush3.msra.mxu0 %v9430_v16 }
 0xc1a   :  { %5988 = vmatprep.subr.mxu1 %v9287_v39  ;;  %6087 = vmatprep.subr.mxu0 %v9287_v39 }
 0xc1b   :  { %v6352_v11 = vpop.eup %6351  ;;  %5989 = vmatpush3.msra.mxu1 %v8827_v48  ;;  %6088 = vmatpush3.msra.mxu0 %v8766_v32 }
 0xc1c   :  { %v3230_v56 = vmul.f32 %v6352_v11, %v3225_v18  ;;  %5990 = vmatprep.subr.mxu1 %v9287_v39  ;;  %6089 = vmatprep.subr.mxu0 %v9287_v39  ;;  %v3722_v11 = vld [vmem:[#allocation12 + $0x40] sm:$0xff]  ;;  %v3721_v18 = vld [vmem:[#allocation12 + $0x38] sm:$0xff] }
 0xc1d   :  { %5991 = vmatpush3.msra.mxu1 %v8833_v37  ;;  %6090 = vmatpush3.msra.mxu0 %v8953_v61 }
 0xc1e   :  { %5993 = vmatmul.mubr.f32.vlgmr.msra.gmra.mxu1 %v3230_v56  ;;  %6091 = vmatprep.subr.mxu0 %v9287_v39  ;;  %v3720_v56 = vld [vmem:[#allocation12 + $0x30] sm:$0xff] }
 0xc1f   :  { %6092 = vmatpush3.msra.mxu0 %v8957_v19  ;;  %6030 = vmatprep.subr.mxu1 %v9287_v39 }
 0xc20   :  { %6093 = vmatprep.subr.mxu0 %v9287_v39  ;;  %6031 = vmatpush3.msra.mxu1 %v9431_v41 }
 0xc21   :  { %6094 = vmatpush3.msra.mxu0 %v8962_v10  ;;  %6032 = vmatprep.subr.mxu1 %v9287_v39  ;;  %v3729_v10 = vld [vmem:[#allocation12 + $0x78] sm:$0xff] }
 0xc22   :  { %6095 = vmatprep.subr.mxu0 %v9287_v39  ;;  %6033 = vmatpush3.msra.mxu1 %v9432_v35  ;;  %v3728_v35 = vld [vmem:[#allocation12 + $0x70] sm:$0xff] }
 0xc23   :  { %6096 = vmatpush3.msra.mxu0 %v8968_v24  ;;  %6097 = vmatprep.mubr.msk.f32.mxu0 %vm6723_vm0, %v9287_v39  ;;  %v3727_v24 = vld [vmem:[#allocation12 + $0x68] sm:$0xff] }
 0xc24   :  { %6034 = vmatprep.subr.mxu1 %v9287_v39  ;;  %6062 = vmatprep.mubr.msk.f32.mxu1 %vm6723_vm0, %v9287_v39 }
 0xc25   :  { %6035 = vmatpush3.msra.mxu1 %v9433_v25  ;;  %6135 = vmatprep.subr.mxu0 %v9287_v39  ;;  %v3726_v25 = vld [vmem:[#allocation12 + $0x60] sm:$0xff] }
 0xc26   :  { %6036 = vmatprep.subr.mxu1 %v9287_v39 }
 0xc27   :  { %6037 = vmatpush3.msra.mxu1 %v9434_v27  ;;  %v3725_v27 = vld [vmem:[#allocation12 + $0x58] sm:$0xff] }
 0xc28   :  { %6038 = vmatprep.subr.mxu1 %v9287_v39 }
 0xc29   :  { %6039 = vmatpush3.msra.mxu1 %v9435_v22 }
 0xc2a   :  { %6040 = vmatprep.subr.mxu1 %v9287_v39 }
 0xc2b   :  { %6041 = vmatpush3.msra.mxu1 %v9436_v1 }
 0xc2c   :  { %6042 = vmatprep.subr.mxu1 %v9287_v39 }
 0xc2d   :  { %6043 = vmatpush3.msra.mxu1 %v8773_v45 }
 0xc2e   :  { %6044 = vmatprep.subr.mxu1 %v9287_v39 }
 0xc2f   :  { %6045 = vmatpush3.msra.mxu1 %v8781_v13 }
 0xc30   :  { %6046 = vmatprep.subr.mxu1 %v9287_v39 }
 0xc31   :  { %6047 = vmatpush3.msra.mxu1 %v8788_v6 }
 0xc32   :  { %6048 = vmatprep.subr.mxu1 %v9287_v39 }
 0xc33   :  { %6049 = vmatpush3.msra.mxu1 %v8794_v40 }
 0xc34   :  { %6050 = vmatprep.subr.mxu1 %v9287_v39 }
 0xc35   :  { %6051 = vmatpush3.msra.mxu1 %v8800_v8 }
 0xc36   :  { %6052 = vmatprep.subr.mxu1 %v9287_v39 }
 0xc37   :  { %6053 = vmatpush3.msra.mxu1 %v8807_v52 }
 0xc38   :  { %6054 = vmatprep.subr.mxu1 %v9287_v39 }
 0xc39   :  { %6055 = vmatpush3.msra.mxu1 %v8813_v5 }
 0xc3a   :  { %6056 = vmatprep.subr.mxu1 %v9287_v39 }
 0xc3b   :  { %6057 = vmatpush3.msra.mxu1 %v8819_v17 }
 0xc3c   :  { %6058 = vmatprep.subr.mxu1 %v9287_v39 }
 0xc3d   :  { %6059 = vmatpush3.msra.mxu1 %v8827_v48 }
 0xc3e   :  { %6060 = vmatprep.subr.mxu1 %v9287_v39 }
 0xc3f   :  { %6061 = vmatpush3.msra.mxu1 %v8833_v37  ;;  %v9085_v37 = vld [vmem:[%s9172_s9] ss:$0 sm:$0xff] }
 0xc40   :  { %6100 = vmatprep.subr.mxu1 %v9287_v39 }
 0xca2   :  { %v3367_v7 = vpop.f32.mrf.mxu0 }
 0xca4   :  { %v5959_v32 = vpop.f32.mrf.mxu0 }
 0xca5   :  { %v3718_v32 = vld [vmem:[#allocation12 + $0x20] sm:$0xff] }
 0xcbe   :  { %v3297_v34 = vpop.f32.mrf.mxu1 }
 0xcbf   :  { %v3368_v13 = vadd.f32 %v3367_v7, %v3297_v34  ;;  %v3719_v7 = vld [vmem:[#allocation12 + $0x28] sm:$0xff] }
 0xcc0   :  { %v5924_v30 = vpop.f32.mrf.mxu1 }
 0xcc1   :  { %v3371_v51 = vadd.f32 %v8591_v29, %v3368_v13  ;;  %v3717_v13 = vld [vmem:[#allocation12 + $0x18] sm:$0xff]  ;;  %v3716_v30 = vld [vmem:[#allocation12 + $0x10] sm:$0xff] }
 0xcc2   :  { %v3528_v45 = vpop.f32.mrf.mxu0 }
 0xcc3   :  { %v3952_v6 = vmul.f32 -1.442695, %v3371_v51  ;;  %3378 = vrot.lane.b32.xlu0 %v3371_v51, %s6724_s22  ;;  %v3715_v51 = vld [vmem:[#allocation12 + $0x8] sm:$0xff] }
 0xcc4   :  { %v6029_v40 = vpop.f32.mrf.mxu0 }
 0xcc5   :  { %6353 = vpow2.f32 %v3952_v6  ;;  %v3822_v6 = vld [vmem:[#allocation14 + $0x78] sm:$0xff]  ;;  %v3821_v40 = vld [vmem:[#allocation14 + $0x70] sm:$0xff] }
 0xcd2   :  { %v6354_v8 = vpop.eup %6353 }
 0xcd3   :  { %v3375_v52 = vadd.f32 1.0, %v6354_v8  ;;  %v3820_v8 = vld [vmem:[#allocation14 + $0x68] sm:$0xff] }
 0xcd5   :  { %6355 = vrcp.f32 %v3375_v52  ;;  %v3819_v52 = vld [vmem:[#allocation14 + $0x60] sm:$0xff] }
 0xcde   :  { %v3458_v5 = vpop.f32.mrf.mxu1 }
 0xcdf   :  { %v3529_v17 = vadd.f32 %v3528_v45, %v3458_v5  ;;  %v3714_v45 = vld [vmem:[#allocation12] sm:$0xff]  ;;  %v3818_v5 = vld [vmem:[#allocation14 + $0x58] sm:$0xff] }
 0xce0   :  { %v5994_v48 = vpop.f32.mrf.mxu1 }
 0xce1   :  { %v3532_v44 = vadd.f32 %v9085_v37, %v3529_v17  ;;  %v3817_v17 = vld [vmem:[#allocation14 + $0x50] sm:$0xff]  ;;  %v3816_v48 = vld [vmem:[#allocation14 + $0x48] sm:$0xff] }
 0xce2   :  { %v6356_v29 = vpop.eup %6355 }
 0xce3   :  { %v3953_v31 = vmul.f32 -1.442695, %v3532_v44  ;;  %3539 = vrot.lane.b32.xlu1 %v3532_v44, %s6724_s22  ;;  %3381 = vrot.lane.b32.xlu0 %v6356_v29, %s6726_s26  ;;  %v3814_v44 = vld [vmem:[#allocation14 + $0x38] sm:$0xff] }
 0xce5   :  { %6357 = vpow2.f32 %v3953_v31  ;;  %v3812_v31 = vld [vmem:[#allocation14 + $0x28] sm:$0xff] }
 0xce7   :  { %3383 = vrot.lane.b32.xlu1 %v6356_v29, %s6725_s10 }
 0xcf2   :  { %v6358_v4 = vpop.eup %6357 }
 0xcf3   :  { %v3536_v46 = vadd.f32 1.0, %v6358_v4  ;;  %v3811_v4 = vld [vmem:[#allocation14 + $0x20] sm:$0xff] }
 0xcf5   :  { %6359 = vrcp.f32 %v3536_v46  ;;  %v3810_v46 = vld [vmem:[#allocation14 + $0x18] sm:$0xff] }
 0xd02   :  { %v6360_v42 = vpop.eup %6359 }
 0xd03   :  { %3544 = vrot.lane.b32.xlu1 %v6360_v42, %s6725_s10  ;;  %3542 = vrot.lane.b32.xlu0 %v6360_v42, %s6726_s26 }
 0xd35   :  { %v3379_v62 = vpop.permute.xlu0 %3378 }
 0xd36   :  { %6361 = vtanh.f32 %v3379_v62 }
 0xd43   :  { %v6362_v2 = vpop.eup %6361 }
 0xd44   :  { %v3388_v49 = vmul.f32 %v6362_v2, %v6356_v29  ;;  %v3813_v29 = vld [vmem:[#allocation14 + $0x30] sm:$0xff] }
 0xd55   :  { %v3540_v43 = vpop.permute.xlu1 %3539  ;;  %v3382_v60 = vpop.permute.xlu0 %3381 }
 0xd59   :  { %v3384_v20 = vpop.permute.xlu1 %3383 }
 0xd5a   :  { %v3385_v58 = vsel %vm7112_vm3, %v3382_v60, %v3384_v20  ;;  %v3386_v54 = vsel %vm7112_vm3, %v3384_v20, %v3382_v60 }
 0xd5b   :  { %v3387_v9 = vmul.f32 %v3385_v58, %v8933_v14 }
 0xd5d   :  { %v3389_v28 = vadd.f32 %v3388_v49, %v3387_v9 }
 0xd5f   :  { %6363 = vtanh.f32 %v3389_v28 }
 0xd60   :  { %6365 = vtanh.f32 %v3540_v43 }
 0xd6c   :  { %v6364_v55 = vpop.eup %6363 }
 0xd6d   :  { %v3391_v57 = vmul.f32 %v6364_v55, %v3386_v54  ;;  %v6366_v12 = vpop.eup %6365 }
 0xd6e   :  { %v3549_v16 = vmul.f32 %v6366_v12, %v6360_v42  ;;  %v3809_v42 = vld [vmem:[#allocation14 + $0x10] sm:$0xff]  ;;  %v3807_v12 = vld [vmem:[#allocation14] sm:$0xff] }
 0xd6f   :  { %6098 = vmatmul.mubr.f32.vlgmr.msra.gmra.mxu0 %v3391_v57  ;;  %v3808_v57 = vld [vmem:[#allocation14 + $0x8] sm:$0xff] }
 0xd70   :  { %6167 = vmatprep.mubr.msk.f32.mxu0 %vm6723_vm0, %v9287_v39  ;;  %6136 = vmatpush3.msra.mxu0 %v3822_v6 }
 0xd71   :  { %6137 = vmatprep.subr.mxu0 %v9287_v39 }
 0xd72   :  { %6138 = vmatpush3.msra.mxu0 %v3821_v40 }
 0xd73   :  { %6139 = vmatprep.subr.mxu0 %v9287_v39 }
 0xd74   :  { %6140 = vmatpush3.msra.mxu0 %v3820_v8 }
 0xd75   :  { %v3545_v36 = vpop.permute.xlu1 %3544  ;;  %v3543_v0 = vpop.permute.xlu0 %3542  ;;  %6141 = vmatprep.subr.mxu0 %v9287_v39 }
 0xd76   :  { %v3546_v15 = vsel %vm7112_vm3, %v3543_v0, %v3545_v36  ;;  %v3547_v61 = vsel %vm7112_vm3, %v3545_v36, %v3543_v0  ;;  %6142 = vmatpush3.msra.mxu0 %v3819_v52  ;;  %v3955_v36 = vld [vmem:[%s9174_s11] ss:$0 sm:$0xff] }
 0xd77   :  { %v3548_v14 = vmul.f32 %v3546_v15, %v8995_v59  ;;  %v3723_v59 = vld [vmem:[#allocation12 + $0x48] sm:$0xff]  ;;  %6143 = vmatprep.subr.mxu0 %v9287_v39 }
 0xd78   :  { %6144 = vmatpush3.msra.mxu0 %v3818_v5 }
 0xd79   :  { %v9103_v21 = vadd.f32 %v3549_v16, %v3548_v14  ;;  %6145 = vmatprep.subr.mxu0 %v9287_v39 }
 0xd7a   :  { %6146 = vmatpush3.msra.mxu0 %v3817_v17 }
 0xd7b   :  { %6367 = vtanh.f32 %v9103_v21  ;;  %6147 = vmatprep.subr.mxu0 %v9287_v39 }
 0xd7c   :  { %6148 = vmatpush3.msra.mxu0 %v3816_v48 }
 0xd7d   :  { %6149 = vmatprep.subr.mxu0 %v9287_v39 }
 0xd88   :  { %v6368_v23 = vpop.eup %6367 }
 0xd89   :  { %v3552_v47 = vmul.f32 %v6368_v23, %v3547_v61 }
 0xd8b   :  { %6063 = vmatmul.mubr.f32.vlgmr.msra.gmra.mxu1 %v3552_v47 }
 0xd8c   :  { %6132 = vmatprep.mubr.msk.f32.mxu1 %vm6723_vm0, %v9287_v39  ;;  %6101 = vmatpush3.msra.mxu1 %v3729_v10 }
 0xd8d   :  { %6102 = vmatprep.subr.mxu1 %v9287_v39 }
 0xd8e   :  { %6103 = vmatpush3.msra.mxu1 %v3728_v35 }
 0xd8f   :  { %6104 = vmatprep.subr.mxu1 %v9287_v39 }
 0xd90   :  { %6105 = vmatpush3.msra.mxu1 %v3727_v24 }
 0xd91   :  { %6106 = vmatprep.subr.mxu1 %v9287_v39 }
 0xd92   :  { %6107 = vmatpush3.msra.mxu1 %v3726_v25 }
 0xd93   :  { %6108 = vmatprep.subr.mxu1 %v9287_v39 }
 0xd94   :  { %6109 = vmatpush3.msra.mxu1 %v3725_v27 }
 0xd95   :  { %6110 = vmatprep.subr.mxu1 %v9287_v39 }
 0xd96   :  { %6111 = vmatpush3.msra.mxu1 %v3724_v26 }
 0xd97   :  { %6112 = vmatprep.subr.mxu1 %v9287_v39 }
 0xd98   :  { %6113 = vmatpush3.msra.mxu1 %v3723_v59 }
 0xd99   :  { %6114 = vmatprep.subr.mxu1 %v9287_v39 }
 0xd9a   :  { %6115 = vmatpush3.msra.mxu1 %v3722_v11 }
 0xd9b   :  { %6116 = vmatprep.subr.mxu1 %v9287_v39 }
 0xd9c   :  { %6117 = vmatpush3.msra.mxu1 %v3721_v18 }
 0xd9d   :  { %6118 = vmatprep.subr.mxu1 %v9287_v39 }
 0xd9e   :  { %6119 = vmatpush3.msra.mxu1 %v3720_v56 }
 0xd9f   :  { %6120 = vmatprep.subr.mxu1 %v9287_v39 }
 0xda0   :  { %6121 = vmatpush3.msra.mxu1 %v3719_v7 }
 0xda1   :  { %6122 = vmatprep.subr.mxu1 %v9287_v39 }
 0xda2   :  { %6123 = vmatpush3.msra.mxu1 %v3718_v32 }
 0xda3   :  { %6124 = vmatprep.subr.mxu1 %v9287_v39 }
 0xda4   :  { %6125 = vmatpush3.msra.mxu1 %v3717_v13 }
 0xda5   :  { %6126 = vmatprep.subr.mxu1 %v9287_v39 }
 0xda6   :  { %6127 = vmatpush3.msra.mxu1 %v3716_v30 }
 0xda7   :  { %6128 = vmatprep.subr.mxu1 %v9287_v39 }
 0xda8   :  { %6129 = vmatpush3.msra.mxu1 %v3715_v51 }
 0xda9   :  { %6130 = vmatprep.subr.mxu1 %v9287_v39 }
 0xdaa   :  { %6131 = vmatpush3.msra.mxu1 %v3714_v45 }
 0xe2f   :  { %v3689_v19 = vpop.f32.mrf.mxu0 }
 0xe31   :  { %v6099_v41 = vpop.f32.mrf.mxu0 }
 0xe4b   :  { %v3619_v53 = vpop.f32.mrf.mxu1 }
 0xe4c   :  { %v3690_v22 = vadd.f32 %v3689_v19, %v3619_v53 }
 0xe4d   :  { %v6064_v33 = vpop.f32.mrf.mxu1 }
 0xe4e   :  { %v3693_v50 = vadd.f32 %v9085_v37, %v3690_v22  ;;  %v3815_v37 = vld [vmem:[#allocation14 + $0x40] sm:$0xff] }
 0xe4f   :  { %6150 = vmatpush3.msra.mxu0 %v3815_v37 }
 0xe50   :  { %v3954_v3 = vmul.f32 -1.442695, %v3693_v50  ;;  %3700 = vrot.lane.b32.xlu0 %v3693_v50, %s6724_s22  ;;  %6151 = vmatprep.subr.mxu0 %v9287_v39 }
 0xe51   :  { %6152 = vmatpush3.msra.mxu0 %v3814_v44 }
 0xe52   :  { %6369 = vpow2.f32 %v3954_v3  ;;  %6153 = vmatprep.subr.mxu0 %v9287_v39 }
 0xe53   :  { %6154 = vmatpush3.msra.mxu0 %v3813_v29 }
 0xe54   :  { %6155 = vmatprep.subr.mxu0 %v9287_v39 }
 0xe55   :  { %6156 = vmatpush3.msra.mxu0 %v3812_v31 }
 0xe56   :  { %6157 = vmatprep.subr.mxu0 %v9287_v39 }
 0xe57   :  { %6158 = vmatpush3.msra.mxu0 %v3811_v4 }
 0xe58   :  { %6159 = vmatprep.subr.mxu0 %v9287_v39 }
 0xe59   :  { %6160 = vmatpush3.msra.mxu0 %v3810_v46 }
 0xe5a   :  { %6161 = vmatprep.subr.mxu0 %v9287_v39 }
 0xe5b   :  { %6162 = vmatpush3.msra.mxu0 %v3809_v42 }
 0xe5c   :  { %6163 = vmatprep.subr.mxu0 %v9287_v39 }
 0xe5d   :  { %6164 = vmatpush3.msra.mxu0 %v3808_v57 }
 0xe5e   :  { %6165 = vmatprep.subr.mxu0 %v9287_v39 }
 0xe5f   :  { %v6370_v1 = vpop.eup %6369  ;;  %6166 = vmatpush3.msra.mxu0 %v3807_v12 }
 0xe60   :  { %v3697_v38 = vadd.f32 1.0, %v6370_v1 }
 0xe62   :  { %6371 = vrcp.f32 %v3697_v38 }
 0xe6f   :  { %v9123_v34 = vpop.eup %6371 }
 0xe70   :  { %3705 = vrot.lane.b32.xlu0 %v9123_v34, %s6725_s10  ;;  %3703 = vrot.lane.b32.xlu1 %v9123_v34, %s6726_s26 }
 0xec2   :  { %v3701_v62 = vpop.permute.xlu0 %3700 }
 0xec3   :  { %6373 = vtanh.f32 %v3701_v62 }
 0xed0   :  { %v6374_v43 = vpop.eup %6373 }
 0xed1   :  { %v3710_v49 = vmul.f32 %v6374_v43, %v9123_v34 }
 0xee2   :  { %v3706_v2 = vpop.permute.xlu0 %3705  ;;  %v3704_v60 = vpop.permute.xlu1 %3703 }
 0xee3   :  { %v3707_v20 = vsel %vm7112_vm3, %v3704_v60, %v3706_v2  ;;  %v3708_v55 = vsel %vm7112_vm3, %v3706_v2, %v3704_v60 }
 0xee4   :  { %v3709_v58 = vmul.f32 %v3707_v20, %v9103_v21 }
 0xee6   :  { %v3711_v9 = vadd.f32 %v3710_v49, %v3709_v58 }
 0xee8   :  { %6375 = vtanh.f32 %v3711_v9 }
 0xef5   :  { %v6376_v28 = vpop.eup %6375 }
 0xef6   :  { %v3713_v54 = vmul.f32 %v6376_v28, %v3708_v55 }
 0xef8   :  { %6133 = vmatmul.mubr.f32.vlgmr.msra.gmra.mxu1 %v3713_v54 }
 0xfb8   :  { %v3803_v0 = vpop.f32.mrf.mxu1 }
 0xfb9   :  { %v3804_v15 = vadd.f32 %v3955_v36, %v3803_v0 }
 0xfba   :  { %v6134_v14 = vpop.f32.mrf.mxu1 }
 0xfbb   :  { %6168 = vmatmul.mubr.f32.vlgmr.msra.gmra.mxu0 %v3804_v15 }
0x107b   :  { %v3896_v16 = vpop.f32.mrf.mxu0 }
0x107c   :  { %v3897_v21 = vadd.f32 %v3956_v63, %v3896_v16 }
0x107d   :  { %v6169_v39 = vpop.f32.mrf.mxu0 }
0x107e   :  { %3900 = vst [vmem:[#allocation15] sm:$0xff] %v3897_v21 }
0x107f   :  { %6694 = shalt.err (!%p6691_p11)
}
0x1080   :  { %3910 = dma.vmem_to_hbm [thread:$0]  %s3908_s28, 128, %s9177_s14, [#allocation5]  }
0x1081   :  { %6711 = dma.done.wait [#allocation5], 128  }
0x1082   :  { %6712 = vsyncadd [#allocation5], 4294967168 }
0x1083   :  { %3914 = vsyncpa [#allocation4], 1 }
0x1084   :  { %3915 = vsyncpa [#allocation7], 1 }
0x1085   :  { %3916 = vsyncpa [#allocation10], 1 }
0x1086   :  { %3917 = vsyncpa [#allocation13], 1 }
0x1087   :  { %3918 = vsyncpa [#allocation5], 1 }

</bundles_post_ra>
